<compile_context>
chip_gen: v6e
topology: v6e:2x2x1
jax: 0.10.0
libtpu: 0.0.40
codegen_flags: <defaults>
</compile_context>

<pallas_src>
import jax
import jax.numpy as jnp
import numpy as np
from jax.experimental import pallas as pl
from jax.experimental.pallas import tpu as pltpu  # noqa: F401  (TPU backend)

LANE = 128


def _round_up(x, m):
    return ((x + m - 1) // m) * m


# ------------------------------ fused kernel ------------------------------- #

def _fused_cnn_kernel(patches_ref, w1_ref, b1_ref, s1_ref, g2_ref, w2_ref,
                      b2_ref, s2_ref, wf1_ref, bf1_ref, wf2_ref, bf2_ref,
                      o_ref):
    # conv1 (pre-im2col'ed patches) + bias + ReLU                  -> (M1P, 128)
    y1 = jnp.dot(patches_ref[...], w1_ref[...],
                 preferred_element_type=jnp.float32)
    y1 = jnp.maximum(y1 + b1_ref[...], 0.0)

    # maxpool1: each of the 4 window taps is a 0/1 row-selection matmul; the
    # pool is the elementwise max of the 4 gathered copies.        -> (R1P, 128)
    p1 = jnp.dot(s1_ref[0], y1, preferred_element_type=jnp.float32)
    for k in range(1, s1_ref.shape[0]):
        p1 = jnp.maximum(
            p1, jnp.dot(s1_ref[k], y1, preferred_element_type=jnp.float32))

    # conv2: sum over the 9 kernel taps; each tap = row-gather matmul followed
    # by a (Cin -> Cout) matmul with that tap's weight slice.      -> (B*4, 128)
    acc = jnp.dot(jnp.dot(g2_ref[0], p1, preferred_element_type=jnp.float32),
                  w2_ref[0], preferred_element_type=jnp.float32)
    for t in range(1, g2_ref.shape[0]):
        rows = jnp.dot(g2_ref[t], p1, preferred_element_type=jnp.float32)
        acc = acc + jnp.dot(rows, w2_ref[t],
                            preferred_element_type=jnp.float32)
    y2 = jnp.maximum(acc + b2_ref[...], 0.0)

    # maxpool2 (+ flatten): conv2 spatial is 2x2 -> 1x1, so take the max over
    # the 4 rows of each sample, again via selection matmuls.      -> (B, 128)
    p2 = jnp.dot(s2_ref[0], y2, preferred_element_type=jnp.float32)
    for k in range(1, s2_ref.shape[0]):
        p2 = jnp.maximum(
            p2, jnp.dot(s2_ref[k], y2, preferred_element_type=jnp.float32))

    # fc1 + ReLU, fc2 (all lane-padded to 128)                     -> (B, 128)
    h = jnp.maximum(
        jnp.dot(p2, wf1_ref[...], preferred_element_type=jnp.float32)
        + bf1_ref[...], 0.0)
    o_ref[...] = (jnp.dot(h, wf2_ref[...], preferred_element_type=jnp.float32)
                  + bf2_ref[...]).astype(o_ref.dtype)


# ------------------------------- wrapper ----------------------------------- #

@jax.jit
def cnn_forward(x_nchw, p):
    B, C, H, W = x_nchw.shape
    KH = KW = 3

    OH1, OW1 = (H - KH) // 2 + 1, (W - KW) // 2 + 1      # conv1 out: 13x13
    PH1, PW1 = OH1 // 2, OW1 // 2                        # pool1 out:  6x6
    OH2, OW2 = (PH1 - KH) // 2 + 1, (PW1 - KW) // 2 + 1  # conv2 out:  2x2
    PH2, PW2 = OH2 // 2, OW2 // 2                        # pool2 out:  1x1
    assert PH2 * PW2 * 40 == 40, "fc1 expects 40 features (use 28x28 input)"

    M1, K1 = B * OH1 * OW1, KH * KW * C
    M1P, K1P = _round_up(M1, LANE), _round_up(K1, LANE)
    R1 = B * PH1 * PW1
    R1P = _round_up(R1, LANE)
    M2 = B * OH2 * OW2
    NW2 = OH2 * OW2                       # pool2 window elements per sample

    # -------- conv1 im2col (one-time glue on the raw input) + zero padding ----
    x = jnp.transpose(x_nchw, (0, 2, 3, 1))              # NCHW -> NHWC
    cols = []
    for kh in range(KH):
        for kw in range(KW):
            cols.append(x[:, kh:kh + 2 * (OH1 - 1) + 1:2,
                          kw:kw + 2 * (OW1 - 1) + 1:2, :])
    patches = jnp.concatenate(cols, axis=-1).reshape(M1, K1)
    patches = jnp.pad(patches, ((0, M1P - M1), (0, K1P - K1)))

    # -------- weights / biases, zero-padded to the 128-lane width -------------
    w1 = jnp.transpose(p["w1"], (2, 3, 1, 0)).reshape(K1, 20)   # (kh,kw,cin)xCout
    w1 = jnp.pad(w1, ((0, K1P - K1), (0, LANE - 20)))
    b1 = jnp.pad(p["b1"], (0, LANE - 20)).reshape(1, LANE)

    w2 = jnp.transpose(p["w2"], (2, 3, 1, 0)).reshape(KH * KW, 20, 40)
    w2 = jnp.pad(w2, ((0, 0), (0, LANE - 20), (0, LANE - 40)))
    b2 = jnp.pad(p["b2"], (0, LANE - 40)).reshape(1, LANE)

    wf1 = jnp.pad(p["fw1"].T, ((0, LANE - 40), (0, LANE - 20)))
    bf1 = jnp.pad(p["fb1"], (0, LANE - 20)).reshape(1, LANE)
    wf2 = jnp.pad(p["fw2"].T, ((0, LANE - 20), (0, LANE - 10)))
    bf2 = jnp.pad(p["fb2"], (0, LANE - 10)).reshape(1, LANE)

    # -------- static 0/1 gather matrices (trace-time numpy -> constants) ------
    s1 = np.zeros((4, R1P, M1P), np.float32)             # pool1 row selectors
    for k, (dh, dw) in enumerate(((0, 0), (0, 1), (1, 0), (1, 1))):
        for b in range(B):
            for ph in range(PH1):
                for pw in range(PW1):
                    dst = b * PH1 * PW1 + ph * PW1 + pw
                    src = b * OH1 * OW1 + (2 * ph + dh) * OW1 + (2 * pw + dw)
                    s1[k, dst, src] = 1.0

    g2 = np.zeros((KH * KW, M2, R1P), np.float32)        # conv2 tap gathers
    for kh in range(KH):
        for kw in range(KW):
            for b in range(B):
                for oh in range(OH2):
                    for ow in range(OW2):
                        dst = b * OH2 * OW2 + oh * OW2 + ow
                        src = (b * PH1 * PW1 + (2 * oh + kh) * PW1
                               + (2 * ow + kw))
                        g2[kh * KW + kw, dst, src] = 1.0

    s2 = np.zeros((NW2, B, M2), np.float32)              # pool2 row selectors
    for b in range(B):
        for k in range(NW2):
            s2[k, b, b * NW2 + k] = 1.0

    operands = (patches, w1, b1, jnp.asarray(s1), jnp.asarray(g2), w2, b2,
                jnp.asarray(s2), wf1, bf1, wf2, bf2)

    def _spec(shape):
        return pl.BlockSpec(shape, lambda: (0,) * len(shape))

    out = pl.pallas_call(
        _fused_cnn_kernel,
        out_shape=jax.ShapeDtypeStruct((B, LANE), jnp.float32),
        in_specs=[_spec(op.shape) for op in operands],
        out_specs=_spec((B, LANE)),
    )(*operands)
    return out[:, :10]


# ---------------------------- params / reference --------------------------- #

def init_params(key, c):
    ks = jax.random.split(key, 8)

    def u(k, shape, fan_in):
        bound = 1.0 / np.sqrt(fan_in)
        return jax.random.uniform(k, shape, jnp.float32, -bound, bound)

    return {
        "w1": u(ks[0], (20, c, 3, 3), c * 9),
        "b1": u(ks[1], (20,), c * 9),
        "w2": u(ks[2], (40, 20, 3, 3), 20 * 9),
        "b2": u(ks[3], (40,), 20 * 9),
        "fw1": u(ks[4], (20, 40), 40),   # torch Linear weight layout (out, in)
        "fb1": u(ks[5], (20,), 40),
        "fw2": u(ks[6], (10, 20), 20),
        "fb2": u(ks[7], (10,), 20),
    }


def reference_forward(x, p):
    dn = ("NCHW", "OIHW", "NCHW")
    y = jax.lax.conv_general_dilated(x, p["w1"], (2, 2), "VALID",
                                     dimension_numbers=dn)
    y = jnp.maximum(y + p["b1"][None, :, None, None], 0.0)
    y = jax.lax.reduce_window(y, -jnp.inf, jax.lax.max,
                              (1, 1, 2, 2), (1, 1, 2, 2), "VALID")
    y = jax.lax.conv_general_dilated(y, p["w2"], (2, 2), "VALID",
                                     dimension_numbers=dn)
    y = jnp.maximum(y + p["b2"][None, :, None, None], 0.0)
    y = jax.lax.reduce_window(y, -jnp.inf, jax.lax.max,
                              (1, 1, 2, 2), (1, 1, 2, 2), "VALID")
    y = y.reshape(y.shape[0], -1)
    y = jnp.maximum(y @ p["fw1"].T + p["fb1"], 0.0)
    y = y @ p["fw2"].T + p["fb2"]
    return y


if __name__ == "__main__":
    key = jax.random.PRNGKey(0)
    kx, kp = jax.random.split(key)
    B, C, H, W = 2, 4, 28, 28   # H=W=28 required so Flatten produces 40 features
    x = jax.random.normal(kx, (B, C, H, W), jnp.float32)
    params = init_params(kp, C)

    out = jax.block_until_ready(cnn_forward(x, params))
    ref = jax.block_until_ready(reference_forward(x, params))

    assert out.shape == (B, 10), out.shape
    err = np.max(np.abs(np.asarray(out) - np.asarray(ref)))
    assert np.allclose(np.asarray(out), np.asarray(ref), rtol=2e-2, atol=2e-2), err
    print("KERNEL_OK")
</pallas_src>

<mosaic_0001>
module attributes {stable_mosaic.version = 11 : i64} {
  func.func @_fused_cnn_kernel(%arg0: memref<384x128xf32, #tpu.memory_space<vmem>>, %arg1: memref<128x128xf32, #tpu.memory_space<vmem>>, %arg2: memref<1x128xf32, #tpu.memory_space<vmem>>, %arg3: memref<4x128x384xf32, #tpu.memory_space<vmem>>, %arg4: memref<9x8x128xf32, #tpu.memory_space<vmem>>, %arg5: memref<9x128x128xf32, #tpu.memory_space<vmem>>, %arg6: memref<1x128xf32, #tpu.memory_space<vmem>>, %arg7: memref<4x2x8xf32, #tpu.memory_space<vmem>>, %arg8: memref<128x128xf32, #tpu.memory_space<vmem>>, %arg9: memref<1x128xf32, #tpu.memory_space<vmem>>, %arg10: memref<128x128xf32, #tpu.memory_space<vmem>>, %arg11: memref<1x128xf32, #tpu.memory_space<vmem>>, %arg12: memref<2x128xf32, #tpu.memory_space<vmem>>) attributes {dimension_semantics = [], scalar_prefetch = 0 : i64, scratch_operands = 0 : i64, tpu.core_type = #tpu.core_type<tc>} {
    %c0 = arith.constant 0 : index
    %c0_0 = arith.constant 0 : index
    %0 = vector.load %arg0[%c0, %c0_0] : memref<384x128xf32, #tpu.memory_space<vmem>>, vector<384x128xf32>
    %c0_1 = arith.constant 0 : index
    %c0_2 = arith.constant 0 : index
    %1 = vector.load %arg1[%c0_1, %c0_2] : memref<128x128xf32, #tpu.memory_space<vmem>>, vector<128x128xf32>
    %cst = arith.constant dense<0.000000e+00> : vector<384x128xf32>
    %2 = tpu.matmul %0, %1, %cst {dimension_numbers = #tpu.dot_dimension_numbers<[1], [0], [0], [1], [0, 0, 1, 1], [], []>} : vector<384x128xf32>, vector<128x128xf32>, vector<384x128xf32> -> vector<384x128xf32>
    %c0_3 = arith.constant 0 : index
    %c0_4 = arith.constant 0 : index
    %3 = vector.load %arg2[%c0_3, %c0_4] : memref<1x128xf32, #tpu.memory_space<vmem>>, vector<1x128xf32>
    %4 = vector.broadcast %3 : vector<1x128xf32> to vector<384x128xf32>
    %5 = arith.addf %2, %4 : vector<384x128xf32>
    %cst_5 = arith.constant 0.000000e+00 : f32
    %6 = vector.broadcast %cst_5 : f32 to vector<384x128xf32>
    %7 = arith.maximumf %5, %6 : vector<384x128xf32>
    %c0_6 = arith.constant 0 : index
    %c0_7 = arith.constant 0 : index
    %c0_8 = arith.constant 0 : index
    %8 = vector.load %arg3[%c0_6, %c0_7, %c0_8] : memref<4x128x384xf32, #tpu.memory_space<vmem>>, vector<1x128x384xf32>
    %9 = vector.shape_cast %8 : vector<1x128x384xf32> to vector<128x384xf32>
    %cst_9 = arith.constant dense<0.000000e+00> : vector<128x128xf32>
    %10 = tpu.matmul %9, %7, %cst_9 {dimension_numbers = #tpu.dot_dimension_numbers<[1], [0], [0], [1], [0, 0, 1, 1], [], []>} : vector<128x384xf32>, vector<384x128xf32>, vector<128x128xf32> -> vector<128x128xf32>
    %c1 = arith.constant 1 : index
    %c0_10 = arith.constant 0 : index
    %c0_11 = arith.constant 0 : index
    %11 = vector.load %arg3[%c1, %c0_10, %c0_11] : memref<4x128x384xf32, #tpu.memory_space<vmem>>, vector<1x128x384xf32>
    %12 = vector.shape_cast %11 : vector<1x128x384xf32> to vector<128x384xf32>
    %cst_12 = arith.constant dense<0.000000e+00> : vector<128x128xf32>
    %13 = tpu.matmul %12, %7, %cst_12 {dimension_numbers = #tpu.dot_dimension_numbers<[1], [0], [0], [1], [0, 0, 1, 1], [], []>} : vector<128x384xf32>, vector<384x128xf32>, vector<128x128xf32> -> vector<128x128xf32>
    %14 = arith.maximumf %10, %13 : vector<128x128xf32>
    %c2 = arith.constant 2 : index
    %c0_13 = arith.constant 0 : index
    %c0_14 = arith.constant 0 : index
    %15 = vector.load %arg3[%c2, %c0_13, %c0_14] : memref<4x128x384xf32, #tpu.memory_space<vmem>>, vector<1x128x384xf32>
    %16 = vector.shape_cast %15 : vector<1x128x384xf32> to vector<128x384xf32>
    %cst_15 = arith.constant dense<0.000000e+00> : vector<128x128xf32>
    %17 = tpu.matmul %16, %7, %cst_15 {dimension_numbers = #tpu.dot_dimension_numbers<[1], [0], [0], [1], [0, 0, 1, 1], [], []>} : vector<128x384xf32>, vector<384x128xf32>, vector<128x128xf32> -> vector<128x128xf32>
    %18 = arith.maximumf %14, %17 : vector<128x128xf32>
    %c3 = arith.constant 3 : index
    %c0_16 = arith.constant 0 : index
    %c0_17 = arith.constant 0 : index
    %19 = vector.load %arg3[%c3, %c0_16, %c0_17] : memref<4x128x384xf32, #tpu.memory_space<vmem>>, vector<1x128x384xf32>
    %20 = vector.shape_cast %19 : vector<1x128x384xf32> to vector<128x384xf32>
    %cst_18 = arith.constant dense<0.000000e+00> : vector<128x128xf32>
    %21 = tpu.matmul %20, %7, %cst_18 {dimension_numbers = #tpu.dot_dimension_numbers<[1], [0], [0], [1], [0, 0, 1, 1], [], []>} : vector<128x384xf32>, vector<384x128xf32>, vector<128x128xf32> -> vector<128x128xf32>
    %22 = arith.maximumf %18, %21 : vector<128x128xf32>
    %c0_19 = arith.constant 0 : index
    %c0_20 = arith.constant 0 : index
    %c0_21 = arith.constant 0 : index
    %23 = vector.load %arg4[%c0_19, %c0_20, %c0_21] : memref<9x8x128xf32, #tpu.memory_space<vmem>>, vector<1x8x128xf32>
    %24 = vector.shape_cast %23 : vector<1x8x128xf32> to vector<8x128xf32>
    %cst_22 = arith.constant dense<0.000000e+00> : vector<8x128xf32>
    %25 = tpu.matmul %24, %22, %cst_22 {dimension_numbers = #tpu.dot_dimension_numbers<[1], [0], [0], [1], [0, 0, 1, 1], [], []>} : vector<8x128xf32>, vector<128x128xf32>, vector<8x128xf32> -> vector<8x128xf32>
    %c0_23 = arith.constant 0 : index
    %c0_24 = arith.constant 0 : index
    %c0_25 = arith.constant 0 : index
    %26 = vector.load %arg5[%c0_23, %c0_24, %c0_25] : memref<9x128x128xf32, #tpu.memory_space<vmem>>, vector<1x128x128xf32>
    %27 = vector.shape_cast %26 : vector<1x128x128xf32> to vector<128x128xf32>
    %cst_26 = arith.constant dense<0.000000e+00> : vector<8x128xf32>
    %28 = tpu.matmul %25, %27, %cst_26 {dimension_numbers = #tpu.dot_dimension_numbers<[1], [0], [0], [1], [0, 0, 1, 1], [], []>} : vector<8x128xf32>, vector<128x128xf32>, vector<8x128xf32> -> vector<8x128xf32>
    %c1_27 = arith.constant 1 : index
    %c0_28 = arith.constant 0 : index
    %c0_29 = arith.constant 0 : index
    %29 = vector.load %arg4[%c1_27, %c0_28, %c0_29] : memref<9x8x128xf32, #tpu.memory_space<vmem>>, vector<1x8x128xf32>
    %30 = vector.shape_cast %29 : vector<1x8x128xf32> to vector<8x128xf32>
    %cst_30 = arith.constant dense<0.000000e+00> : vector<8x128xf32>
    %31 = tpu.matmul %30, %22, %cst_30 {dimension_numbers = #tpu.dot_dimension_numbers<[1], [0], [0], [1], [0, 0, 1, 1], [], []>} : vector<8x128xf32>, vector<128x128xf32>, vector<8x128xf32> -> vector<8x128xf32>
    %c1_31 = arith.constant 1 : index
    %c0_32 = arith.constant 0 : index
    %c0_33 = arith.constant 0 : index
    %32 = vector.load %arg5[%c1_31, %c0_32, %c0_33] : memref<9x128x128xf32, #tpu.memory_space<vmem>>, vector<1x128x128xf32>
    %33 = vector.shape_cast %32 : vector<1x128x128xf32> to vector<128x128xf32>
    %cst_34 = arith.constant dense<0.000000e+00> : vector<8x128xf32>
    %34 = tpu.matmul %31, %33, %cst_34 {dimension_numbers = #tpu.dot_dimension_numbers<[1], [0], [0], [1], [0, 0, 1, 1], [], []>} : vector<8x128xf32>, vector<128x128xf32>, vector<8x128xf32> -> vector<8x128xf32>
    %35 = arith.addf %28, %34 : vector<8x128xf32>
    %c2_35 = arith.constant 2 : index
    %c0_36 = arith.constant 0 : index
    %c0_37 = arith.constant 0 : index
    %36 = vector.load %arg4[%c2_35, %c0_36, %c0_37] : memref<9x8x128xf32, #tpu.memory_space<vmem>>, vector<1x8x128xf32>
    %37 = vector.shape_cast %36 : vector<1x8x128xf32> to vector<8x128xf32>
    %cst_38 = arith.constant dense<0.000000e+00> : vector<8x128xf32>
    %38 = tpu.matmul %37, %22, %cst_38 {dimension_numbers = #tpu.dot_dimension_numbers<[1], [0], [0], [1], [0, 0, 1, 1], [], []>} : vector<8x128xf32>, vector<128x128xf32>, vector<8x128xf32> -> vector<8x128xf32>
    %c2_39 = arith.constant 2 : index
    %c0_40 = arith.constant 0 : index
    %c0_41 = arith.constant 0 : index
    %39 = vector.load %arg5[%c2_39, %c0_40, %c0_41] : memref<9x128x128xf32, #tpu.memory_space<vmem>>, vector<1x128x128xf32>
    %40 = vector.shape_cast %39 : vector<1x128x128xf32> to vector<128x128xf32>
    %cst_42 = arith.constant dense<0.000000e+00> : vector<8x128xf32>
    %41 = tpu.matmul %38, %40, %cst_42 {dimension_numbers = #tpu.dot_dimension_numbers<[1], [0], [0], [1], [0, 0, 1, 1], [], []>} : vector<8x128xf32>, vector<128x128xf32>, vector<8x128xf32> -> vector<8x128xf32>
    %42 = arith.addf %35, %41 : vector<8x128xf32>
    %c3_43 = arith.constant 3 : index
    %c0_44 = arith.constant 0 : index
    %c0_45 = arith.constant 0 : index
    %43 = vector.load %arg4[%c3_43, %c0_44, %c0_45] : memref<9x8x128xf32, #tpu.memory_space<vmem>>, vector<1x8x128xf32>
    %44 = vector.shape_cast %43 : vector<1x8x128xf32> to vector<8x128xf32>
    %cst_46 = arith.constant dense<0.000000e+00> : vector<8x128xf32>
    %45 = tpu.matmul %44, %22, %cst_46 {dimension_numbers = #tpu.dot_dimension_numbers<[1], [0], [0], [1], [0, 0, 1, 1], [], []>} : vector<8x128xf32>, vector<128x128xf32>, vector<8x128xf32> -> vector<8x128xf32>
    %c3_47 = arith.constant 3 : index
    %c0_48 = arith.constant 0 : index
    %c0_49 = arith.constant 0 : index
    %46 = vector.load %arg5[%c3_47, %c0_48, %c0_49] : memref<9x128x128xf32, #tpu.memory_space<vmem>>, vector<1x128x128xf32>
    %47 = vector.shape_cast %46 : vector<1x128x128xf32> to vector<128x128xf32>
    %cst_50 = arith.constant dense<0.000000e+00> : vector<8x128xf32>
    %48 = tpu.matmul %45, %47, %cst_50 {dimension_numbers = #tpu.dot_dimension_numbers<[1], [0], [0], [1], [0, 0, 1, 1], [], []>} : vector<8x128xf32>, vector<128x128xf32>, vector<8x128xf32> -> vector<8x128xf32>
    %49 = arith.addf %42, %48 : vector<8x128xf32>
    %c4 = arith.constant 4 : index
    %c0_51 = arith.constant 0 : index
    %c0_52 = arith.constant 0 : index
    %50 = vector.load %arg4[%c4, %c0_51, %c0_52] : memref<9x8x128xf32, #tpu.memory_space<vmem>>, vector<1x8x128xf32>
    %51 = vector.shape_cast %50 : vector<1x8x128xf32> to vector<8x128xf32>
    %cst_53 = arith.constant dense<0.000000e+00> : vector<8x128xf32>
    %52 = tpu.matmul %51, %22, %cst_53 {dimension_numbers = #tpu.dot_dimension_numbers<[1], [0], [0], [1], [0, 0, 1, 1], [], []>} : vector<8x128xf32>, vector<128x128xf32>, vector<8x128xf32> -> vector<8x128xf32>
    %c4_54 = arith.constant 4 : index
    %c0_55 = arith.constant 0 : index
    %c0_56 = arith.constant 0 : index
    %53 = vector.load %arg5[%c4_54, %c0_55, %c0_56] : memref<9x128x128xf32, #tpu.memory_space<vmem>>, vector<1x128x128xf32>
    %54 = vector.shape_cast %53 : vector<1x128x128xf32> to vector<128x128xf32>
    %cst_57 = arith.constant dense<0.000000e+00> : vector<8x128xf32>
    %55 = tpu.matmul %52, %54, %cst_57 {dimension_numbers = #tpu.dot_dimension_numbers<[1], [0], [0], [1], [0, 0, 1, 1], [], []>} : vector<8x128xf32>, vector<128x128xf32>, vector<8x128xf32> -> vector<8x128xf32>
    %56 = arith.addf %49, %55 : vector<8x128xf32>
    %c5 = arith.constant 5 : index
    %c0_58 = arith.constant 0 : index
    %c0_59 = arith.constant 0 : index
    %57 = vector.load %arg4[%c5, %c0_58, %c0_59] : memref<9x8x128xf32, #tpu.memory_space<vmem>>, vector<1x8x128xf32>
    %58 = vector.shape_cast %57 : vector<1x8x128xf32> to vector<8x128xf32>
    %cst_60 = arith.constant dense<0.000000e+00> : vector<8x128xf32>
    %59 = tpu.matmul %58, %22, %cst_60 {dimension_numbers = #tpu.dot_dimension_numbers<[1], [0], [0], [1], [0, 0, 1, 1], [], []>} : vector<8x128xf32>, vector<128x128xf32>, vector<8x128xf32> -> vector<8x128xf32>
    %c5_61 = arith.constant 5 : index
    %c0_62 = arith.constant 0 : index
    %c0_63 = arith.constant 0 : index
    %60 = vector.load %arg5[%c5_61, %c0_62, %c0_63] : memref<9x128x128xf32, #tpu.memory_space<vmem>>, vector<1x128x128xf32>
    %61 = vector.shape_cast %60 : vector<1x128x128xf32> to vector<128x128xf32>
    %cst_64 = arith.constant dense<0.000000e+00> : vector<8x128xf32>
    %62 = tpu.matmul %59, %61, %cst_64 {dimension_numbers = #tpu.dot_dimension_numbers<[1], [0], [0], [1], [0, 0, 1, 1], [], []>} : vector<8x128xf32>, vector<128x128xf32>, vector<8x128xf32> -> vector<8x128xf32>
    %63 = arith.addf %56, %62 : vector<8x128xf32>
    %c6 = arith.constant 6 : index
    %c0_65 = arith.constant 0 : index
    %c0_66 = arith.constant 0 : index
    %64 = vector.load %arg4[%c6, %c0_65, %c0_66] : memref<9x8x128xf32, #tpu.memory_space<vmem>>, vector<1x8x128xf32>
    %65 = vector.shape_cast %64 : vector<1x8x128xf32> to vector<8x128xf32>
    %cst_67 = arith.constant dense<0.000000e+00> : vector<8x128xf32>
    %66 = tpu.matmul %65, %22, %cst_67 {dimension_numbers = #tpu.dot_dimension_numbers<[1], [0], [0], [1], [0, 0, 1, 1], [], []>} : vector<8x128xf32>, vector<128x128xf32>, vector<8x128xf32> -> vector<8x128xf32>
    %c6_68 = arith.constant 6 : index
    %c0_69 = arith.constant 0 : index
    %c0_70 = arith.constant 0 : index
    %67 = vector.load %arg5[%c6_68, %c0_69, %c0_70] : memref<9x128x128xf32, #tpu.memory_space<vmem>>, vector<1x128x128xf32>
    %68 = vector.shape_cast %67 : vector<1x128x128xf32> to vector<128x128xf32>
    %cst_71 = arith.constant dense<0.000000e+00> : vector<8x128xf32>
    %69 = tpu.matmul %66, %68, %cst_71 {dimension_numbers = #tpu.dot_dimension_numbers<[1], [0], [0], [1], [0, 0, 1, 1], [], []>} : vector<8x128xf32>, vector<128x128xf32>, vector<8x128xf32> -> vector<8x128xf32>
    %70 = arith.addf %63, %69 : vector<8x128xf32>
    %c7 = arith.constant 7 : index
    %c0_72 = arith.constant 0 : index
    %c0_73 = arith.constant 0 : index
    %71 = vector.load %arg4[%c7, %c0_72, %c0_73] : memref<9x8x128xf32, #tpu.memory_space<vmem>>, vector<1x8x128xf32>
    %72 = vector.shape_cast %71 : vector<1x8x128xf32> to vector<8x128xf32>
    %cst_74 = arith.constant dense<0.000000e+00> : vector<8x128xf32>
    %73 = tpu.matmul %72, %22, %cst_74 {dimension_numbers = #tpu.dot_dimension_numbers<[1], [0], [0], [1], [0, 0, 1, 1], [], []>} : vector<8x128xf32>, vector<128x128xf32>, vector<8x128xf32> -> vector<8x128xf32>
    %c7_75 = arith.constant 7 : index
    %c0_76 = arith.constant 0 : index
    %c0_77 = arith.constant 0 : index
    %74 = vector.load %arg5[%c7_75, %c0_76, %c0_77] : memref<9x128x128xf32, #tpu.memory_space<vmem>>, vector<1x128x128xf32>
    %75 = vector.shape_cast %74 : vector<1x128x128xf32> to vector<128x128xf32>
    %cst_78 = arith.constant dense<0.000000e+00> : vector<8x128xf32>
    %76 = tpu.matmul %73, %75, %cst_78 {dimension_numbers = #tpu.dot_dimension_numbers<[1], [0], [0], [1], [0, 0, 1, 1], [], []>} : vector<8x128xf32>, vector<128x128xf32>, vector<8x128xf32> -> vector<8x128xf32>
    %77 = arith.addf %70, %76 : vector<8x128xf32>
    %c8 = arith.constant 8 : index
    %c0_79 = arith.constant 0 : index
    %c0_80 = arith.constant 0 : index
    %78 = vector.load %arg4[%c8, %c0_79, %c0_80] : memref<9x8x128xf32, #tpu.memory_space<vmem>>, vector<1x8x128xf32>
    %79 = vector.shape_cast %78 : vector<1x8x128xf32> to vector<8x128xf32>
    %cst_81 = arith.constant dense<0.000000e+00> : vector<8x128xf32>
    %80 = tpu.matmul %79, %22, %cst_81 {dimension_numbers = #tpu.dot_dimension_numbers<[1], [0], [0], [1], [0, 0, 1, 1], [], []>} : vector<8x128xf32>, vector<128x128xf32>, vector<8x128xf32> -> vector<8x128xf32>
    %c8_82 = arith.constant 8 : index
    %c0_83 = arith.constant 0 : index
    %c0_84 = arith.constant 0 : index
    %81 = vector.load %arg5[%c8_82, %c0_83, %c0_84] : memref<9x128x128xf32, #tpu.memory_space<vmem>>, vector<1x128x128xf32>
    %82 = vector.shape_cast %81 : vector<1x128x128xf32> to vector<128x128xf32>
    %cst_85 = arith.constant dense<0.000000e+00> : vector<8x128xf32>
    %83 = tpu.matmul %80, %82, %cst_85 {dimension_numbers = #tpu.dot_dimension_numbers<[1], [0], [0], [1], [0, 0, 1, 1], [], []>} : vector<8x128xf32>, vector<128x128xf32>, vector<8x128xf32> -> vector<8x128xf32>
    %84 = arith.addf %77, %83 : vector<8x128xf32>
    %c0_86 = arith.constant 0 : index
    %c0_87 = arith.constant 0 : index
    %85 = vector.load %arg6[%c0_86, %c0_87] : memref<1x128xf32, #tpu.memory_space<vmem>>, vector<1x128xf32>
    %86 = vector.broadcast %85 : vector<1x128xf32> to vector<8x128xf32>
    %87 = arith.addf %84, %86 : vector<8x128xf32>
    %cst_88 = arith.constant 0.000000e+00 : f32
    %88 = vector.broadcast %cst_88 : f32 to vector<8x128xf32>
    %89 = arith.maximumf %87, %88 : vector<8x128xf32>
    %c0_89 = arith.constant 0 : index
    %c0_90 = arith.constant 0 : index
    %c0_91 = arith.constant 0 : index
    %90 = vector.load %arg7[%c0_89, %c0_90, %c0_91] : memref<4x2x8xf32, #tpu.memory_space<vmem>>, vector<1x2x8xf32>
    %91 = vector.shape_cast %90 : vector<1x2x8xf32> to vector<2x8xf32>
    %cst_92 = arith.constant dense<0.000000e+00> : vector<2x128xf32>
    %92 = tpu.matmul %91, %89, %cst_92 {dimension_numbers = #tpu.dot_dimension_numbers<[1], [0], [0], [1], [0, 0, 1, 1], [], []>} : vector<2x8xf32>, vector<8x128xf32>, vector<2x128xf32> -> vector<2x128xf32>
    %c1_93 = arith.constant 1 : index
    %c0_94 = arith.constant 0 : index
    %c0_95 = arith.constant 0 : index
    %93 = vector.load %arg7[%c1_93, %c0_94, %c0_95] : memref<4x2x8xf32, #tpu.memory_space<vmem>>, vector<1x2x8xf32>
    %94 = vector.shape_cast %93 : vector<1x2x8xf32> to vector<2x8xf32>
    %cst_96 = arith.constant dense<0.000000e+00> : vector<2x128xf32>
    %95 = tpu.matmul %94, %89, %cst_96 {dimension_numbers = #tpu.dot_dimension_numbers<[1], [0], [0], [1], [0, 0, 1, 1], [], []>} : vector<2x8xf32>, vector<8x128xf32>, vector<2x128xf32> -> vector<2x128xf32>
    %96 = arith.maximumf %92, %95 : vector<2x128xf32>
    %c2_97 = arith.constant 2 : index
    %c0_98 = arith.constant 0 : index
    %c0_99 = arith.constant 0 : index
    %97 = vector.load %arg7[%c2_97, %c0_98, %c0_99] : memref<4x2x8xf32, #tpu.memory_space<vmem>>, vector<1x2x8xf32>
    %98 = vector.shape_cast %97 : vector<1x2x8xf32> to vector<2x8xf32>
    %cst_100 = arith.constant dense<0.000000e+00> : vector<2x128xf32>
    %99 = tpu.matmul %98, %89, %cst_100 {dimension_numbers = #tpu.dot_dimension_numbers<[1], [0], [0], [1], [0, 0, 1, 1], [], []>} : vector<2x8xf32>, vector<8x128xf32>, vector<2x128xf32> -> vector<2x128xf32>
    %100 = arith.maximumf %96, %99 : vector<2x128xf32>
    %c3_101 = arith.constant 3 : index
    %c0_102 = arith.constant 0 : index
    %c0_103 = arith.constant 0 : index
    %101 = vector.load %arg7[%c3_101, %c0_102, %c0_103] : memref<4x2x8xf32, #tpu.memory_space<vmem>>, vector<1x2x8xf32>
    %102 = vector.shape_cast %101 : vector<1x2x8xf32> to vector<2x8xf32>
    %cst_104 = arith.constant dense<0.000000e+00> : vector<2x128xf32>
    %103 = tpu.matmul %102, %89, %cst_104 {dimension_numbers = #tpu.dot_dimension_numbers<[1], [0], [0], [1], [0, 0, 1, 1], [], []>} : vector<2x8xf32>, vector<8x128xf32>, vector<2x128xf32> -> vector<2x128xf32>
    %104 = arith.maximumf %100, %103 : vector<2x128xf32>
    %c0_105 = arith.constant 0 : index
    %c0_106 = arith.constant 0 : index
    %105 = vector.load %arg8[%c0_105, %c0_106] : memref<128x128xf32, #tpu.memory_space<vmem>>, vector<128x128xf32>
    %cst_107 = arith.constant dense<0.000000e+00> : vector<2x128xf32>
    %106 = tpu.matmul %104, %105, %cst_107 {dimension_numbers = #tpu.dot_dimension_numbers<[1], [0], [0], [1], [0, 0, 1, 1], [], []>} : vector<2x128xf32>, vector<128x128xf32>, vector<2x128xf32> -> vector<2x128xf32>
    %c0_108 = arith.constant 0 : index
    %c0_109 = arith.constant 0 : index
    %107 = vector.load %arg9[%c0_108, %c0_109] : memref<1x128xf32, #tpu.memory_space<vmem>>, vector<1x128xf32>
    %108 = vector.broadcast %107 : vector<1x128xf32> to vector<2x128xf32>
    %109 = arith.addf %106, %108 : vector<2x128xf32>
    %cst_110 = arith.constant 0.000000e+00 : f32
    %110 = vector.broadcast %cst_110 : f32 to vector<2x128xf32>
    %111 = arith.maximumf %109, %110 : vector<2x128xf32>
    %c0_111 = arith.constant 0 : index
    %c0_112 = arith.constant 0 : index
    %112 = vector.load %arg10[%c0_111, %c0_112] : memref<128x128xf32, #tpu.memory_space<vmem>>, vector<128x128xf32>
    %cst_113 = arith.constant dense<0.000000e+00> : vector<2x128xf32>
    %113 = tpu.matmul %111, %112, %cst_113 {dimension_numbers = #tpu.dot_dimension_numbers<[1], [0], [0], [1], [0, 0, 1, 1], [], []>} : vector<2x128xf32>, vector<128x128xf32>, vector<2x128xf32> -> vector<2x128xf32>
    %c0_114 = arith.constant 0 : index
    %c0_115 = arith.constant 0 : index
    %114 = vector.load %arg11[%c0_114, %c0_115] : memref<1x128xf32, #tpu.memory_space<vmem>>, vector<1x128xf32>
    %115 = vector.broadcast %114 : vector<1x128xf32> to vector<2x128xf32>
    %116 = arith.addf %113, %115 : vector<2x128xf32>
    %c0_116 = arith.constant 0 : index
    %c0_117 = arith.constant 0 : index
    %117 = vector.load %arg12[%c0_116, %c0_117] : memref<2x128xf32, #tpu.memory_space<vmem>>, vector<2x128xf32>
    tpu.vector_store %arg12[%c0_116, %c0_117], %116 {strides = array<i32>} : memref<2x128xf32, #tpu.memory_space<vmem>>, vector<2x128xf32>,
    return
  }
}

</mosaic_0001>

<bundles_post_ra>
// kernel: cnn_forward.1
= control target key start
LH: loop header
LB: loop body
LE: loop exit
PB: predicated region body
PF: predicated region fallthrough
CT: control target
= control target key end

     0   :  { %s8904_s0 = inlined_call_operand.vmem [shape: f32[384,128], index: 0, kind: input, shape index: {}]   ;;  %s8905_s1 = inlined_call_operand.vmem [shape: f32[128,128], index: 1, kind: input, shape index: {}]   ;;  %s8906_s2 = inlined_call_operand.vmem [shape: f32[1,128], index: 2, kind: input, shape index: {}]   ;;  %s8907_s3 = inlined_call_operand.vmem [shape: f32[4,128,384], index: 3, kind: input, shape index: {}]   ;;  %s8908_s4 = inlined_call_operand.vmem [shape: f32[9,8,128], index: 4, kind: input, shape index: {}]   ;;  %s8909_s5 = inlined_call_operand.vmem [shape: f32[9,128,128], index: 5, kind: input, shape index: {}]   ;;  %s8910_s6 = inlined_call_operand.vmem [shape: f32[1,128], index: 6, kind: input, shape index: {}]   ;;  %s8911_s7 = inlined_call_operand.vmem [shape: f32[4,2,8], index: 7, kind: input, shape index: {}]   ;;  %s8912_s8 = inlined_call_operand.vmem [shape: f32[128,128], index: 8, kind: input, shape index: {}]   ;;  %s8913_s9 = inlined_call_operand.vmem [shape: f32[1,128], index: 9, kind: input, shape index: {}]   ;;  %s8914_s10 = inlined_call_operand.vmem [shape: f32[128,128], index: 10, kind: input, shape index: {}]   ;;  %s8915_s11 = inlined_call_operand.vmem [shape: f32[1,128], index: 11, kind: input, shape index: {}]   ;;  %s8916_s12 = inlined_call_operand.hbm [shape: f32[2,128], index: 12, kind: output, shape index: {}]  }
   0x1   :  { %v105_v0 = vld [vmem:[%s8905_s1 + $0x78] sm:$0xff]  ;;  %v104_v1 = vld [vmem:[%s8905_s1 + $0x70] sm:$0xff]  ;;  %v103_v2 = vld [vmem:[%s8905_s1 + $0x68] sm:$0xff] }
   0x2   :  { %4970 = vmatprep.subr.mxu0 %v105_v0  ;;  %v102_v3 = vld [vmem:[%s8905_s1 + $0x60] sm:$0xff]  ;;  %v101_v5 = vld [vmem:[%s8905_s1 + $0x58] sm:$0xff]  ;;  %v100_v6 = vld [vmem:[%s8905_s1 + $0x50] sm:$0xff] }
   0x3   :  { %4971 = vmatpush3.msra.mxu0 %v105_v0  ;;  %v42_v4 = vld [vmem:[%s8904_s0] sm:$0xff]  ;;  %v99_v7 = vld [vmem:[%s8905_s1 + $0x48] sm:$0xff]  ;;  %v97_v9 = vld [vmem:[%s8905_s1 + $0x38] sm:$0xff] }
   0x4   :  { %4972 = vmatprep.subr.mxu0 %v104_v1  ;;  %5002 = vmatprep.mubr.f32.mxu0 %v42_v4  ;;  %v98_v8 = vld [vmem:[%s8905_s1 + $0x40] sm:$0xff]  ;;  %v96_v10 = vld [vmem:[%s8905_s1 + $0x30] sm:$0xff]  ;;  %v95_v11 = vld [vmem:[%s8905_s1 + $0x28] sm:$0xff] }
   0x5   :  { %4973 = vmatpush3.msra.mxu0 %v104_v1  ;;  %v94_v12 = vld [vmem:[%s8905_s1 + $0x20] sm:$0xff] }
   0x6   :  { %4974 = vmatprep.subr.mxu0 %v103_v2 }
   0x7   :  { %4975 = vmatpush3.msra.mxu0 %v103_v2 }
   0x8   :  { %4976 = vmatprep.subr.mxu0 %v102_v3 }
   0x9   :  { %4977 = vmatpush3.msra.mxu0 %v102_v3 }
   0xa   :  { %4978 = vmatprep.subr.mxu0 %v101_v5 }
   0xb   :  { %4979 = vmatpush3.msra.mxu0 %v101_v5 }
   0xc   :  { %4980 = vmatprep.subr.mxu0 %v100_v6 }
   0xd   :  { %4981 = vmatpush3.msra.mxu0 %v100_v6 }
   0xe   :  { %4982 = vmatprep.subr.mxu0 %v99_v7 }
   0xf   :  { %4983 = vmatpush3.msra.mxu0 %v99_v7 }
  0x10   :  { %4984 = vmatprep.subr.mxu0 %v98_v8 }
  0x11   :  { %4985 = vmatpush3.msra.mxu0 %v98_v8 }
  0x12   :  { %4986 = vmatprep.subr.mxu0 %v97_v9 }
  0x13   :  { %4987 = vmatpush3.msra.mxu0 %v97_v9 }
  0x14   :  { %4988 = vmatprep.subr.mxu0 %v96_v10 }
  0x15   :  { %4989 = vmatpush3.msra.mxu0 %v96_v10 }
  0x16   :  { %4990 = vmatprep.subr.mxu0 %v95_v11 }
  0x17   :  { %17 = vsyncpa [#allocation3], 0  ;;  %4991 = vmatpush3.msra.mxu0 %v95_v11  ;;  %v93_v13 = vld [vmem:[%s8905_s1 + $0x18] sm:$0xff]  ;;  %v92_v14 = vld [vmem:[%s8905_s1 + $0x10] sm:$0xff]  ;;  %vm6044_vm0 = vmmov 0   ;;  %vm3315_vm1 = vcmask 64512  }
  0x18   :  { %4992 = vmatprep.subr.mxu0 %v94_v12  ;;  %v91_v15 = vld [vmem:[%s8905_s1 + $0x8] sm:$0xff]  ;;  %v90_v16 = vld [vmem:[%s8905_s1] sm:$0xff]  ;;  %v44_v18 = vld [vmem:[%s8904_s0 + $0x10] sm:$0xff]  ;;  %s6045_s13 = smov [#allocation2]  }
  0x19   :  { %4993 = vmatpush3.msra.mxu0 %v94_v12  ;;  %v43_v17 = vld [vmem:[%s8904_s0 + $0x8] sm:$0xff]  ;;  %v45_v19 = vld [vmem:[%s8904_s0 + $0x18] sm:$0xff]  ;;  %v46_v20 = vld [vmem:[%s8904_s0 + $0x20] sm:$0xff]  ;;  %s3811_s14 = sshll.u32 %s6045_s13, 4  ;;  %s3812_s14 = int_to_ptr.vmem [resolvable:$true] %s3811_s14 }
  0x1a   :  { %4994 = vmatprep.subr.mxu0 %v93_v13  ;;  %v47_v21 = vld [vmem:[%s8904_s0 + $0x28] sm:$0xff]  ;;  %v48_v22 = vld [vmem:[%s8904_s0 + $0x30] sm:$0xff]  ;;  %v49_v23 = vld [vmem:[%s8904_s0 + $0x38] sm:$0xff]  ;;  %p6026_p1 = scmp.lt.s32.totalorder %s3812_s14, %s3812_s14 }
  0x1b   :  { %4995 = vmatpush3.msra.mxu0 %v93_v13  ;;  %v50_v24 = vld [vmem:[%s8904_s0 + $0x40] sm:$0xff]  ;;  %v51_v25 = vld [vmem:[%s8904_s0 + $0x48] sm:$0xff]  ;;  %v52_v26 = vld [vmem:[%s8904_s0 + $0x50] sm:$0xff] }
  0x1c   :  { %4996 = vmatprep.subr.mxu0 %v92_v14  ;;  %v53_v27 = vld [vmem:[%s8904_s0 + $0x58] sm:$0xff]  ;;  %v54_v28 = vld [vmem:[%s8904_s0 + $0x60] sm:$0xff]  ;;  %v55_v29 = vld [vmem:[%s8904_s0 + $0x68] sm:$0xff] }
  0x1d   :  { %4997 = vmatpush3.msra.mxu0 %v92_v14  ;;  %v56_v30 = vld [vmem:[%s8904_s0 + $0x70] sm:$0xff]  ;;  %v57_v31 = vld [vmem:[%s8904_s0 + $0x78] sm:$0xff]  ;;  %v58_v32 = vld [vmem:[%s8904_s0 + $0x80] sm:$0xff] }
  0x1e   :  { %4998 = vmatprep.subr.mxu0 %v91_v15  ;;  %v59_v33 = vld [vmem:[%s8904_s0 + $0x88] sm:$0xff]  ;;  %v60_v34 = vld [vmem:[%s8904_s0 + $0x90] sm:$0xff]  ;;  %v61_v35 = vld [vmem:[%s8904_s0 + $0x98] sm:$0xff] }
  0x1f   :  { %4999 = vmatpush3.msra.mxu0 %v91_v15  ;;  %v62_v36 = vld [vmem:[%s8904_s0 + $0xa0] sm:$0xff]  ;;  %v63_v37 = vld [vmem:[%s8904_s0 + $0xa8] sm:$0xff]  ;;  %v64_v38 = vld [vmem:[%s8904_s0 + $0xb0] sm:$0xff] }
  0x20   :  { %5000 = vmatprep.subr.mxu0 %v90_v16  ;;  %v65_v39 = vld [vmem:[%s8904_s0 + $0xb8] sm:$0xff]  ;;  %v66_v40 = vld [vmem:[%s8904_s0 + $0xc0] sm:$0xff]  ;;  %v67_v41 = vld [vmem:[%s8904_s0 + $0xc8] sm:$0xff] }
  0x21   :  { %5001 = vmatpush3.msra.mxu0 %v90_v16  ;;  %v68_v42 = vld [vmem:[%s8904_s0 + $0xd0] sm:$0xff]  ;;  %v69_v43 = vld [vmem:[%s8904_s0 + $0xd8] sm:$0xff]  ;;  %v70_v44 = vld [vmem:[%s8904_s0 + $0xe0] sm:$0xff] }
  0x22   :  { %5003 = vmatmul.mubr.f32.vlgmr.msra.gmra.mxu0 %v43_v17  ;;  %v71_v45 = vld [vmem:[%s8904_s0 + $0xe8] sm:$0xff]  ;;  %v72_v46 = vld [vmem:[%s8904_s0 + $0xf0] sm:$0xff]  ;;  %v73_v47 = vld [vmem:[%s8904_s0 + $0xf8] sm:$0xff] }
  0x23   :  { %5005 = vmatprep.mubr.f32.mxu0 %v44_v18  ;;  %v74_v48 = vld [vmem:[%s8904_s0 + $0x100] sm:$0xff]  ;;  %v75_v49 = vld [vmem:[%s8904_s0 + $0x108] sm:$0xff]  ;;  %v76_v50 = vld [vmem:[%s8904_s0 + $0x110] sm:$0xff] }
  0x24   :  { %v77_v51 = vld [vmem:[%s8904_s0 + $0x118] sm:$0xff]  ;;  %v78_v52 = vld [vmem:[%s8904_s0 + $0x120] sm:$0xff]  ;;  %v79_v53 = vld [vmem:[%s8904_s0 + $0x128] sm:$0xff] }
  0x25   :  { %v80_v54 = vld [vmem:[%s8904_s0 + $0x130] sm:$0xff]  ;;  %v81_v55 = vld [vmem:[%s8904_s0 + $0x138] sm:$0xff]  ;;  %v82_v56 = vld [vmem:[%s8904_s0 + $0x140] sm:$0xff] }
  0x26   :  { %5006 = vmatmul.mubr.f32.gmra.mxu0 %v45_v19  ;;  %v83_v57 = vld [vmem:[%s8904_s0 + $0x148] sm:$0xff]  ;;  %v84_v58 = vld [vmem:[%s8904_s0 + $0x150] sm:$0xff]  ;;  %v85_v59 = vld [vmem:[%s8904_s0 + $0x158] sm:$0xff] }
  0x27   :  { %5008 = vmatprep.mubr.f32.mxu0 %v46_v20  ;;  %v86_v60 = vld [vmem:[%s8904_s0 + $0x160] sm:$0xff]  ;;  %v87_v61 = vld [vmem:[%s8904_s0 + $0x168] sm:$0xff]  ;;  %v88_v62 = vld [vmem:[%s8904_s0 + $0x170] sm:$0xff] }
  0x28   :  { %v89_v63 = vld [vmem:[%s8904_s0 + $0x178] sm:$0xff]  ;;  %v467_v0 = vld [vmem:[%s8907_s3 + $0x8] sm:$0xff] }
  0x29   :  { %v3821_v1 = vld [vmem:[%s8907_s3 + $0x188] sm:$0xff]  ;;  %578 = vmatprep.mubr.f32.mxu1 %v467_v0 }
  0x2a   :  { %5009 = vmatmul.mubr.f32.gmra.mxu0 %v47_v21 }
  0x2b   :  { %5011 = vmatprep.mubr.f32.mxu0 %v48_v22 }
  0x2e   :  { %5012 = vmatmul.mubr.f32.gmra.mxu0 %v49_v23 }
  0x2f   :  { %5014 = vmatprep.mubr.f32.mxu0 %v50_v24 }
  0x32   :  { %5015 = vmatmul.mubr.f32.gmra.mxu0 %v51_v25 }
  0x33   :  { %5017 = vmatprep.mubr.f32.mxu0 %v52_v26 }
  0x36   :  { %5018 = vmatmul.mubr.f32.gmra.mxu0 %v53_v27 }
  0x37   :  { %5020 = vmatprep.mubr.f32.mxu0 %v54_v28 }
  0x3a   :  { %5021 = vmatmul.mubr.f32.gmra.mxu0 %v55_v29 }
  0x3b   :  { %5023 = vmatprep.mubr.f32.mxu0 %v56_v30 }
  0x3e   :  { %5024 = vmatmul.mubr.f32.gmra.mxu0 %v57_v31 }
  0x3f   :  { %5026 = vmatprep.mubr.f32.mxu0 %v58_v32  ;;  %v6348_v32 = vld [vmem:[%s8906_s2] ss:$0 sm:$0xff] }
  0x42   :  { %5027 = vmatmul.mubr.f32.gmra.mxu0 %v59_v33 }
  0x43   :  { %5029 = vmatprep.mubr.f32.mxu0 %v60_v34 }
  0x46   :  { %5030 = vmatmul.mubr.f32.gmra.mxu0 %v61_v35 }
  0x47   :  { %5032 = vmatprep.mubr.f32.mxu0 %v62_v36 }
  0x4a   :  { %5033 = vmatmul.mubr.f32.gmra.mxu0 %v63_v37 }
  0x4b   :  { %5035 = vmatprep.mubr.f32.mxu0 %v64_v38 }
  0x4e   :  { %5036 = vmatmul.mubr.f32.gmra.mxu0 %v65_v39 }
  0x4f   :  { %5038 = vmatprep.mubr.f32.mxu0 %v66_v40 }
  0x52   :  { %5039 = vmatmul.mubr.f32.gmra.mxu0 %v67_v41 }
  0x53   :  { %5041 = vmatprep.mubr.f32.mxu0 %v68_v42 }
  0x56   :  { %5042 = vmatmul.mubr.f32.gmra.mxu0 %v69_v43 }
  0x57   :  { %5044 = vmatprep.mubr.f32.mxu0 %v70_v44 }
  0x5a   :  { %5045 = vmatmul.mubr.f32.gmra.mxu0 %v71_v45 }
  0x5b   :  { %5047 = vmatprep.mubr.f32.mxu0 %v72_v46 }
  0x5e   :  { %5048 = vmatmul.mubr.f32.gmra.mxu0 %v73_v47 }
  0x5f   :  { %5050 = vmatprep.mubr.f32.mxu0 %v74_v48 }
  0x62   :  { %5051 = vmatmul.mubr.f32.gmra.mxu0 %v75_v49 }
  0x63   :  { %5053 = vmatprep.mubr.f32.mxu0 %v76_v50 }
  0x66   :  { %5054 = vmatmul.mubr.f32.gmra.mxu0 %v77_v51 }
  0x67   :  { %5056 = vmatprep.mubr.f32.mxu0 %v78_v52 }
  0x6a   :  { %5057 = vmatmul.mubr.f32.gmra.mxu0 %v79_v53 }
  0x6b   :  { %5059 = vmatprep.mubr.f32.mxu0 %v80_v54 }
  0x6e   :  { %5060 = vmatmul.mubr.f32.gmra.mxu0 %v81_v55 }
  0x6f   :  { %5062 = vmatprep.mubr.f32.mxu0 %v82_v56 }
  0x72   :  { %5063 = vmatmul.mubr.f32.gmra.mxu0 %v83_v57 }
  0x73   :  { %5065 = vmatprep.mubr.f32.mxu0 %v84_v58 }
  0x76   :  { %5066 = vmatmul.mubr.f32.gmra.mxu0 %v85_v59 }
  0x77   :  { %5068 = vmatprep.mubr.f32.mxu0 %v86_v60 }
  0x7a   :  { %5069 = vmatmul.mubr.f32.gmra.mxu0 %v87_v61 }
  0x7b   :  { %5071 = vmatprep.mubr.f32.mxu0 %v88_v62 }
  0x7e   :  { %5072 = vmatmul.mubr.f32.gmra.mxu0 %v89_v63 }
  0x7f   :  { %917 = vmatprep.mubr.f32.mxu0 %v3821_v1 }
  0xe2   :  { %v6309_v2 = vpop.f32.mrf.mxu0 }
  0xe4   :  { %v6311_v3 = vpop.f32.mrf.mxu0 }
  0xe6   :  { %v6313_v4 = vpop.f32.mrf.mxu0 }
  0xe8   :  { %v6315_v5 = vpop.f32.mrf.mxu0 }
  0xea   :  { %v6317_v6 = vpop.f32.mrf.mxu0 }
  0xec   :  { %v6319_v7 = vpop.f32.mrf.mxu0 }
  0xee   :  { %v6321_v8 = vpop.f32.mrf.mxu0 }
  0xf0   :  { %v6323_v9 = vpop.f32.mrf.mxu0 }
  0xf2   :  { %v6325_v10 = vpop.f32.mrf.mxu0 }
  0xf3   :  { %v225_v61 = vadd.f32 %v6325_v10, %v6348_v32 }
  0xf4   :  { %v6327_v11 = vpop.f32.mrf.mxu0 }
  0xf6   :  { %v5019_v12 = vpop.f32.mrf.mxu0 }
  0xf7   :  { %v235_v51 = vadd.f32 %v5019_v12, %v6348_v32  ;;  %v220_v12 = vadd.f32 %v6348_v32, %v6327_v11  ;;  %v215_v11 = vadd.f32 %v6321_v8, %v6348_v32  ;;  %v210_v8 = vadd.f32 %v6348_v32, %v6323_v9 }
  0xf8   :  { %v229_v13 = vpop.f32.mrf.mxu0  ;;  %v205_v9 = vadd.f32 %v6317_v6, %v6348_v32  ;;  %v200_v6 = vadd.f32 %v6348_v32, %v6319_v7  ;;  %v195_v7 = vadd.f32 %v6313_v4, %v6348_v32  ;;  %v190_v4 = vadd.f32 %v6348_v32, %v6315_v5 }
  0xf9   :  { %v230_v56 = vadd.f32 %v6348_v32, %v229_v13  ;;  %v6405_v62 = vmax.f32 %v235_v51, 0.0  ;;  %v185_v5 = vadd.f32 %v6309_v2, %v6348_v32 }
  0xfa   :  { %v5022_v14 = vpop.f32.mrf.mxu0  ;;  %v6528_v2 = vmax.f32 %v190_v4, 0.0  ;;  %v3824_v4 = vld [vmem:[%s8907_s3 + $0x1a0] sm:$0xff] }
  0xfb   :  { %v245_v41 = vadd.f32 %v5022_v14, %v6348_v32  ;;  %v6418_v10 = vmax.f32 %v230_v56, 0.0  ;;  %v180_v56 = vadd.f32 %v6348_v32, %v6311_v3 }
  0xfc   :  { %v239_v15 = vpop.f32.mrf.mxu0 }
  0xfd   :  { %v240_v46 = vadd.f32 %v6348_v32, %v239_v15  ;;  %v6380_v52 = vmax.f32 %v245_v41, 0.0  ;;  %v6502_v41 = vmax.f32 %v200_v6, 0.0 }
  0xfe   :  { %v5025_v16 = vpop.f32.mrf.mxu0 }
  0xff   :  { %v255_v33 = vadd.f32 %v5025_v16, %v6348_v32  ;;  %v6392_v57 = vmax.f32 %v240_v46, 0.0  ;;  %v6432_v16 = vmax.f32 %v225_v61, 0.0 }
 0x100   :  { %v249_v17 = vpop.f32.mrf.mxu0 }
 0x101   :  { %v250_v36 = vadd.f32 %v6348_v32, %v249_v17  ;;  %v6358_v42 = vmax.f32 %v255_v33, 0.0 }
 0x102   :  { %v6329_v18 = vpop.f32.mrf.mxu0 }
 0x103   :  { %v6368_v47 = vmax.f32 %v250_v36, 0.0 }
 0x104   :  { %v6331_v19 = vpop.f32.mrf.mxu0 }
 0x106   :  { %v6333_v20 = vpop.f32.mrf.mxu0 }
 0x108   :  { %v6335_v21 = vpop.f32.mrf.mxu0 }
 0x10a   :  { %v6337_v22 = vpop.f32.mrf.mxu0 }
 0x10c   :  { %v6339_v23 = vpop.f32.mrf.mxu0 }
 0x10e   :  { %v6341_v24 = vpop.f32.mrf.mxu0 }
 0x10f   :  { %v295_v14 = vadd.f32 %v6341_v24, %v6348_v32 }
 0x110   :  { %v6343_v25 = vpop.f32.mrf.mxu0 }
 0x111   :  { %v290_v24 = vadd.f32 %v6348_v32, %v6343_v25  ;;  %v285_v25 = vadd.f32 %v6337_v22, %v6348_v32  ;;  %v280_v22 = vadd.f32 %v6348_v32, %v6339_v23  ;;  %v275_v23 = vadd.f32 %v6333_v20, %v6348_v32 }
 0x112   :  { %v5040_v26 = vpop.f32.mrf.mxu0  ;;  %v270_v20 = vadd.f32 %v6348_v32, %v6335_v21  ;;  %v265_v21 = vadd.f32 %v6329_v18, %v6348_v32 }
 0x113   :  { %v305_v59 = vadd.f32 %v5040_v26, %v6348_v32  ;;  %v6468_v33 = vmax.f32 %v290_v24, 0.0  ;;  %v6482_v36 = vmax.f32 %v285_v25, 0.0  ;;  %v6510_v46 = vmax.f32 %v275_v23, 0.0  ;;  %v466_v24 = vld [vmem:[%s8907_s3] sm:$0xff] }
 0x114   :  { %v299_v27 = vpop.f32.mrf.mxu0  ;;  %v6522_v18 = vmax.f32 %v270_v20, 0.0  ;;  %v6532_v61 = vmax.f32 %v265_v21, 0.0  ;;  %v469_v21 = vld [vmem:[%s8907_s3 + $0x18] sm:$0xff] }
 0x115   :  { %v300_v0 = vadd.f32 %v6348_v32, %v299_v27  ;;  %v6426_v15 = vmax.f32 %v305_v59, 0.0  ;;  %v6446_v27 = vmax.f32 %v220_v12, 0.0 }
 0x116   :  { %v5043_v28 = vpop.f32.mrf.mxu0 }
 0x117   :  { %v315_v49 = vadd.f32 %v5043_v28, %v6348_v32  ;;  %v6440_v26 = vmax.f32 %v300_v0, 0.0 }
 0x118   :  { %v309_v29 = vpop.f32.mrf.mxu0 }
 0x119   :  { %v310_v54 = vadd.f32 %v6348_v32, %v309_v29  ;;  %v6399_v60 = vmax.f32 %v315_v49, 0.0  ;;  %v6454_v29 = vmax.f32 %v295_v14, 0.0  ;;  %v6516_v49 = vmax.f32 %v195_v7, 0.0  ;;  %v470_v7 = vld [vmem:[%s8907_s3 + $0x20] sm:$0xff] }
 0x11a   :  { %v5046_v30 = vpop.f32.mrf.mxu0  ;;  %v6545_v14 = vmax.f32 %v180_v56, 0.0 }
 0x11b   :  { %v325_v38 = vadd.f32 %v5046_v30, %v6348_v32  ;;  %v6412_v1 = vmax.f32 %v310_v54, 0.0  ;;  %v6460_v30 = vmax.f32 %v215_v11, 0.0  ;;  %v260_v54 = vadd.f32 %v6348_v32, %v6331_v19 }
 0x11c   :  { %v319_v31 = vpop.f32.mrf.mxu0  ;;  %v6536_v19 = vmax.f32 %v185_v5, 0.0 }
 0x11d   :  { %v320_v44 = vadd.f32 %v6348_v32, %v319_v31  ;;  %v6375_v50 = vmax.f32 %v325_v38, 0.0  ;;  %v6540_v3 = vmax.f32 %v260_v54, 0.0 }
 0x11e   :  { %v5049_v34 = vpop.f32.mrf.mxu0 }
 0x11f   :  { %v335_v35 = vadd.f32 %v5049_v34, %v6348_v32  ;;  %v6387_v55 = vmax.f32 %v320_v44, 0.0  ;;  %v6474_v34 = vmax.f32 %v210_v8, 0.0 }
 0x120   :  { %v329_v37 = vpop.f32.mrf.mxu0 }
 0x121   :  { %v6354_v39 = vmax.f32 %v335_v35, 0.0  ;;  %v330_v40 = vadd.f32 %v6348_v32, %v329_v37  ;;  %v6488_v37 = vmax.f32 %v205_v9, 0.0 }
 0x122   :  { %v6360_v43 = vpop.f32.mrf.mxu0 }
 0x123   :  { %v6363_v45 = vmax.f32 %v330_v40, 0.0  ;;  %4174 = vmatprep.subr.mxu1 %v6354_v39  ;;  %4286 = vmatprep.subr.mxu0 %v6354_v39  ;;  %v6496_v40 = vmax.f32 %v280_v22, 0.0  ;;  %v3820_v22 = vld [vmem:[%s8907_s3 + $0x180] sm:$0xff] }
 0x124   :  { %v6370_v48 = vpop.f32.mrf.mxu0  ;;  %4175 = vmatpush3.msra.mxu1 %v6358_v42  ;;  %4287 = vmatpush3.msra.mxu0 %v6358_v42 }
 0x125   :  { %4176 = vmatprep.subr.mxu1 %v6363_v45  ;;  %4288 = vmatprep.subr.mxu0 %v6363_v45 }
 0x126   :  { %v6382_v53 = vpop.f32.mrf.mxu0  ;;  %4177 = vmatpush3.msra.mxu1 %v6368_v47  ;;  %4289 = vmatpush3.msra.mxu0 %v6368_v47 }
 0x127   :  { %4178 = vmatprep.subr.mxu1 %v6375_v50  ;;  %4290 = vmatprep.subr.mxu0 %v6375_v50 }
 0x128   :  { %v6394_v58 = vpop.f32.mrf.mxu0  ;;  %4179 = vmatpush3.msra.mxu1 %v6380_v52  ;;  %4291 = vmatpush3.msra.mxu0 %v6380_v52 }
 0x129   :  { %4180 = vmatprep.subr.mxu1 %v6387_v55  ;;  %4292 = vmatprep.subr.mxu0 %v6387_v55 }
 0x12a   :  { %v6407_v63 = vpop.f32.mrf.mxu0  ;;  %4181 = vmatpush3.msra.mxu1 %v6392_v57  ;;  %4293 = vmatpush3.msra.mxu0 %v6392_v57 }
 0x12b   :  { %4182 = vmatprep.subr.mxu1 %v6399_v60  ;;  %4294 = vmatprep.subr.mxu0 %v6399_v60 }
 0x12c   :  { %v6420_v13 = vpop.f32.mrf.mxu0  ;;  %4183 = vmatpush3.msra.mxu1 %v6405_v62  ;;  %4295 = vmatpush3.msra.mxu0 %v6405_v62 }
 0x12d   :  { %4184 = vmatprep.subr.mxu1 %v6412_v1  ;;  %4296 = vmatprep.subr.mxu0 %v6412_v1 }
 0x12e   :  { %v6434_v17 = vpop.f32.mrf.mxu0  ;;  %4185 = vmatpush3.msra.mxu1 %v6418_v10  ;;  %4297 = vmatpush3.msra.mxu0 %v6418_v10 }
 0x12f   :  { %4186 = vmatprep.subr.mxu1 %v6426_v15  ;;  %4298 = vmatprep.subr.mxu0 %v6426_v15 }
 0x130   :  { %v6448_v28 = vpop.f32.mrf.mxu0  ;;  %4187 = vmatpush3.msra.mxu1 %v6432_v16  ;;  %4299 = vmatpush3.msra.mxu0 %v6432_v16 }
 0x131   :  { %4188 = vmatprep.subr.mxu1 %v6440_v26  ;;  %4300 = vmatprep.subr.mxu0 %v6440_v26 }
 0x132   :  { %v6462_v31 = vpop.f32.mrf.mxu0  ;;  %4189 = vmatpush3.msra.mxu1 %v6446_v27  ;;  %4301 = vmatpush3.msra.mxu0 %v6446_v27 }
 0x133   :  { %4190 = vmatprep.subr.mxu1 %v6454_v29  ;;  %4302 = vmatprep.subr.mxu0 %v6454_v29 }
 0x134   :  { %v6476_v35 = vpop.f32.mrf.mxu0  ;;  %4191 = vmatpush3.msra.mxu1 %v6460_v30  ;;  %4303 = vmatpush3.msra.mxu0 %v6460_v30 }
 0x135   :  { %4192 = vmatprep.subr.mxu1 %v6468_v33  ;;  %4304 = vmatprep.subr.mxu0 %v6468_v33 }
 0x136   :  { %v6490_v38 = vpop.f32.mrf.mxu0  ;;  %4193 = vmatpush3.msra.mxu1 %v6474_v34  ;;  %4305 = vmatpush3.msra.mxu0 %v6474_v34 }
 0x137   :  { %4194 = vmatprep.subr.mxu1 %v6482_v36  ;;  %4306 = vmatprep.subr.mxu0 %v6482_v36  ;;  %v395_v5 = vadd.f32 %v6490_v38, %v6348_v32  ;;  %v473_v38 = vld [vmem:[%s8907_s3 + $0x38] sm:$0xff] }
 0x138   :  { %v6504_v44 = vpop.f32.mrf.mxu0  ;;  %4195 = vmatpush3.msra.mxu1 %v6488_v37  ;;  %4307 = vmatpush3.msra.mxu0 %v6488_v37 }
 0x139   :  { %4196 = vmatprep.subr.mxu1 %v6496_v40  ;;  %4308 = vmatprep.subr.mxu0 %v6496_v40  ;;  %v390_v56 = vadd.f32 %v6348_v32, %v6504_v44  ;;  %v472_v44 = vld [vmem:[%s8907_s3 + $0x30] sm:$0xff] }
 0x13a   :  { %v5070_v51 = vpop.f32.mrf.mxu0  ;;  %4197 = vmatpush3.msra.mxu1 %v6502_v41  ;;  %4309 = vmatpush3.msra.mxu0 %v6502_v41 }
 0x13b   :  { %4198 = vmatprep.subr.mxu1 %v6510_v46  ;;  %4310 = vmatprep.subr.mxu0 %v6510_v46  ;;  %v405_v8 = vadd.f32 %v5070_v51, %v6348_v32  ;;  %v3823_v51 = vld [vmem:[%s8907_s3 + $0x198] sm:$0xff] }
 0x13c   :  { %v399_v59 = vpop.f32.mrf.mxu0  ;;  %4199 = vmatpush3.msra.mxu1 %v6516_v49  ;;  %4311 = vmatpush3.msra.mxu0 %v6516_v49 }
 0x13d   :  { %4200 = vmatprep.subr.mxu1 %v6522_v18  ;;  %4312 = vmatprep.subr.mxu0 %v6522_v18  ;;  %v400_v23 = vadd.f32 %v6348_v32, %v399_v59  ;;  %v6571_v20 = vmax.f32 %v405_v8, 0.0  ;;  %v6599_v59 = vmax.f32 %v395_v5, 0.0  ;;  %v380_v8 = vadd.f32 %v6348_v32, %v6476_v35  ;;  %v475_v35 = vld [vmem:[%s8907_s3 + $0x48] sm:$0xff] }
 0x13e   :  { %v5073_v0 = vpop.f32.mrf.mxu0  ;;  %4201 = vmatpush3.msra.mxu1 %v6528_v2  ;;  %4313 = vmatpush3.msra.mxu0 %v6528_v2  ;;  %v3833_v5 = vld [vmem:[%s8907_s3 + $0x1e8] sm:$0xff] }
 0x13f   :  { %v415_v12 = vadd.f32 %v5073_v0, %v6348_v32  ;;  %4202 = vmatprep.subr.mxu1 %v6532_v61  ;;  %4314 = vmatprep.subr.mxu0 %v6532_v61  ;;  %v6589_v54 = vmax.f32 %v400_v23, 0.0  ;;  %v3827_v0 = vld [vmem:[%s8907_s3 + $0x1b8] sm:$0xff]  ;;  %v375_v23 = vadd.f32 %v6434_v17, %v6348_v32  ;;  %v479_v17 = vld [vmem:[%s8907_s3 + $0x68] sm:$0xff] }
 0x140   :  { %v409_v11 = vpop.f32.mrf.mxu0  ;;  %4203 = vmatpush3.msra.mxu1 %v6536_v19  ;;  %4315 = vmatpush3.msra.mxu0 %v6536_v19 }
 0x141   :  { %v6553_v25 = vmax.f32 %v415_v12, 0.0  ;;  %v410_v9 = vadd.f32 %v6348_v32, %v409_v11  ;;  %4204 = vmatprep.subr.mxu1 %v6540_v3  ;;  %4316 = vmatprep.subr.mxu0 %v6540_v3  ;;  %v385_v12 = vadd.f32 %v6462_v31, %v6348_v32  ;;  %v3826_v11 = vld [vmem:[%s8907_s3 + $0x1b0] sm:$0xff] }
 0x142   :  { %4205 = vmatpush3.msra.mxu1 %v6545_v14  ;;  %4317 = vmatpush3.msra.mxu0 %v6545_v14  ;;  %v476_v31 = vld [vmem:[%s8907_s3 + $0x50] sm:$0xff] }
 0x143   :  { %v6563_v6 = vmax.f32 %v410_v9, 0.0  ;;  %579 = vmatmul.mubr.f32.vlgmr.msra.gmra.mxu1 %v466_v24  ;;  %5074 = vmatprep.subr.mxu1 %v6553_v25  ;;  %v6617_v24 = vmax.f32 %v390_v56, 0.0  ;;  %v6627_v9 = vmax.f32 %v385_v12, 0.0  ;;  %v478_v56 = vld [vmem:[%s8907_s3 + $0x60] sm:$0xff]  ;;  %v360_v12 = vadd.f32 %v6348_v32, %v6420_v13 }
 0x144   :  { %918 = vmatmul.mubr.f32.vlgmr.msra.gmra.mxu0 %v3820_v22  ;;  %5186 = vmatprep.subr.mxu0 %v6553_v25  ;;  %v3830_v22 = vld [vmem:[%s8907_s3 + $0x1d0] sm:$0xff]  ;;  %v355_v13 = vadd.f32 %v6382_v53, %v6348_v32  ;;  %v3839_v53 = vld [vmem:[%s8907_s3 + $0x218] sm:$0xff] }
 0x145   :  { %5075 = vmatpush3.msra.mxu1 %v6553_v25  ;;  %5187 = vmatpush3.msra.mxu0 %v6553_v25 }
 0x146   :  { %5076 = vmatprep.subr.mxu1 %v6563_v6  ;;  %5188 = vmatprep.subr.mxu0 %v6563_v6 }
 0x147   :  { %583 = vmatprep.mubr.f32.mxu1 %v470_v7  ;;  %5077 = vmatpush3.msra.mxu1 %v6563_v6  ;;  %v3829_v7 = vld [vmem:[%s8907_s3 + $0x1c8] sm:$0xff] }
 0x148   :  { %922 = vmatprep.mubr.f32.mxu0 %v3824_v4  ;;  %5189 = vmatpush3.msra.mxu0 %v6563_v6  ;;  %v6645_v4 = vmax.f32 %v380_v8, 0.0 }
 0x149   :  { %584 = vmatmul.mubr.f32.gmra.mxu1 %v469_v21  ;;  %5078 = vmatprep.subr.mxu1 %v6571_v20  ;;  %v6653_v21 = vmax.f32 %v375_v23, 0.0  ;;  %v350_v23 = vadd.f32 %v6348_v32, %v6394_v58  ;;  %v345_v58 = vadd.f32 %v6360_v43, %v6348_v32  ;;  %v3842_v43 = vld [vmem:[%s8907_s3 + $0x230] sm:$0xff] }
 0x14a   :  { %923 = vmatmul.mubr.f32.gmra.mxu0 %v3823_v51  ;;  %5190 = vmatprep.subr.mxu0 %v6571_v20  ;;  %v370_v51 = vadd.f32 %v6348_v32, %v6448_v28  ;;  %v365_v28 = vadd.f32 %v6407_v63, %v6348_v32  ;;  %v3836_v63 = vld [vmem:[%s8907_s3 + $0x200] sm:$0xff] }
 0x14b   :  { %5079 = vmatpush3.msra.mxu1 %v6571_v20  ;;  %5191 = vmatpush3.msra.mxu0 %v6571_v20 }
 0x14c   :  { %5080 = vmatprep.subr.mxu1 %v6589_v54  ;;  %5192 = vmatprep.subr.mxu0 %v6589_v54  ;;  %v6693_v8 = vmax.f32 %v365_v28, 0.0  ;;  %v487_v28 = vld [vmem:[%s8907_s3 + $0xa8] sm:$0xff] }
 0x14d   :  { %588 = vmatprep.mubr.f32.mxu1 %v473_v38  ;;  %5081 = vmatpush3.msra.mxu1 %v6589_v54  ;;  %v3832_v38 = vld [vmem:[%s8907_s3 + $0x1e0] sm:$0xff] }
 0x14e   :  { %927 = vmatprep.mubr.f32.mxu0 %v3827_v0  ;;  %5193 = vmatpush3.msra.mxu0 %v6589_v54  ;;  %v6675_v0 = vmax.f32 %v370_v51, 0.0  ;;  %v6731_v51 = vmax.f32 %v350_v23, 0.0  ;;  %v3847_v23 = vld [vmem:[%s8907_s3 + $0x258] sm:$0xff] }
 0x14f   :  { %589 = vmatmul.mubr.f32.gmra.mxu1 %v472_v44  ;;  %5082 = vmatprep.subr.mxu1 %v6599_v59  ;;  %v482_v44 = vld [vmem:[%s8907_s3 + $0x80] sm:$0xff] }
 0x150   :  { %928 = vmatmul.mubr.f32.gmra.mxu0 %v3826_v11  ;;  %5194 = vmatprep.subr.mxu0 %v6599_v59  ;;  %v481_v11 = vld [vmem:[%s8907_s3 + $0x78] sm:$0xff] }
 0x151   :  { %5083 = vmatpush3.msra.mxu1 %v6599_v59  ;;  %5195 = vmatpush3.msra.mxu0 %v6599_v59 }
 0x152   :  { %5084 = vmatprep.subr.mxu1 %v6617_v24  ;;  %5196 = vmatprep.subr.mxu0 %v6617_v24 }
 0x153   :  { %593 = vmatprep.mubr.f32.mxu1 %v476_v31  ;;  %5085 = vmatpush3.msra.mxu1 %v6617_v24  ;;  %v3835_v31 = vld [vmem:[%s8907_s3 + $0x1f8] sm:$0xff] }
 0x154   :  { %932 = vmatprep.mubr.f32.mxu0 %v3830_v22  ;;  %5197 = vmatpush3.msra.mxu0 %v6617_v24  ;;  %v6703_v22 = vmax.f32 %v360_v12, 0.0  ;;  %v3845_v12 = vld [vmem:[%s8907_s3 + $0x248] sm:$0xff] }
 0x155   :  { %594 = vmatmul.mubr.f32.gmra.mxu1 %v475_v35  ;;  %5086 = vmatprep.subr.mxu1 %v6627_v9  ;;  %v485_v35 = vld [vmem:[%s8907_s3 + $0x98] sm:$0xff] }
 0x156   :  { %933 = vmatmul.mubr.f32.gmra.mxu0 %v3829_v7  ;;  %5198 = vmatprep.subr.mxu0 %v6627_v9  ;;  %v484_v7 = vld [vmem:[%s8907_s3 + $0x90] sm:$0xff] }
 0x157   :  { %5087 = vmatpush3.msra.mxu1 %v6627_v9  ;;  %5199 = vmatpush3.msra.mxu0 %v6627_v9 }
 0x158   :  { %5088 = vmatprep.subr.mxu1 %v6645_v4  ;;  %5200 = vmatprep.subr.mxu0 %v6645_v4 }
 0x159   :  { %598 = vmatprep.mubr.f32.mxu1 %v479_v17  ;;  %5089 = vmatpush3.msra.mxu1 %v6645_v4  ;;  %v6721_v17 = vmax.f32 %v355_v13, 0.0  ;;  %v494_v13 = vld [vmem:[%s8907_s3 + $0xe0] sm:$0xff] }
 0x15a   :  { %937 = vmatprep.mubr.f32.mxu0 %v3833_v5  ;;  %5201 = vmatpush3.msra.mxu0 %v6645_v4  ;;  %v3838_v5 = vld [vmem:[%s8907_s3 + $0x210] sm:$0xff] }
 0x15b   :  { %599 = vmatmul.mubr.f32.gmra.mxu1 %v478_v56  ;;  %5090 = vmatprep.subr.mxu1 %v6653_v21  ;;  %v488_v56 = vld [vmem:[%s8907_s3 + $0xb0] sm:$0xff] }
 0x15c   :  { %938 = vmatmul.mubr.f32.gmra.mxu0 %v3832_v38  ;;  %5202 = vmatprep.subr.mxu0 %v6653_v21  ;;  %v340_v38 = vadd.f32 %v6348_v32, %v6370_v48  ;;  %v491_v48 = vld [vmem:[%s8907_s3 + $0xc8] sm:$0xff] }
 0x15d   :  { %5091 = vmatpush3.msra.mxu1 %v6653_v21  ;;  %5203 = vmatpush3.msra.mxu0 %v6653_v21 }
 0x15e   :  { %5092 = vmatprep.subr.mxu1 %v6675_v0  ;;  %5204 = vmatprep.subr.mxu0 %v6675_v0  ;;  %v6757_v32 = vmax.f32 %v340_v38, 0.0  ;;  %v3854_v38 = vld [vmem:[%s8907_s3 + $0x290] sm:$0xff] }
 0x15f   :  { %603 = vmatprep.mubr.f32.mxu1 %v482_v44  ;;  %5093 = vmatpush3.msra.mxu1 %v6675_v0  ;;  %v6749_v44 = vmax.f32 %v345_v58, 0.0  ;;  %v496_v58 = vld [vmem:[%s8907_s3 + $0xf0] sm:$0xff] }
 0x160   :  { %942 = vmatprep.mubr.f32.mxu0 %v3836_v63  ;;  %5205 = vmatpush3.msra.mxu0 %v6675_v0  ;;  %v3841_v63 = vld [vmem:[%s8907_s3 + $0x228] sm:$0xff] }
 0x161   :  { %604 = vmatmul.mubr.f32.gmra.mxu1 %v481_v11  ;;  %5094 = vmatprep.subr.mxu1 %v6693_v8  ;;  %v490_v11 = vld [vmem:[%s8907_s3 + $0xc0] sm:$0xff] }
 0x162   :  { %943 = vmatmul.mubr.f32.gmra.mxu0 %v3835_v31  ;;  %5206 = vmatprep.subr.mxu0 %v6693_v8  ;;  %v3844_v31 = vld [vmem:[%s8907_s3 + $0x240] sm:$0xff] }
 0x163   :  { %5095 = vmatpush3.msra.mxu1 %v6693_v8  ;;  %5207 = vmatpush3.msra.mxu0 %v6693_v8 }
 0x164   :  { %5096 = vmatprep.subr.mxu1 %v6703_v22  ;;  %5208 = vmatprep.subr.mxu0 %v6703_v22 }
 0x165   :  { %608 = vmatprep.mubr.f32.mxu1 %v485_v35  ;;  %5097 = vmatpush3.msra.mxu1 %v6703_v22  ;;  %v3848_v35 = vld [vmem:[%s8907_s3 + $0x260] sm:$0xff] }
 0x166   :  { %947 = vmatprep.mubr.f32.mxu0 %v3839_v53  ;;  %5209 = vmatpush3.msra.mxu0 %v6703_v22  ;;  %v493_v53 = vld [vmem:[%s8907_s3 + $0xd8] sm:$0xff] }
 0x167   :  { %609 = vmatmul.mubr.f32.gmra.mxu1 %v484_v7  ;;  %5098 = vmatprep.subr.mxu1 %v6721_v17  ;;  %v497_v7 = vld [vmem:[%s8907_s3 + $0xf8] sm:$0xff] }
 0x168   :  { %948 = vmatmul.mubr.f32.gmra.mxu0 %v3838_v5  ;;  %5210 = vmatprep.subr.mxu0 %v6721_v17  ;;  %v3851_v5 = vld [vmem:[%s8907_s3 + $0x278] sm:$0xff] }
 0x169   :  { %5099 = vmatpush3.msra.mxu1 %v6721_v17  ;;  %5211 = vmatpush3.msra.mxu0 %v6721_v17 }
 0x16a   :  { %5100 = vmatprep.subr.mxu1 %v6731_v51  ;;  %5212 = vmatprep.subr.mxu0 %v6731_v51 }
 0x16b   :  { %613 = vmatprep.mubr.f32.mxu1 %v488_v56  ;;  %5101 = vmatpush3.msra.mxu1 %v6731_v51  ;;  %v3850_v56 = vld [vmem:[%s8907_s3 + $0x270] sm:$0xff] }
 0x16c   :  { %952 = vmatprep.mubr.f32.mxu0 %v3842_v43  ;;  %5213 = vmatpush3.msra.mxu0 %v6731_v51  ;;  %v500_v43 = vld [vmem:[%s8907_s3 + $0x110] sm:$0xff] }
 0x16d   :  { %614 = vmatmul.mubr.f32.gmra.mxu1 %v487_v28  ;;  %5102 = vmatprep.subr.mxu1 %v6749_v44  ;;  %v499_v28 = vld [vmem:[%s8907_s3 + $0x108] sm:$0xff] }
 0x16e   :  { %953 = vmatmul.mubr.f32.gmra.mxu0 %v3841_v63  ;;  %5214 = vmatprep.subr.mxu0 %v6749_v44  ;;  %v3853_v63 = vld [vmem:[%s8907_s3 + $0x288] sm:$0xff] }
 0x16f   :  { %5103 = vmatpush3.msra.mxu1 %v6749_v44  ;;  %5215 = vmatpush3.msra.mxu0 %v6749_v44 }
 0x170   :  { %5104 = vmatprep.subr.mxu1 %v6757_v32  ;;  %5216 = vmatprep.subr.mxu0 %v6757_v32 }
 0x171   :  { %618 = vmatprep.mubr.f32.mxu1 %v491_v48  ;;  %5105 = vmatpush3.msra.mxu1 %v6757_v32  ;;  %v503_v48 = vld [vmem:[%s8907_s3 + $0x128] sm:$0xff] }
 0x172   :  { %957 = vmatprep.mubr.f32.mxu0 %v3845_v12  ;;  %5217 = vmatpush3.msra.mxu0 %v6757_v32  ;;  %v3857_v12 = vld [vmem:[%s8907_s3 + $0x2a8] sm:$0xff] }
 0x173   :  { %619 = vmatmul.mubr.f32.gmra.mxu1 %v490_v11  ;;  %958 = vmatmul.mubr.f32.gmra.mxu0 %v3844_v31  ;;  %v502_v11 = vld [vmem:[%s8907_s3 + $0x120] sm:$0xff] }
 0x174   :  { %5130 = vmatprep.subr.mxu1 %v6553_v25  ;;  %4510 = vmatprep.subr.mxu0 %v6354_v39  ;;  %v3856_v31 = vld [vmem:[%s8907_s3 + $0x2a0] sm:$0xff] }
 0x175   :  { %623 = vmatprep.mubr.f32.mxu1 %v494_v13  ;;  %962 = vmatprep.mubr.f32.mxu0 %v3848_v35  ;;  %v506_v13 = vld [vmem:[%s8907_s3 + $0x140] sm:$0xff] }
 0x176   :  { %v3860_v35 = vld [vmem:[%s8907_s3 + $0x2c0] sm:$0xff] }
 0x177   :  { %624 = vmatmul.mubr.f32.gmra.mxu1 %v493_v53  ;;  %963 = vmatmul.mubr.f32.gmra.mxu0 %v3847_v23  ;;  %v505_v53 = vld [vmem:[%s8907_s3 + $0x138] sm:$0xff] }
 0x178   :  { %628 = vmatprep.mubr.f32.mxu1 %v497_v7  ;;  %967 = vmatprep.mubr.f32.mxu0 %v3851_v5  ;;  %v3859_v23 = vld [vmem:[%s8907_s3 + $0x2b8] sm:$0xff] }
 0x179   :  { %v509_v7 = vld [vmem:[%s8907_s3 + $0x158] sm:$0xff] }
 0x17a   :  { %v3863_v5 = vld [vmem:[%s8907_s3 + $0x2d8] sm:$0xff] }
 0x17b   :  { %629 = vmatmul.mubr.f32.gmra.mxu1 %v496_v58  ;;  %968 = vmatmul.mubr.f32.gmra.mxu0 %v3850_v56  ;;  %v508_v58 = vld [vmem:[%s8907_s3 + $0x150] sm:$0xff] }
 0x17c   :  { %633 = vmatprep.mubr.f32.mxu1 %v500_v43  ;;  %972 = vmatprep.mubr.f32.mxu0 %v3854_v38  ;;  %v3862_v56 = vld [vmem:[%s8907_s3 + $0x2d0] sm:$0xff] }
 0x17d   :  { %v512_v43 = vld [vmem:[%s8907_s3 + $0x170] sm:$0xff] }
 0x17e   :  { %v3866_v38 = vld [vmem:[%s8907_s3 + $0x2f0] sm:$0xff] }
 0x17f   :  { %634 = vmatmul.mubr.f32.gmra.mxu1 %v499_v28  ;;  %973 = vmatmul.mubr.f32.gmra.mxu0 %v3853_v63  ;;  %v511_v28 = vld [vmem:[%s8907_s3 + $0x168] sm:$0xff] }
 0x180   :  { %638 = vmatprep.mubr.f32.mxu1 %v503_v48  ;;  %977 = vmatprep.mubr.f32.mxu0 %v3857_v12  ;;  %v3865_v63 = vld [vmem:[%s8907_s3 + $0x2e8] sm:$0xff]  ;;  %v468_v48 = vld [vmem:[%s8907_s3 + $0x10] sm:$0xff] }
 0x181   :  { %v3870_v12 = vld [vmem:[%s8907_s3 + $0x310] sm:$0xff] }
 0x183   :  { %639 = vmatmul.mubr.f32.gmra.mxu1 %v502_v11  ;;  %978 = vmatmul.mubr.f32.gmra.mxu0 %v3856_v31  ;;  %v471_v11 = vld [vmem:[%s8907_s3 + $0x28] sm:$0xff] }
 0x184   :  { %643 = vmatprep.mubr.f32.mxu1 %v506_v13  ;;  %982 = vmatprep.mubr.f32.mxu0 %v3860_v35  ;;  %v3873_v31 = vld [vmem:[%s8907_s3 + $0x328] sm:$0xff]  ;;  %v474_v13 = vld [vmem:[%s8907_s3 + $0x40] sm:$0xff]  ;;  %v477_v35 = vld [vmem:[%s8907_s3 + $0x58] sm:$0xff] }
 0x187   :  { %644 = vmatmul.mubr.f32.gmra.mxu1 %v505_v53  ;;  %983 = vmatmul.mubr.f32.gmra.mxu0 %v3859_v23  ;;  %v480_v53 = vld [vmem:[%s8907_s3 + $0x70] sm:$0xff]  ;;  %v483_v23 = vld [vmem:[%s8907_s3 + $0x88] sm:$0xff] }
 0x188   :  { %648 = vmatprep.mubr.f32.mxu1 %v509_v7  ;;  %987 = vmatprep.mubr.f32.mxu0 %v3863_v5  ;;  %v486_v7 = vld [vmem:[%s8907_s3 + $0xa0] sm:$0xff]  ;;  %v489_v5 = vld [vmem:[%s8907_s3 + $0xb8] sm:$0xff] }
 0x18b   :  { %649 = vmatmul.mubr.f32.gmra.mxu1 %v508_v58  ;;  %988 = vmatmul.mubr.f32.gmra.mxu0 %v3862_v56  ;;  %v492_v58 = vld [vmem:[%s8907_s3 + $0xd0] sm:$0xff]  ;;  %v495_v56 = vld [vmem:[%s8907_s3 + $0xe8] sm:$0xff] }
 0x18c   :  { %653 = vmatprep.mubr.f32.mxu1 %v512_v43  ;;  %992 = vmatprep.mubr.f32.mxu0 %v3866_v38  ;;  %v498_v43 = vld [vmem:[%s8907_s3 + $0x100] sm:$0xff]  ;;  %v501_v38 = vld [vmem:[%s8907_s3 + $0x118] sm:$0xff] }
 0x18f   :  { %654 = vmatmul.mubr.f32.gmra.mxu1 %v511_v28  ;;  %993 = vmatmul.mubr.f32.gmra.mxu0 %v3865_v63  ;;  %v504_v28 = vld [vmem:[%s8907_s3 + $0x130] sm:$0xff]  ;;  %v507_v63 = vld [vmem:[%s8907_s3 + $0x148] sm:$0xff] }
 0x190   :  { %5106 = vmatprep.mubr.f32.mxu1 %v468_v48  ;;  %5218 = vmatprep.mubr.f32.mxu0 %v3870_v12  ;;  %v510_v48 = vld [vmem:[%s8907_s3 + $0x160] sm:$0xff]  ;;  %v513_v12 = vld [vmem:[%s8907_s3 + $0x178] sm:$0xff] }
 0x193   :  { %5107 = vmatmul.mubr.f32.vlgmr.msra.gmra.mxu1 %v471_v11  ;;  %5219 = vmatmul.mubr.f32.vlgmr.msra.gmra.mxu0 %v3873_v31  ;;  %v3822_v11 = vld [vmem:[%s8907_s3 + $0x190] sm:$0xff]  ;;  %v3825_v31 = vld [vmem:[%s8907_s3 + $0x1a8] sm:$0xff] }
 0x194   :  { %5131 = vmatpush3.msra.mxu1 %v6553_v25  ;;  %4511 = vmatpush3.msra.mxu0 %v6358_v42 }
 0x195   :  { %5132 = vmatprep.subr.mxu1 %v6563_v6  ;;  %4512 = vmatprep.subr.mxu0 %v6363_v45 }
 0x196   :  { %5133 = vmatpush3.msra.mxu1 %v6563_v6  ;;  %4513 = vmatpush3.msra.mxu0 %v6368_v47 }
 0x197   :  { %5109 = vmatprep.mubr.f32.mxu1 %v474_v13  ;;  %5134 = vmatprep.subr.mxu1 %v6571_v20  ;;  %v3876_v13 = vld [vmem:[%s8907_s3 + $0x340] sm:$0xff] }
 0x198   :  { %4514 = vmatprep.subr.mxu0 %v6375_v50  ;;  %5110 = vmatmul.mubr.f32.gmra.mxu1 %v477_v35  ;;  %v3828_v35 = vld [vmem:[%s8907_s3 + $0x1c0] sm:$0xff] }
 0x199   :  { %5135 = vmatpush3.msra.mxu1 %v6571_v20  ;;  %4515 = vmatpush3.msra.mxu0 %v6380_v52 }
 0x19a   :  { %5136 = vmatprep.subr.mxu1 %v6589_v54  ;;  %4516 = vmatprep.subr.mxu0 %v6387_v55 }
 0x19b   :  { %5137 = vmatpush3.msra.mxu1 %v6589_v54  ;;  %4517 = vmatpush3.msra.mxu0 %v6392_v57 }
 0x19c   :  { %5112 = vmatprep.mubr.f32.mxu1 %v480_v53  ;;  %5138 = vmatprep.subr.mxu1 %v6599_v59  ;;  %v3879_v53 = vld [vmem:[%s8907_s3 + $0x358] sm:$0xff] }
 0x19d   :  { %4518 = vmatprep.subr.mxu0 %v6399_v60  ;;  %5113 = vmatmul.mubr.f32.gmra.mxu1 %v483_v23  ;;  %v3882_v23 = vld [vmem:[%s8907_s3 + $0x370] sm:$0xff] }
 0x19e   :  { %5139 = vmatpush3.msra.mxu1 %v6599_v59  ;;  %4519 = vmatpush3.msra.mxu0 %v6405_v62 }
 0x19f   :  { %5140 = vmatprep.subr.mxu1 %v6617_v24  ;;  %4520 = vmatprep.subr.mxu0 %v6412_v1 }
 0x1a0   :  { %5141 = vmatpush3.msra.mxu1 %v6617_v24  ;;  %4521 = vmatpush3.msra.mxu0 %v6418_v10 }
 0x1a1   :  { %5115 = vmatprep.mubr.f32.mxu1 %v486_v7  ;;  %5142 = vmatprep.subr.mxu1 %v6627_v9  ;;  %v3831_v7 = vld [vmem:[%s8907_s3 + $0x1d8] sm:$0xff] }
 0x1a2   :  { %4522 = vmatprep.subr.mxu0 %v6426_v15  ;;  %5116 = vmatmul.mubr.f32.gmra.mxu1 %v489_v5  ;;  %v3885_v5 = vld [vmem:[%s8907_s3 + $0x388] sm:$0xff] }
 0x1a3   :  { %5143 = vmatpush3.msra.mxu1 %v6627_v9  ;;  %4523 = vmatpush3.msra.mxu0 %v6432_v16 }
 0x1a4   :  { %5144 = vmatprep.subr.mxu1 %v6645_v4  ;;  %4524 = vmatprep.subr.mxu0 %v6440_v26 }
 0x1a5   :  { %5145 = vmatpush3.msra.mxu1 %v6645_v4  ;;  %4525 = vmatpush3.msra.mxu0 %v6446_v27 }
 0x1a6   :  { %5118 = vmatprep.mubr.f32.mxu1 %v492_v58  ;;  %5146 = vmatprep.subr.mxu1 %v6653_v21  ;;  %v3922_v58 = vld [vmem:[%s8907_s3 + $0x4b0] sm:$0xff] }
 0x1a7   :  { %4526 = vmatprep.subr.mxu0 %v6454_v29  ;;  %5119 = vmatmul.mubr.f32.gmra.mxu1 %v495_v56  ;;  %v3874_v56 = vld [vmem:[%s8907_s3 + $0x330] sm:$0xff] }
 0x1a8   :  { %5147 = vmatpush3.msra.mxu1 %v6653_v21  ;;  %4527 = vmatpush3.msra.mxu0 %v6460_v30 }
 0x1a9   :  { %5148 = vmatprep.subr.mxu1 %v6675_v0  ;;  %4528 = vmatprep.subr.mxu0 %v6468_v33 }
 0x1aa   :  { %5149 = vmatpush3.msra.mxu1 %v6675_v0  ;;  %4529 = vmatpush3.msra.mxu0 %v6474_v34 }
 0x1ab   :  { %5121 = vmatprep.mubr.f32.mxu1 %v498_v43  ;;  %5150 = vmatprep.subr.mxu1 %v6693_v8  ;;  %v3925_v43 = vld [vmem:[%s8907_s3 + $0x4c8] sm:$0xff] }
 0x1ac   :  { %4530 = vmatprep.subr.mxu0 %v6482_v36  ;;  %5122 = vmatmul.mubr.f32.gmra.mxu1 %v501_v38  ;;  %v3877_v38 = vld [vmem:[%s8907_s3 + $0x348] sm:$0xff] }
 0x1ad   :  { %5151 = vmatpush3.msra.mxu1 %v6693_v8  ;;  %4531 = vmatpush3.msra.mxu0 %v6488_v37 }
 0x1ae   :  { %5152 = vmatprep.subr.mxu1 %v6703_v22  ;;  %4532 = vmatprep.subr.mxu0 %v6496_v40 }
 0x1af   :  { %5153 = vmatpush3.msra.mxu1 %v6703_v22  ;;  %4533 = vmatpush3.msra.mxu0 %v6502_v41 }
 0x1b0   :  { %5124 = vmatprep.mubr.f32.mxu1 %v504_v28  ;;  %5154 = vmatprep.subr.mxu1 %v6721_v17  ;;  %v3928_v28 = vld [vmem:[%s8907_s3 + $0x4e0] sm:$0xff] }
 0x1b1   :  { %4534 = vmatprep.subr.mxu0 %v6510_v46  ;;  %5125 = vmatmul.mubr.f32.gmra.mxu1 %v507_v63  ;;  %v3880_v63 = vld [vmem:[%s8907_s3 + $0x360] sm:$0xff] }
 0x1b2   :  { %5155 = vmatpush3.msra.mxu1 %v6721_v17  ;;  %4535 = vmatpush3.msra.mxu0 %v6516_v49 }
 0x1b3   :  { %5156 = vmatprep.subr.mxu1 %v6731_v51  ;;  %4536 = vmatprep.subr.mxu0 %v6522_v18 }
 0x1b4   :  { %5157 = vmatpush3.msra.mxu1 %v6731_v51  ;;  %4537 = vmatpush3.msra.mxu0 %v6528_v2 }
 0x1b5   :  { %5127 = vmatprep.mubr.f32.mxu1 %v510_v48  ;;  %5158 = vmatprep.subr.mxu1 %v6749_v44  ;;  %v3931_v48 = vld [vmem:[%s8907_s3 + $0x4f8] sm:$0xff] }
 0x1b6   :  { %4538 = vmatprep.subr.mxu0 %v6532_v61  ;;  %5128 = vmatmul.mubr.f32.gmra.mxu1 %v513_v12  ;;  %v3883_v12 = vld [vmem:[%s8907_s3 + $0x378] sm:$0xff] }
 0x1b7   :  { %5159 = vmatpush3.msra.mxu1 %v6749_v44  ;;  %4539 = vmatpush3.msra.mxu0 %v6536_v19 }
 0x1b8   :  { %5160 = vmatprep.subr.mxu1 %v6757_v32  ;;  %4540 = vmatprep.subr.mxu0 %v6540_v3 }
 0x1b9   :  { %5161 = vmatpush3.msra.mxu1 %v6757_v32  ;;  %4541 = vmatpush3.msra.mxu0 %v6545_v14 }
 0x1ba   :  { %5162 = vmatprep.mubr.f32.mxu1 %v3822_v11  ;;  %4398 = vmatprep.subr.mxu1 %v6354_v39  ;;  %v3834_v39 = vld [vmem:[%s8907_s3 + $0x1f0] sm:$0xff] }
 0x1bb   :  { %5163 = vmatmul.mubr.f32.vlgmr.msra.gmra.mxu1 %v3825_v31  ;;  %5221 = vmatprep.mubr.f32.mxu0 %v3876_v13  ;;  %v3934_v11 = vld [vmem:[%s8907_s3 + $0x510] sm:$0xff]  ;;  %v3937_v13 = vld [vmem:[%s8907_s3 + $0x528] sm:$0xff] }
 0x1bc   :  { %4399 = vmatpush3.msra.mxu1 %v6358_v42  ;;  %5165 = vmatprep.mubr.f32.mxu1 %v3828_v35  ;;  %v3888_v42 = vld [vmem:[%s8907_s3 + $0x3a0] sm:$0xff]  ;;  %v3886_v31 = vld [vmem:[%s8907_s3 + $0x390] sm:$0xff]  ;;  %v3889_v35 = vld [vmem:[%s8907_s3 + $0x3a8] sm:$0xff] }
 0x1bd   :  { %4400 = vmatprep.subr.mxu1 %v6363_v45  ;;  %5222 = vmatmul.mubr.f32.gmra.mxu0 %v3879_v53  ;;  %v3837_v45 = vld [vmem:[%s8907_s3 + $0x208] sm:$0xff]  ;;  %v3940_v53 = vld [vmem:[%s8907_s3 + $0x540] sm:$0xff] }
 0x1be   :  { %4401 = vmatpush3.msra.mxu1 %v6368_v47  ;;  %5224 = vmatprep.mubr.f32.mxu0 %v3882_v23  ;;  %v3840_v47 = vld [vmem:[%s8907_s3 + $0x220] sm:$0xff] }
 0x1bf   :  { %4402 = vmatprep.subr.mxu1 %v6375_v50  ;;  %5166 = vmatmul.mubr.f32.gmra.mxu1 %v3831_v7  ;;  %v3891_v50 = vld [vmem:[%s8907_s3 + $0x3b8] sm:$0xff]  ;;  %v3892_v23 = vld [vmem:[%s8907_s3 + $0x3c0] sm:$0xff] }
 0x1c0   :  { %4403 = vmatpush3.msra.mxu1 %v6380_v52  ;;  %5168 = vmatprep.mubr.f32.mxu1 %v3834_v39  ;;  %v3894_v52 = vld [vmem:[%s8907_s3 + $0x3d0] sm:$0xff]  ;;  %v3943_v7 = vld [vmem:[%s8907_s3 + $0x558] sm:$0xff] }
 0x1c1   :  { %4404 = vmatprep.subr.mxu1 %v6387_v55  ;;  %5225 = vmatmul.mubr.f32.gmra.mxu0 %v3885_v5  ;;  %v3843_v55 = vld [vmem:[%s8907_s3 + $0x238] sm:$0xff] }
 0x1c2   :  { %4405 = vmatpush3.msra.mxu1 %v6392_v57  ;;  %5227 = vmatprep.mubr.f32.mxu0 %v3888_v42  ;;  %v3846_v57 = vld [vmem:[%s8907_s3 + $0x250] sm:$0xff]  ;;  %v3895_v39 = vld [vmem:[%s8907_s3 + $0x3d8] sm:$0xff] }
 0x1c3   :  { %4406 = vmatprep.subr.mxu1 %v6399_v60  ;;  %5169 = vmatmul.mubr.f32.gmra.mxu1 %v3837_v45  ;;  %v3897_v60 = vld [vmem:[%s8907_s3 + $0x3e8] sm:$0xff]  ;;  %v3899_v5 = vld [vmem:[%s8907_s3 + $0x3f8] sm:$0xff]  ;;  %v3950_v42 = vld [vmem:[%s8907_s3 + $0x590] sm:$0xff] }
 0x1c4   :  { %4407 = vmatpush3.msra.mxu1 %v6405_v62  ;;  %5171 = vmatprep.mubr.f32.mxu1 %v3840_v47  ;;  %v3900_v62 = vld [vmem:[%s8907_s3 + $0x400] sm:$0xff]  ;;  %v3898_v45 = vld [vmem:[%s8907_s3 + $0x3f0] sm:$0xff] }
 0x1c5   :  { %4408 = vmatprep.subr.mxu1 %v6412_v1  ;;  %5228 = vmatmul.mubr.f32.gmra.mxu0 %v3891_v50  ;;  %v3849_v1 = vld [vmem:[%s8907_s3 + $0x268] sm:$0xff]  ;;  %v3902_v47 = vld [vmem:[%s8907_s3 + $0x410] sm:$0xff] }
 0x1c6   :  { %4409 = vmatpush3.msra.mxu1 %v6418_v10  ;;  %5230 = vmatprep.mubr.f32.mxu0 %v3894_v52  ;;  %v3852_v10 = vld [vmem:[%s8907_s3 + $0x280] sm:$0xff]  ;;  %v3949_v50 = vld [vmem:[%s8907_s3 + $0x588] sm:$0xff] }
 0x1c7   :  { %4410 = vmatprep.subr.mxu1 %v6426_v15  ;;  %5172 = vmatmul.mubr.f32.gmra.mxu1 %v3843_v55  ;;  %v3903_v15 = vld [vmem:[%s8907_s3 + $0x418] sm:$0xff]  ;;  %v3953_v55 = vld [vmem:[%s8907_s3 + $0x5a8] sm:$0xff] }
 0x1c8   :  { %4411 = vmatpush3.msra.mxu1 %v6432_v16  ;;  %5174 = vmatprep.mubr.f32.mxu1 %v3846_v57  ;;  %v3906_v16 = vld [vmem:[%s8907_s3 + $0x430] sm:$0xff]  ;;  %v3901_v57 = vld [vmem:[%s8907_s3 + $0x408] sm:$0xff] }
 0x1c9   :  { %4412 = vmatprep.subr.mxu1 %v6440_v26  ;;  %5231 = vmatmul.mubr.f32.gmra.mxu0 %v3897_v60  ;;  %v3855_v26 = vld [vmem:[%s8907_s3 + $0x298] sm:$0xff] }
 0x1ca   :  { %4413 = vmatpush3.msra.mxu1 %v6446_v27  ;;  %5233 = vmatprep.mubr.f32.mxu0 %v3900_v62  ;;  %v3858_v27 = vld [vmem:[%s8907_s3 + $0x2b0] sm:$0xff]  ;;  %v3905_v62 = vld [vmem:[%s8907_s3 + $0x428] sm:$0xff] }
 0x1cb   :  { %4414 = vmatprep.subr.mxu1 %v6454_v29  ;;  %5175 = vmatmul.mubr.f32.gmra.mxu1 %v3849_v1  ;;  %v3909_v29 = vld [vmem:[%s8907_s3 + $0x448] sm:$0xff] }
 0x1cc   :  { %4415 = vmatpush3.msra.mxu1 %v6460_v30  ;;  %5177 = vmatprep.mubr.f32.mxu1 %v3852_v10  ;;  %v3912_v30 = vld [vmem:[%s8907_s3 + $0x460] sm:$0xff] }
 0x1cd   :  { %4416 = vmatprep.subr.mxu1 %v6468_v33  ;;  %5234 = vmatmul.mubr.f32.gmra.mxu0 %v3903_v15  ;;  %v3861_v33 = vld [vmem:[%s8907_s3 + $0x2c8] sm:$0xff]  ;;  %v3952_v10 = vld [vmem:[%s8907_s3 + $0x5a0] sm:$0xff] }
 0x1ce   :  { %4417 = vmatpush3.msra.mxu1 %v6474_v34  ;;  %5236 = vmatprep.mubr.f32.mxu0 %v3906_v16  ;;  %v3864_v34 = vld [vmem:[%s8907_s3 + $0x2e0] sm:$0xff] }
 0x1cf   :  { %4418 = vmatprep.subr.mxu1 %v6482_v36  ;;  %5178 = vmatmul.mubr.f32.gmra.mxu1 %v3855_v26  ;;  %v3915_v36 = vld [vmem:[%s8907_s3 + $0x478] sm:$0xff]  ;;  %v3956_v16 = vld [vmem:[%s8907_s3 + $0x5c0] sm:$0xff] }
 0x1d0   :  { %4419 = vmatpush3.msra.mxu1 %v6488_v37  ;;  %5180 = vmatprep.mubr.f32.mxu1 %v3858_v27  ;;  %v3917_v37 = vld [vmem:[%s8907_s3 + $0x488] sm:$0xff]  ;;  %v3904_v27 = vld [vmem:[%s8907_s3 + $0x420] sm:$0xff] }
 0x1d1   :  { %4420 = vmatprep.subr.mxu1 %v6496_v40  ;;  %5237 = vmatmul.mubr.f32.gmra.mxu0 %v3909_v29  ;;  %v3867_v40 = vld [vmem:[%s8907_s3 + $0x2f8] sm:$0xff]  ;;  %v3908_v29 = vld [vmem:[%s8907_s3 + $0x440] sm:$0xff] }
 0x1d2   :  { %4421 = vmatpush3.msra.mxu1 %v6502_v41  ;;  %5239 = vmatprep.mubr.f32.mxu0 %v3912_v30  ;;  %v3869_v41 = vld [vmem:[%s8907_s3 + $0x308] sm:$0xff] }
 0x1d3   :  { %4422 = vmatprep.subr.mxu1 %v6510_v46  ;;  %5181 = vmatmul.mubr.f32.gmra.mxu1 %v3861_v33  ;;  %v3916_v46 = vld [vmem:[%s8907_s3 + $0x480] sm:$0xff]  ;;  %v3955_v33 = vld [vmem:[%s8907_s3 + $0x5b8] sm:$0xff] }
 0x1d4   :  { %4423 = vmatpush3.msra.mxu1 %v6516_v49  ;;  %5183 = vmatprep.mubr.f32.mxu1 %v3864_v34  ;;  %v3920_v49 = vld [vmem:[%s8907_s3 + $0x4a0] sm:$0xff] }
 0x1d5   :  { %4424 = vmatprep.subr.mxu1 %v6522_v18  ;;  %5240 = vmatmul.mubr.f32.gmra.mxu0 %v3915_v36  ;;  %v3868_v18 = vld [vmem:[%s8907_s3 + $0x300] sm:$0xff] }
 0x1d6   :  { %4425 = vmatpush3.msra.mxu1 %v6528_v2  ;;  %1627 = vmatprep.mubr.f32.mxu0 %v3917_v37  ;;  %v3872_v2 = vld [vmem:[%s8907_s3 + $0x320] sm:$0xff]  ;;  %v3959_v37 = vld [vmem:[%s8907_s3 + $0x5d8] sm:$0xff] }
 0x1d7   :  { %4426 = vmatprep.subr.mxu1 %v6532_v61  ;;  %5184 = vmatmul.mubr.f32.gmra.mxu1 %v3867_v40  ;;  %v3919_v61 = vld [vmem:[%s8907_s3 + $0x498] sm:$0xff] }
 0x1d8   :  { %4427 = vmatpush3.msra.mxu1 %v6536_v19  ;;  %1272 = vmatprep.mubr.f32.mxu1 %v3869_v41  ;;  %v3923_v19 = vld [vmem:[%s8907_s3 + $0x4b8] sm:$0xff] }
 0x1d9   :  { %4428 = vmatprep.subr.mxu1 %v6540_v3  ;;  %1628 = vmatmul.mubr.f32.vlgmr.msra.gmra.mxu0 %v3916_v46  ;;  %v3871_v3 = vld [vmem:[%s8907_s3 + $0x318] sm:$0xff] }
 0x1da   :  { %4429 = vmatpush3.msra.mxu1 %v6545_v14  ;;  %1632 = vmatprep.mubr.f32.mxu0 %v3920_v49  ;;  %v3875_v14 = vld [vmem:[%s8907_s3 + $0x338] sm:$0xff] }
 0x1db   :  { %5242 = vmatprep.subr.mxu1 %v6553_v25  ;;  %1273 = vmatmul.mubr.f32.vlgmr.msra.gmra.mxu1 %v3868_v18  ;;  %v3907_v40 = vld [vmem:[%s8907_s3 + $0x438] sm:$0xff]  ;;  %v3958_v18 = vld [vmem:[%s8907_s3 + $0x5d0] sm:$0xff] }
 0x1dc   :  { %5243 = vmatpush3.msra.mxu1 %v6553_v25  ;;  %1277 = vmatprep.mubr.f32.mxu1 %v3872_v2  ;;  %v3926_v25 = vld [vmem:[%s8907_s3 + $0x4d0] sm:$0xff]  ;;  %v3911_v46 = vld [vmem:[%s8907_s3 + $0x458] sm:$0xff] }
 0x1dd   :  { %5244 = vmatprep.subr.mxu1 %v6563_v6  ;;  %1633 = vmatmul.mubr.f32.gmra.mxu0 %v3919_v61  ;;  %v3962_v61 = vld [vmem:[%s8907_s3 + $0x5f0] sm:$0xff] }
 0x1de   :  { %5245 = vmatpush3.msra.mxu1 %v6563_v6  ;;  %1637 = vmatprep.mubr.f32.mxu0 %v3923_v19  ;;  %v3878_v6 = vld [vmem:[%s8907_s3 + $0x350] sm:$0xff] }
 0x1df   :  { %5246 = vmatprep.subr.mxu1 %v6571_v20  ;;  %1278 = vmatmul.mubr.f32.gmra.mxu1 %v3871_v3  ;;  %v3910_v19 = vld [vmem:[%s8907_s3 + $0x450] sm:$0xff] }
 0x1e0   :  { %5247 = vmatpush3.msra.mxu1 %v6571_v20  ;;  %1282 = vmatprep.mubr.f32.mxu1 %v3875_v14  ;;  %v3929_v20 = vld [vmem:[%s8907_s3 + $0x4e8] sm:$0xff]  ;;  %v3914_v14 = vld [vmem:[%s8907_s3 + $0x470] sm:$0xff] }
 0x1e1   :  { %5248 = vmatprep.subr.mxu1 %v6589_v54  ;;  %1638 = vmatmul.mubr.f32.gmra.mxu0 %v3922_v58 }
 0x1e2   :  { %5249 = vmatpush3.msra.mxu1 %v6589_v54  ;;  %1642 = vmatprep.mubr.f32.mxu0 %v3926_v25  ;;  %v3881_v54 = vld [vmem:[%s8907_s3 + $0x368] sm:$0xff] }
 0x1e3   :  { %5250 = vmatprep.subr.mxu1 %v6599_v59  ;;  %1283 = vmatmul.mubr.f32.gmra.mxu1 %v3874_v56  ;;  %v3961_v25 = vld [vmem:[%s8907_s3 + $0x5e8] sm:$0xff] }
 0x1e4   :  { %5251 = vmatpush3.msra.mxu1 %v6599_v59  ;;  %1287 = vmatprep.mubr.f32.mxu1 %v3878_v6  ;;  %v3932_v59 = vld [vmem:[%s8907_s3 + $0x500] sm:$0xff] }
 0x1e5   :  { %5252 = vmatprep.subr.mxu1 %v6617_v24  ;;  %1643 = vmatmul.mubr.f32.gmra.mxu0 %v3925_v43  ;;  %v3913_v43 = vld [vmem:[%s8907_s3 + $0x468] sm:$0xff] }
 0x1e6   :  { %5253 = vmatpush3.msra.mxu1 %v6617_v24  ;;  %1647 = vmatprep.mubr.f32.mxu0 %v3929_v20  ;;  %v3884_v24 = vld [vmem:[%s8907_s3 + $0x380] sm:$0xff]  ;;  %v3918_v20 = vld [vmem:[%s8907_s3 + $0x490] sm:$0xff] }
 0x1e7   :  { %5254 = vmatprep.subr.mxu1 %v6627_v9  ;;  %1288 = vmatmul.mubr.f32.gmra.mxu1 %v3877_v38 }
 0x1e8   :  { %5255 = vmatpush3.msra.mxu1 %v6627_v9  ;;  %1292 = vmatprep.mubr.f32.mxu1 %v3881_v54  ;;  %v3935_v9 = vld [vmem:[%s8907_s3 + $0x518] sm:$0xff] }
 0x1e9   :  { %5256 = vmatprep.subr.mxu1 %v6645_v4  ;;  %1648 = vmatmul.mubr.f32.gmra.mxu0 %v3928_v28 }
 0x1ea   :  { %5257 = vmatpush3.msra.mxu1 %v6645_v4  ;;  %1652 = vmatprep.mubr.f32.mxu0 %v3932_v59  ;;  %v3887_v4 = vld [vmem:[%s8907_s3 + $0x398] sm:$0xff]  ;;  %v3921_v59 = vld [vmem:[%s8907_s3 + $0x4a8] sm:$0xff] }
 0x1eb   :  { %5258 = vmatprep.subr.mxu1 %v6653_v21  ;;  %1293 = vmatmul.mubr.f32.gmra.mxu1 %v3880_v63 }
 0x1ec   :  { %5259 = vmatpush3.msra.mxu1 %v6653_v21  ;;  %1297 = vmatprep.mubr.f32.mxu1 %v3884_v24  ;;  %v3938_v21 = vld [vmem:[%s8907_s3 + $0x530] sm:$0xff]  ;;  %v3924_v24 = vld [vmem:[%s8907_s3 + $0x4c0] sm:$0xff] }
 0x1ed   :  { %5260 = vmatprep.subr.mxu1 %v6675_v0  ;;  %1653 = vmatmul.mubr.f32.gmra.mxu0 %v3931_v48 }
 0x1ee   :  { %5261 = vmatpush3.msra.mxu1 %v6675_v0  ;;  %1657 = vmatprep.mubr.f32.mxu0 %v3935_v9  ;;  %v3890_v0 = vld [vmem:[%s8907_s3 + $0x3b0] sm:$0xff] }
 0x1ef   :  { %5262 = vmatprep.subr.mxu1 %v6693_v8  ;;  %1298 = vmatmul.mubr.f32.gmra.mxu1 %v3883_v12  ;;  %v3927_v12 = vld [vmem:[%s8907_s3 + $0x4d8] sm:$0xff] }
 0x1f0   :  { %5263 = vmatpush3.msra.mxu1 %v6693_v8  ;;  %1302 = vmatprep.mubr.f32.mxu1 %v3887_v4  ;;  %v3941_v8 = vld [vmem:[%s8907_s3 + $0x548] sm:$0xff] }
 0x1f1   :  { %5264 = vmatprep.subr.mxu1 %v6703_v22  ;;  %1658 = vmatmul.mubr.f32.gmra.mxu0 %v3934_v11  ;;  %v3930_v11 = vld [vmem:[%s8907_s3 + $0x4f0] sm:$0xff] }
 0x1f2   :  { %5265 = vmatpush3.msra.mxu1 %v6703_v22  ;;  %1662 = vmatprep.mubr.f32.mxu0 %v3938_v21  ;;  %v3893_v22 = vld [vmem:[%s8907_s3 + $0x3c8] sm:$0xff] }
 0x1f3   :  { %5266 = vmatprep.subr.mxu1 %v6721_v17  ;;  %1303 = vmatmul.mubr.f32.gmra.mxu1 %v3886_v31 }
 0x1f4   :  { %5267 = vmatpush3.msra.mxu1 %v6721_v17  ;;  %1307 = vmatprep.mubr.f32.mxu1 %v3890_v0  ;;  %v3944_v17 = vld [vmem:[%s8907_s3 + $0x560] sm:$0xff] }
 0x1f5   :  { %5268 = vmatprep.subr.mxu1 %v6731_v51  ;;  %1663 = vmatmul.mubr.f32.gmra.mxu0 %v3937_v13  ;;  %v3933_v13 = vld [vmem:[%s8907_s3 + $0x508] sm:$0xff] }
 0x1f6   :  { %5269 = vmatpush3.msra.mxu1 %v6731_v51  ;;  %1667 = vmatprep.mubr.f32.mxu0 %v3941_v8  ;;  %v3896_v51 = vld [vmem:[%s8907_s3 + $0x3e0] sm:$0xff] }
 0x1f7   :  { %5270 = vmatprep.subr.mxu1 %v6749_v44  ;;  %1308 = vmatmul.mubr.f32.gmra.mxu1 %v3889_v35  ;;  %v3936_v8 = vld [vmem:[%s8907_s3 + $0x520] sm:$0xff] }
 0x1f8   :  { %5271 = vmatpush3.msra.mxu1 %v6749_v44  ;;  %1312 = vmatprep.mubr.f32.mxu1 %v3893_v22  ;;  %v3947_v44 = vld [vmem:[%s8907_s3 + $0x578] sm:$0xff] }
 0x1f9   :  { %5272 = vmatprep.subr.mxu1 %v6757_v32  ;;  %1668 = vmatmul.mubr.f32.gmra.mxu0 %v3940_v53 }
 0x1fa   :  { %5273 = vmatpush3.msra.mxu1 %v6757_v32  ;;  %1672 = vmatprep.mubr.f32.mxu0 %v3944_v17  ;;  %v3946_v32 = vld [vmem:[%s8907_s3 + $0x570] sm:$0xff]  ;;  %v3939_v17 = vld [vmem:[%s8907_s3 + $0x538] sm:$0xff] }
 0x1fb   :  { %1313 = vmatmul.mubr.f32.gmra.mxu1 %v3892_v23 }
 0x1fc   :  { %1317 = vmatprep.mubr.f32.mxu1 %v3896_v51  ;;  %v3942_v51 = vld [vmem:[%s8907_s3 + $0x550] sm:$0xff] }
 0x1fd   :  { %1673 = vmatmul.mubr.f32.gmra.mxu0 %v3943_v7 }
 0x1fe   :  { %1677 = vmatprep.mubr.f32.mxu0 %v3947_v44 }
 0x1ff   :  { %1318 = vmatmul.mubr.f32.gmra.mxu1 %v3895_v39  ;;  %v3945_v39 = vld [vmem:[%s8907_s3 + $0x568] sm:$0xff] }
 0x200   :  { %1322 = vmatprep.mubr.f32.mxu1 %v3899_v5 }
 0x201   :  { %1678 = vmatmul.mubr.f32.gmra.mxu0 %v3946_v32  ;;  %v3948_v32 = vld [vmem:[%s8907_s3 + $0x580] sm:$0xff] }
 0x202   :  { %1682 = vmatprep.mubr.f32.mxu0 %v3950_v42 }
 0x203   :  { %1323 = vmatmul.mubr.f32.gmra.mxu1 %v3898_v45  ;;  %v7275_v52 = vpop.f32.mrf.mxu1 }
 0x204   :  { %1327 = vmatprep.mubr.f32.mxu1 %v3902_v47  ;;  %v4318_v60 = vpop.f32.mrf.mxu0 }
 0x205   :  { %v7286_v1 = vpop.f32.mrf.mxu1  ;;  %1683 = vmatmul.mubr.f32.gmra.mxu0 %v3949_v50  ;;  %v3951_v50 = vld [vmem:[%s8907_s3 + $0x598] sm:$0xff] }
 0x206   :  { %1687 = vmatprep.mubr.f32.mxu0 %v3953_v55  ;;  %v4319_v15 = vpop.f32.mrf.mxu0  ;;  %v3954_v55 = vld [vmem:[%s8907_s3 + $0x5b0] sm:$0xff] }
 0x207   :  { %1328 = vmatmul.mubr.f32.gmra.mxu1 %v3901_v57  ;;  %v7294_v26 = vadd.f32 %v4319_v15, %v4318_v60 }
 0x208   :  { %1332 = vmatprep.mubr.f32.mxu1 %v3905_v62 }
 0x209   :  { %v7302_v30 = vpop.f32.mrf.mxu1  ;;  %1688 = vmatmul.mubr.f32.gmra.mxu0 %v3952_v10  ;;  %v3957_v10 = vld [vmem:[%s8907_s3 + $0x5c8] sm:$0xff] }
 0x20a   :  { %1692 = vmatprep.mubr.f32.mxu0 %v3956_v16  ;;  %v4321_v34 = vpop.f32.mrf.mxu0  ;;  %v3960_v16 = vld [vmem:[%s8907_s3 + $0x5e0] sm:$0xff] }
 0x20b   :  { %1333 = vmatmul.mubr.f32.gmra.mxu1 %v3904_v27  ;;  %v7307_v36 = vpop.f32.mrf.mxu1 }
 0x20c   :  { %1337 = vmatprep.mubr.f32.mxu1 %v3908_v29  ;;  %v4322_v41 = vpop.f32.mrf.mxu0 }
 0x20d   :  { %1693 = vmatmul.mubr.f32.gmra.mxu0 %v3955_v33  ;;  %v7318_v49 = vadd.f32 %v4322_v41, %v4321_v34  ;;  %v3963_v34 = vld [vmem:[%s8907_s3 + $0x5f8] sm:$0xff] }
 0x20e   :  { %1697 = vmatprep.mubr.f32.mxu0 %v3959_v37 }
 0x20f   :  { %1338 = vmatmul.mubr.f32.gmra.mxu1 %v3907_v40  ;;  %v7323_v2 = vpop.f32.mrf.mxu1 }
 0x210   :  { %1342 = vmatprep.mubr.f32.mxu1 %v3911_v46  ;;  %v4324_v3 = vpop.f32.mrf.mxu0 }
 0x211   :  { %v7334_v58 = vpop.f32.mrf.mxu1  ;;  %1698 = vmatmul.mubr.f32.gmra.mxu0 %v3958_v18 }
 0x212   :  { %1702 = vmatprep.mubr.f32.mxu0 %v3962_v61  ;;  %v4325_v56 = vpop.f32.mrf.mxu0 }
 0x213   :  { %1343 = vmatmul.mubr.f32.gmra.mxu1 %v3910_v19  ;;  %v7339_v6 = vadd.f32 %v4325_v56, %v4324_v3 }
 0x214   :  { %1347 = vmatprep.mubr.f32.mxu1 %v3914_v14 }
 0x215   :  { %v7347_v38 = vpop.f32.mrf.mxu1  ;;  %1703 = vmatmul.mubr.f32.gmra.mxu0 %v3961_v25 }
 0x216   :  { %v4327_v54 = vpop.f32.mrf.mxu0 }
 0x217   :  { %1348 = vmatmul.mubr.f32.gmra.mxu1 %v3913_v43  ;;  %v7349_v28 = vpop.f32.mrf.mxu1 }
 0x218   :  { %5274 = vmatprep.mubr.f32.mxu1 %v3918_v20  ;;  %v4328_v63 = vpop.f32.mrf.mxu0 }
 0x219   :  { %v7357_v48 = vadd.f32 %v4328_v63, %v4327_v54 }
 0x21b   :  { %5275 = vmatmul.mubr.f32.vlgmr.msra.gmra.mxu1 %v3921_v59  ;;  %v7359_v9 = vpop.f32.mrf.mxu1 }
 0x21c   :  { %5277 = vmatprep.mubr.f32.mxu1 %v3924_v24  ;;  %v4330_v4 = vpop.f32.mrf.mxu0 }
 0x21d   :  { %v7367_v21 = vpop.f32.mrf.mxu1 }
 0x21e   :  { %v4331_v31 = vpop.f32.mrf.mxu0 }
 0x21f   :  { %5278 = vmatmul.mubr.f32.gmra.mxu1 %v3927_v12  ;;  %v7369_v0 = vadd.f32 %v4331_v31, %v4330_v4 }
 0x220   :  { %5280 = vmatprep.mubr.f32.mxu1 %v3930_v11 }
 0x221   :  { %v7377_v35 = vpop.f32.mrf.mxu1 }
 0x222   :  { %v4333_v22 = vpop.f32.mrf.mxu0 }
 0x223   :  { %5281 = vmatmul.mubr.f32.gmra.mxu1 %v3933_v13  ;;  %v7379_v53 = vpop.f32.mrf.mxu1 }
 0x224   :  { %5283 = vmatprep.mubr.f32.mxu1 %v3936_v8  ;;  %v4334_v23 = vpop.f32.mrf.mxu0 }
 0x225   :  { %v7387_v7 = vadd.f32 %v4334_v23, %v4333_v22 }
 0x227   :  { %5284 = vmatmul.mubr.f32.gmra.mxu1 %v3939_v17  ;;  %v7389_v44 = vpop.f32.mrf.mxu1 }
 0x228   :  { %5286 = vmatprep.mubr.f32.mxu1 %v3942_v51  ;;  %v4336_v5 = vpop.f32.mrf.mxu0 }
 0x229   :  { %v7397_v42 = vpop.f32.mrf.mxu1 }
 0x22a   :  { %v4337_v45 = vpop.f32.mrf.mxu0 }
 0x22b   :  { %5287 = vmatmul.mubr.f32.gmra.mxu1 %v3945_v39  ;;  %v7399_v47 = vadd.f32 %v4337_v45, %v4336_v5 }
 0x22c   :  { %5289 = vmatprep.mubr.f32.mxu1 %v3948_v32 }
 0x22d   :  { %v7407_v57 = vpop.f32.mrf.mxu1 }
 0x22e   :  { %v4339_v60 = vpop.f32.mrf.mxu0 }
 0x22f   :  { %5290 = vmatmul.mubr.f32.gmra.mxu1 %v3951_v50  ;;  %v7409_v62 = vpop.f32.mrf.mxu1 }
 0x230   :  { %5292 = vmatprep.mubr.f32.mxu1 %v3954_v55  ;;  %v4340_v15 = vpop.f32.mrf.mxu0 }
 0x231   :  { %v7417_v27 = vadd.f32 %v4340_v15, %v4339_v60 }
 0x233   :  { %5293 = vmatmul.mubr.f32.gmra.mxu1 %v3957_v10  ;;  %v7419_v29 = vpop.f32.mrf.mxu1  ;;  %v4342_v33 = vpop.f32.mrf.mxu0 }
 0x234   :  { %5295 = vmatprep.mubr.f32.mxu1 %v3960_v16 }
 0x235   :  { %v7424_v37 = vpop.f32.mrf.mxu1  ;;  %v4343_v40 = vpop.f32.mrf.mxu0 }
 0x236   :  { %v7426_v41 = vadd.f32 %v4343_v40, %v4342_v33 }
 0x237   :  { %5296 = vmatmul.mubr.f32.gmra.mxu1 %v3963_v34  ;;  %v4233_v46 = vpop.f32.mrf.mxu1  ;;  %v4345_v18 = vpop.f32.mrf.mxu0  ;;  %v4211_v34 = vadd.f32 %v7307_v36, %v7302_v30 }
 0x239   :  { %v4234_v61 = vpop.f32.mrf.mxu1  ;;  %v4346_v19 = vpop.f32.mrf.mxu0 }
 0x23a   :  { %v7428_v3 = vadd.f32 %v4346_v19, %v4345_v18 }
 0x23b   :  { %v7430_v14 = vpop.f32.mrf.mxu1  ;;  %v4348_v25 = vpop.f32.mrf.mxu0 }
 0x23d   :  { %v4237_v56 = vpop.f32.mrf.mxu1  ;;  %v4349_v43 = vpop.f32.mrf.mxu0 }
 0x23e   :  { %v7432_v20 = vadd.f32 %v4349_v43, %v4348_v25  ;;  %v4208_v25 = vadd.f32 %v7286_v1, %v7275_v52  ;;  %v4223_v52 = vadd.f32 %v7379_v53, %v7377_v35  ;;  %v4235_v53 = vadd.f32 %v4234_v61, %v4233_v46 }
 0x23f   :  { %v4239_v54 = vpop.f32.mrf.mxu1  ;;  %v4351_v59 = vpop.f32.mrf.mxu0 }
 0x241   :  { %v4240_v63 = vpop.f32.mrf.mxu1  ;;  %v4352_v24 = vpop.f32.mrf.mxu0 }
 0x242   :  { %v7434_v12 = vadd.f32 %v4352_v24, %v4351_v59 }
 0x243   :  { %v4242_v4 = vpop.f32.mrf.mxu1  ;;  %v4354_v11 = vpop.f32.mrf.mxu0 }
 0x245   :  { %v4243_v31 = vpop.f32.mrf.mxu1  ;;  %v4355_v13 = vpop.f32.mrf.mxu0 }
 0x246   :  { %v7436_v8 = vadd.f32 %v4355_v13, %v4354_v11  ;;  %v4217_v11 = vadd.f32 %v7349_v28, %v7347_v38  ;;  %v4226_v28 = vadd.f32 %v7397_v42, %v7389_v44  ;;  %v4244_v61 = vadd.f32 %v4243_v31, %v4242_v4 }
 0x247   :  { %v4245_v22 = vpop.f32.mrf.mxu1  ;;  %v4357_v17 = vpop.f32.mrf.mxu0  ;;  %v8917_v4 = vmov 0.0  }
 0x248   :  { %5298 = vmatprep.subr.mxu1 %v8917_v4  ;;  %5333 = vmatprep.subr.mxu0 %v8917_v4 }
 0x249   :  { %v4246_v23 = vpop.f32.mrf.mxu1  ;;  %v4358_v51 = vpop.f32.mrf.mxu0  ;;  %5365 = vmatprep.mubr.msk.f32.mxu0 %vm6044_vm0, %v8917_v4  ;;  %5330 = vmatprep.mubr.msk.f32.mxu1 %vm6044_vm0, %v8917_v4 }
 0x24a   :  { %v7438_v39 = vadd.f32 %v4358_v51, %v4357_v17  ;;  %v4214_v17 = vadd.f32 %v7334_v58, %v7323_v2  ;;  %v4229_v2 = vadd.f32 %v7409_v62, %v7407_v57  ;;  %v4241_v57 = vadd.f32 %v4240_v63, %v4239_v54 }
 0x24b   :  { %v4248_v5 = vpop.f32.mrf.mxu1  ;;  %v4360_v32 = vpop.f32.mrf.mxu0 }
 0x24d   :  { %v4249_v45 = vpop.f32.mrf.mxu1  ;;  %v4361_v50 = vpop.f32.mrf.mxu0 }
 0x24e   :  { %v4250_v55 = vadd.f32 %v4249_v45, %v4248_v5  ;;  %v7440_v60 = vadd.f32 %v4361_v50, %v4360_v32  ;;  %v4220_v5 = vadd.f32 %v7367_v21, %v7359_v9  ;;  %v4232_v9 = vadd.f32 %v7424_v37, %v7419_v29 }
 0x24f   :  { %v4251_v10 = vpop.f32.mrf.mxu1  ;;  %v4363_v15 = vpop.f32.mrf.mxu0 }
 0x251   :  { %v4252_v16 = vpop.f32.mrf.mxu1  ;;  %v4364_v33 = vpop.f32.mrf.mxu0 }
 0x252   :  { %v4253_v40 = vadd.f32 %v4252_v16, %v4251_v10  ;;  %v7444_v18 = vadd.f32 %v4364_v33, %v4363_v15 }
 0x253   :  { %v5108_v19 = vpop.f32.mrf.mxu1 }
 0x254   :  { %v7448_v43 = vadd.f32 %v5108_v19, %v4211_v34  ;;  %v4238_v34 = vadd.f32 %v4237_v56, %v7430_v14 }
 0x255   :  { %v725_v59 = vpop.f32.mrf.mxu1 }
 0x256   :  { %v7450_v24 = vadd.f32 %v4208_v25, %v725_v59  ;;  %v4247_v25 = vadd.f32 %v4246_v23, %v4245_v22 }
 0x258   :  { %v5111_v13 = vpop.f32.mrf.mxu1 }
 0x259   :  { %v7456_v30 = vadd.f32 %v5111_v13, %v4217_v11  ;;  %v7491_v11 = vpop.f32.mrf.mxu0 }
 0x25a   :  { %v735_v36 = vpop.f32.mrf.mxu1 }
 0x25b   :  { %v7458_v51 = vadd.f32 %v4214_v17, %v735_v36  ;;  %v7497_v56 = vpop.f32.mrf.mxu0 }
 0x25d   :  { %v5114_v1 = vpop.f32.mrf.mxu1 }
 0x25e   :  { %v7464_v32 = vadd.f32 %v5114_v1, %v4223_v52 }
 0x25f   :  { %v745_v45 = vpop.f32.mrf.mxu1 }
 0x260   :  { %v7466_v38 = vadd.f32 %v4220_v5, %v745_v45 }
 0x262   :  { %v5117_v58 = vpop.f32.mrf.mxu1 }
 0x263   :  { %v7472_v50 = vadd.f32 %v5117_v58, %v4229_v2 }
 0x264   :  { %v755_v10 = vpop.f32.mrf.mxu1 }
 0x265   :  { %v7474_v35 = vadd.f32 %v4226_v28, %v755_v10 }
 0x267   :  { %v5120_v15 = vpop.f32.mrf.mxu1 }
 0x268   :  { %v7478_v21 = vadd.f32 %v5120_v15, %v4235_v53 }
 0x269   :  { %v765_v16 = vpop.f32.mrf.mxu1 }
 0x26a   :  { %v7480_v33 = vadd.f32 %v4232_v9, %v765_v16 }
 0x26c   :  { %v5123_v62 = vpop.f32.mrf.mxu1 }
 0x26d   :  { %v7483_v44 = vadd.f32 %v5123_v62, %v4241_v57 }
 0x26e   :  { %v775_v42 = vpop.f32.mrf.mxu1 }
 0x26f   :  { %v7485_v19 = vadd.f32 %v4238_v34, %v775_v42 }
 0x271   :  { %v5126_v46 = vpop.f32.mrf.mxu1 }
 0x272   :  { %v7487_v59 = vadd.f32 %v5126_v46, %v4247_v25 }
 0x273   :  { %v785_v29 = vpop.f32.mrf.mxu1 }
 0x274   :  { %8924 = vst [vmem:[#allocation5_spill] sm:$0xff] %v7487_v59  ;;  %v7489_v37 = vadd.f32 %v4244_v61, %v785_v29 }
 0x276   :  { %v5129_v13 = vpop.f32.mrf.mxu1 }
 0x277   :  { %v7493_v54 = vadd.f32 %v5129_v13, %v4253_v40 }
 0x278   :  { %v795_v63 = vpop.f32.mrf.mxu1 }
 0x279   :  { %v7495_v14 = vadd.f32 %v4250_v55, %v795_v63 }
 0x27b   :  { %v5164_v17 = vpop.f32.mrf.mxu1 }
 0x27c   :  { %v7500_v22 = vadd.f32 %v5164_v17, %v7318_v49 }
 0x27d   :  { %v1064_v31 = vpop.f32.mrf.mxu1  ;;  %v7504_v23 = vpop.f32.mrf.mxu0 }
 0x27e   :  { %v7509_v55 = vadd.f32 %v7294_v26, %v1064_v31 }
 0x27f   :  { %v5167_v36 = vpop.f32.mrf.mxu1  ;;  %v7511_v52 = vpop.f32.mrf.mxu0 }
 0x280   :  { %v7516_v1 = vadd.f32 %v5167_v36, %v7357_v48  ;;  %v8927_v4 = vmax.f32 %v7450_v24, %v7509_v55 }
 0x281   :  { %v1074_v5 = vpop.f32.mrf.mxu1  ;;  %v7518_v45 = vpop.f32.mrf.mxu0 }
 0x282   :  { %v7523_v58 = vadd.f32 %v7339_v6, %v1074_v5 }
 0x283   :  { %v5170_v26 = vpop.f32.mrf.mxu1  ;;  %v7525_v28 = vpop.f32.mrf.mxu0 }
 0x284   :  { %v7530_v53 = vadd.f32 %v5170_v26, %v7387_v7 }
 0x285   :  { %v1084_v48 = vpop.f32.mrf.mxu1  ;;  %v7532_v15 = vpop.f32.mrf.mxu0 }
 0x286   :  { %v7537_v16 = vadd.f32 %v7369_v0, %v1084_v48 }
 0x287   :  { %v5173_v6 = vpop.f32.mrf.mxu1  ;;  %v7539_v57 = vpop.f32.mrf.mxu0 }
 0x288   :  { %v7544_v34 = vadd.f32 %v5173_v6, %v7417_v27 }
 0x289   :  { %v1094_v7 = vpop.f32.mrf.mxu1  ;;  %v7546_v42 = vpop.f32.mrf.mxu0 }
 0x28a   :  { %v7551_v46 = vadd.f32 %v7399_v47, %v1094_v7 }
 0x28b   :  { %v5176_v0 = vpop.f32.mrf.mxu1  ;;  %v7553_v61 = vpop.f32.mrf.mxu0 }
 0x28c   :  { %v7558_v13 = vadd.f32 %v5176_v0, %v7428_v3 }
 0x28d   :  { %v1104_v27 = vpop.f32.mrf.mxu1  ;;  %v7560_v63 = vpop.f32.mrf.mxu0 }
 0x28e   :  { %v7565_v31 = vadd.f32 %v7426_v41, %v1104_v27 }
 0x28f   :  { %v5179_v47 = vpop.f32.mrf.mxu1  ;;  %v7567_v36 = vpop.f32.mrf.mxu0 }
 0x290   :  { %v7572_v26 = vadd.f32 %v5179_v47, %v7434_v12 }
 0x291   :  { %v1114_v3 = vpop.f32.mrf.mxu1  ;;  %v7574_v48 = vpop.f32.mrf.mxu0 }
 0x292   :  { %v7579_v7 = vadd.f32 %v7432_v20, %v1114_v3 }
 0x293   :  { %v5182_v41 = vpop.f32.mrf.mxu1  ;;  %v7581_v0 = vpop.f32.mrf.mxu0 }
 0x294   :  { %v7586_v17 = vadd.f32 %v5182_v41, %v7438_v39 }
 0x295   :  { %v1124_v12 = vpop.f32.mrf.mxu1  ;;  %v7588_v47 = vpop.f32.mrf.mxu0 }
 0x296   :  { %8925 = vst [vmem:[#allocation6_spill] sm:$0xff] %v7586_v17  ;;  %v7593_v6 = vadd.f32 %v7436_v8, %v1124_v12 }
 0x297   :  { %v5185_v20 = vpop.f32.mrf.mxu1  ;;  %v7595_v3 = vpop.f32.mrf.mxu0 }
 0x298   :  { %v7600_v27 = vadd.f32 %v5185_v20, %v7444_v18 }
 0x299   :  { %v1134_v39 = vpop.f32.mrf.mxu1  ;;  %v4542_v41 = vpop.f32.mrf.mxu0 }
 0x29a   :  { %8926 = vst [vmem:[#allocation7_spill] sm:$0xff] %v7600_v27  ;;  %v7605_v9 = vadd.f32 %v7440_v60, %v1134_v39 }
 0x29b   :  { %v4430_v5 = vpop.f32.mrf.mxu1  ;;  %v4543_v8 = vpop.f32.mrf.mxu0 }
 0x29c   :  { %v7613_v12 = vadd.f32 %v4543_v8, %v4542_v41 }
 0x29d   :  { %v4431_v20 = vpop.f32.mrf.mxu1  ;;  %v4545_v25 = vpop.f32.mrf.mxu0 }
 0x29e   :  { %v4432_v29 = vadd.f32 %v4431_v20, %v4430_v5 }
 0x29f   :  { %v4433_v62 = vpop.f32.mrf.mxu1  ;;  %v4546_v60 = vpop.f32.mrf.mxu0 }
 0x2a0   :  { %v1420_v39 = vadd.f32 %v4432_v29, %v7497_v56  ;;  %v7616_v2 = vadd.f32 %v4546_v60, %v4545_v25  ;;  %v8928_v56 = vmax.f32 %v7448_v43, %v7500_v22 }
 0x2a1   :  { %v4434_v10 = vpop.f32.mrf.mxu1  ;;  %v4548_v40 = vpop.f32.mrf.mxu0 }
 0x2a2   :  { %v4435_v49 = vadd.f32 %v4434_v10, %v4433_v62  ;;  %v7621_v17 = vmax.f32 %v8927_v4, %v1420_v39 }
 0x2a3   :  { %v4436_v18 = vpop.f32.mrf.mxu1  ;;  %v4549_v41 = vpop.f32.mrf.mxu0 }
 0x2a4   :  { %v1425_v8 = vadd.f32 %v7491_v11, %v4435_v49  ;;  %v7624_v59 = vadd.f32 %v4549_v41, %v4548_v40  ;;  %v8929_v11 = vmax.f32 %v7458_v51, %v7523_v58 }
 0x2a5   :  { %v4437_v5 = vpop.f32.mrf.mxu1  ;;  %v4551_v20 = vpop.f32.mrf.mxu0 }
 0x2a6   :  { %v4438_v27 = vadd.f32 %v4437_v5, %v4436_v18  ;;  %v7629_v25 = vmax.f32 %v8928_v56, %v1425_v8 }
 0x2a7   :  { %v4439_v10 = vpop.f32.mrf.mxu1  ;;  %v4552_v62 = vpop.f32.mrf.mxu0 }
 0x2a8   :  { %v1430_v24 = vadd.f32 %v4438_v27, %v7511_v52  ;;  %v7632_v4 = vadd.f32 %v4552_v62, %v4551_v20  ;;  %v8930_v27 = vmax.f32 %v7456_v30, %v7516_v1 }
 0x2a9   :  { %v4440_v55 = vpop.f32.mrf.mxu1  ;;  %v4554_v29 = vpop.f32.mrf.mxu0 }
 0x2aa   :  { %v4441_v60 = vadd.f32 %v4440_v55, %v4439_v10  ;;  %v7637_v40 = vmax.f32 %v8929_v11, %v1430_v24  ;;  %v8931_v10 = vmax.f32 %v7466_v38, %v7537_v16 }
 0x2ab   :  { %v4442_v49 = vpop.f32.mrf.mxu1  ;;  %v4555_v18 = vpop.f32.mrf.mxu0 }
 0x2ac   :  { %v1435_v43 = vadd.f32 %v7504_v23, %v4441_v60  ;;  %v7640_v22 = vadd.f32 %v4555_v18, %v4554_v29 }
 0x2ad   :  { %v4443_v39 = vpop.f32.mrf.mxu1  ;;  %v7642_v41 = vpop.f32.mrf.mxu0 }
 0x2ae   :  { %v4444_v52 = vadd.f32 %v4443_v39, %v4442_v49  ;;  %v7647_v8 = vmax.f32 %v8930_v27, %v1435_v43 }
 0x2af   :  { %v4445_v5 = vpop.f32.mrf.mxu1  ;;  %v7649_v20 = vpop.f32.mrf.mxu0 }
 0x2b0   :  { %v1440_v51 = vadd.f32 %v4444_v52, %v7525_v28  ;;  %v8932_v28 = vmax.f32 %v7464_v32, %v7530_v53 }
 0x2b1   :  { %v4446_v58 = vpop.f32.mrf.mxu1  ;;  %v7652_v56 = vpop.f32.mrf.mxu0 }
 0x2b2   :  { %v4447_v23 = vadd.f32 %v4446_v58, %v4445_v5  ;;  %v7657_v62 = vmax.f32 %v8931_v10, %v1440_v51  ;;  %v8934_v58 = vmax.f32 %v7472_v50, %v7544_v34 }
 0x2b3   :  { %v4448_v24 = vpop.f32.mrf.mxu1  ;;  %v7659_v55 = vpop.f32.mrf.mxu0 }
 0x2b4   :  { %v1445_v30 = vadd.f32 %v7518_v45, %v4447_v23  ;;  %v8933_v45 = vmax.f32 %v7474_v35, %v7551_v46 }
 0x2b5   :  { %v4449_v1 = vpop.f32.mrf.mxu1  ;;  %v7662_v29 = vpop.f32.mrf.mxu0 }
 0x2b6   :  { %v4450_v60 = vadd.f32 %v4449_v1, %v4448_v24  ;;  %v7667_v11 = vmax.f32 %v8932_v28, %v1445_v30  ;;  %v8935_v30 = vmax.f32 %v7480_v33, %v7565_v31 }
 0x2b7   :  { %v4451_v49 = vpop.f32.mrf.mxu1  ;;  %v7669_v18 = vpop.f32.mrf.mxu0 }
 0x2b8   :  { %v1450_v38 = vadd.f32 %v4450_v60, %v7539_v57 }
 0x2b9   :  { %v4452_v16 = vpop.f32.mrf.mxu1  ;;  %v7672_v43 = vpop.f32.mrf.mxu0 }
 0x2ba   :  { %v4453_v39 = vadd.f32 %v4452_v16, %v4451_v49  ;;  %v7677_v52 = vmax.f32 %v8933_v45, %v1450_v38  ;;  %v8936_v49 = vmax.f32 %v7478_v21, %v7558_v13  ;;  %v8937_v45 = vmax.f32 %v7485_v19, %v7579_v7 }
 0x2bb   :  { %v4454_v27 = vpop.f32.mrf.mxu1  ;;  %v7679_v5 = vpop.f32.mrf.mxu0  ;;  %v8939_v19 = vmax.f32 %v7489_v37, %v7593_v6 }
 0x2bc   :  { %v1455_v32 = vadd.f32 %v7532_v15, %v4453_v39 }
 0x2bd   :  { %v4455_v53 = vpop.f32.mrf.mxu1  ;;  %v7687_v10 = vpop.f32.mrf.mxu0 }
 0x2be   :  { %v4456_v51 = vadd.f32 %v4455_v53, %v4454_v27  ;;  %v7685_v57 = vmax.f32 %v8934_v58, %v1455_v32 }
 0x2bf   :  { %v4457_v23 = vpop.f32.mrf.mxu1  ;;  %v7695_v60 = vpop.f32.mrf.mxu0 }
 0x2c0   :  { %v1460_v24 = vadd.f32 %v4456_v51, %v7553_v61  ;;  %v8938_v51 = vmax.f32 %v7483_v44, %v7572_v26 }
 0x2c1   :  { %v4458_v35 = vpop.f32.mrf.mxu1  ;;  %v7703_v16 = vpop.f32.mrf.mxu0 }
 0x2c2   :  { %v4459_v46 = vadd.f32 %v4458_v35, %v4457_v23  ;;  %v7693_v1 = vmax.f32 %v8935_v30, %v1460_v24 }
 0x2c3   :  { %v4460_v15 = vpop.f32.mrf.mxu1  ;;  %v7711_v32 = vpop.f32.mrf.mxu0 }
 0x2c4   :  { %v1465_v28 = vadd.f32 %v7546_v42, %v4459_v46 }
 0x2c5   :  { %v4461_v50 = vpop.f32.mrf.mxu1  ;;  %v4575_v23 = vpop.f32.mrf.mxu0 }
 0x2c6   :  { %v4462_v34 = vadd.f32 %v4461_v50, %v4460_v15  ;;  %v7701_v38 = vmax.f32 %v8936_v49, %v1465_v28 }
 0x2c7   :  { %v4463_v61 = vpop.f32.mrf.mxu1  ;;  %v4576_v30 = vpop.f32.mrf.mxu0 }
 0x2c8   :  { %v1470_v39 = vadd.f32 %v4462_v34, %v7567_v36  ;;  %v8940_v34 = vmax.f32 %v7495_v14, %v7605_v9 }
 0x2c9   :  { %v4464_v33 = vpop.f32.mrf.mxu1  ;;  %v4578_v50 = vpop.f32.mrf.mxu0 }
 0x2ca   :  { %v4465_v31 = vadd.f32 %v4464_v33, %v4463_v61  ;;  %v7709_v27 = vmax.f32 %v8937_v45, %v1470_v39 }
 0x2cb   :  { %v4466_v42 = vpop.f32.mrf.mxu1  ;;  %v4579_v61 = vpop.f32.mrf.mxu0 }
 0x2cc   :  { %v1475_v53 = vadd.f32 %v7560_v63, %v4465_v31 }
 0x2cd   :  { %v4467_v21 = vpop.f32.mrf.mxu1  ;;  %v4581_v45 = vpop.f32.mrf.mxu0 }
 0x2ce   :  { %v4468_v13 = vadd.f32 %v4467_v21, %v4466_v42  ;;  %v7717_v58 = vmax.f32 %v8938_v51, %v1475_v53 }
 0x2cf   :  { %v4469_v36 = vpop.f32.mrf.mxu1  ;;  %v4582_v21 = vpop.f32.mrf.mxu0 }
 0x2d0   :  { %v1480_v24 = vadd.f32 %v4468_v13, %v7581_v0 }
 0x2d1   :  { %v4470_v35 = vpop.f32.mrf.mxu1 }
 0x2d2   :  { %v7723_v7 = vmax.f32 %v8939_v19, %v1480_v24 }
 0x2d3   :  { %v4472_v46 = vpop.f32.mrf.mxu1 }
 0x2d5   :  { %v4473_v63 = vpop.f32.mrf.mxu1 }
 0x2d6   :  { %v4474_v15 = vadd.f32 %v4473_v63, %v4472_v46 }
 0x2d7   :  { %v4475_v28 = vpop.f32.mrf.mxu1 }
 0x2d8   :  { %v1490_v44 = vadd.f32 %v4474_v15, %v7595_v3 }
 0x2d9   :  { %v4476_v26 = vpop.f32.mrf.mxu1 }
 0x2da   :  { %v1512_v49 = vmax.f32 %v8940_v34, %v1490_v44  ;;  %v4477_v15 = vadd.f32 %v4476_v26, %v4475_v28  ;;  %v4580_v28 = vadd.f32 %v4579_v61, %v4578_v50 }
 0x2db   :  { %v5276_v0 = vpop.f32.mrf.mxu1 }
 0x2dc   :  { %v1780_v39 = vadd.f32 %v5276_v0, %v7616_v2  ;;  %v4471_v0 = vadd.f32 %v4470_v35, %v4469_v36  ;;  %v4577_v35 = vadd.f32 %v4576_v30, %v4575_v23  ;;  %v4571_v30 = vadd.f32 %v7695_v60, %v7687_v10 }
 0x2dd   :  { %v1774_v37 = vpop.f32.mrf.mxu1  ;;  %v4565_v10 = vadd.f32 %v7669_v18, %v7662_v29  ;;  %v4559_v29 = vadd.f32 %v7649_v20, %v7642_v41 }
 0x2de   :  { %v7731_v6 = vmax.f32 %v7629_v25, %v1780_v39  ;;  %v1775_v33 = vadd.f32 %v7613_v12, %v1774_v37 }
 0x2df   :  { %v5279_v31 = vpop.f32.mrf.mxu1 }
 0x2e0   :  { %8941 = vst [vmem:[#allocation8_spill] sm:$0xff] %v7731_v6  ;;  %v7735_v42 = vmax.f32 %v7621_v17, %v1775_v33  ;;  %v1790_v3 = vadd.f32 %v5279_v31, %v7632_v4  ;;  %v4584_v17 = vpop.f32.mrf.mxu0  ;;  %v4583_v33 = vadd.f32 %v4582_v21, %v4581_v45 }
 0x2e1   :  { %v1784_v53 = vpop.f32.mrf.mxu1 }
 0x2e2   :  { %8942 = vst [vmem:[#allocation9_spill] sm:$0xff] %v7735_v42  ;;  %v7739_v14 = vmax.f32 %v7647_v8, %v1790_v3  ;;  %v1785_v9 = vadd.f32 %v7624_v59, %v1784_v53  ;;  %v4585_v19 = vpop.f32.mrf.mxu0  ;;  %v8943_v53 = vld [vmem:[#allocation7_spill] sm:$0xff] }
 0x2e3   :  { %v7742_v2 = vpop.f32.mrf.mxu1  ;;  %v4586_v3 = vadd.f32 %v4585_v19, %v4584_v17  ;;  %v3977_v17 = vld [vmem:[%s8909_s5 + $0xe0] sm:$0xff]  ;;  %v3974_v19 = vld [vmem:[%s8909_s5 + $0xc8] sm:$0xff] }
 0x2e4   :  { %v7745_v25 = vmax.f32 %v7637_v40, %v1785_v9  ;;  %v4587_v63 = vpop.f32.mrf.mxu0  ;;  %v8944_v9 = vmax.f32 %v7493_v54, %v8943_v53  ;;  %v8948_v54 = vmov 0.0   ;;  %v1952_v53 = vld [vmem:[%s8909_s5 + $0x60] sm:$0xff] }
 0x2e5   :  { %v1794_v12 = vpop.f32.mrf.mxu1 }
 0x2e6   :  { %v1795_v13 = vadd.f32 %v7640_v22, %v1794_v12  ;;  %v4588_v40 = vpop.f32.mrf.mxu0  ;;  %v1495_v22 = vadd.f32 %v7588_v47, %v4477_v15  ;;  %v8945_v47 = vld [vmem:[#allocation5_spill] sm:$0xff]  ;;  %v8946_v15 = vld [vmem:[#allocation6_spill] sm:$0xff] }
 0x2e7   :  { %v7748_v51 = vpop.f32.mrf.mxu1  ;;  %v4589_v37 = vadd.f32 %v4588_v40, %v4587_v63  ;;  %v8947_v63 = vmax.f32 %v8945_v47, %v8946_v15  ;;  %v1944_v47 = vld [vmem:[%s8909_s5 + $0x20] sm:$0xff]  ;;  %v1943_v15 = vld [vmem:[%s8909_s5 + $0x18] sm:$0xff] }
 0x2e8   :  { %v7751_v4 = vmax.f32 %v7657_v62, %v1795_v13  ;;  %v1485_v62 = vadd.f32 %v7574_v48, %v4471_v0  ;;  %v1513_v12 = vmax.f32 %v8944_v9, %v1495_v22  ;;  %v4574_v48 = vadd.f32 %v7711_v32, %v7703_v16  ;;  %v3969_v0 = vld [vmem:[%s8909_s5 + $0xa0] sm:$0xff]  ;;  %v3968_v22 = vld [vmem:[%s8909_s5 + $0x98] sm:$0xff] }
 0x2e9   :  { %v7753_v24 = vpop.f32.mrf.mxu1  ;;  %v4568_v16 = vadd.f32 %v7679_v5, %v7672_v43  ;;  %v4562_v43 = vadd.f32 %v7659_v55, %v7652_v56  ;;  %v1810_v5 = vadd.f32 %v7748_v51, %v4565_v10  ;;  %v1800_v55 = vadd.f32 %v7742_v2, %v4559_v29  ;;  %v3979_v2 = vld [vmem:[%s8909_s5 + $0xf0] sm:$0xff]  ;;  %v3978_v51 = vld [vmem:[%s8909_s5 + $0xe8] sm:$0xff]  ;;  %v1951_v9 = vld [vmem:[%s8909_s5 + $0x58] sm:$0xff] }
 0x2ea   :  { %v1511_v45 = vmax.f32 %v8947_v63, %v1485_v62  ;;  %v1954_v62 = vld [vmem:[%s8909_s5 + $0x70] sm:$0xff]  ;;  %v3997_v10 = vld [vmem:[%s8909_s5 + $0x178] sm:$0xff] }
 0x2eb   :  { %v5288_v8 = vpop.f32.mrf.mxu1  ;;  %v1805_v18 = vadd.f32 %v4562_v43, %v7753_v24  ;;  %v7842_v20 = vmax.f32 %v7667_v11, %v1800_v55  ;;  %v8949_v11 = vld [vmem:[#allocation8_spill] sm:$0xff]  ;;  %v1942_v63 = vld [vmem:[%s8909_s5 + $0x10] sm:$0xff]  ;;  %v3995_v43 = vld [vmem:[%s8909_s5 + $0x168] sm:$0xff] }
 0x2ec   :  { %v1820_v32 = vadd.f32 %v5288_v8, %v4571_v30  ;;  %v3976_v24 = vld [vmem:[%s8909_s5 + $0xd8] sm:$0xff]  ;;  %v3975_v8 = vld [vmem:[%s8909_s5 + $0xd0] sm:$0xff]  ;;  %v3991_v55 = vld [vmem:[%s8909_s5 + $0x148] sm:$0xff] }
 0x2ed   :  { %v1814_v59 = vpop.f32.mrf.mxu1  ;;  %v7835_v41 = vmax.f32 %v7677_v52, %v1805_v18  ;;  %v3964_v52 = vld [vmem:[%s8908_s4 + $0x8] sm:$0xff]  ;;  %v3993_v29 = vld [vmem:[%s8909_s5 + $0x158] sm:$0xff]  ;;  %v3992_v18 = vld [vmem:[%s8909_s5 + $0x150] sm:$0xff] }
 0x2ee   :  { %v1815_v60 = vadd.f32 %v4568_v16, %v1814_v59  ;;  %v3973_v59 = vld [vmem:[%s8909_s5 + $0xc0] sm:$0xff]  ;;  %v3981_v16 = vld [vmem:[%s8908_s4 + $0x10] sm:$0xff] }
 0x2ef   :  { %v5291_v46 = vpop.f32.mrf.mxu1 }
 0x2f0   :  { %v1830_v50 = vadd.f32 %v5291_v46, %v4577_v35  ;;  %v7820_v56 = vmax.f32 %v7693_v1, %v1815_v60  ;;  %v8950_v1 = vld [vmem:[#allocation9_spill] sm:$0xff]  ;;  %v3972_v46 = vld [vmem:[%s8909_s5 + $0xb8] sm:$0xff]  ;;  %v3996_v60 = vld [vmem:[%s8909_s5 + $0x170] sm:$0xff] }
 0x2f1   :  { %v1824_v44 = vpop.f32.mrf.mxu1  ;;  %v1945_v35 = vld [vmem:[%s8909_s5 + $0x28] sm:$0xff] }
 0x2f3   :  { %v5294_v34 = vpop.f32.mrf.mxu1 }
 0x2f4   :  { %v1840_v26 = vadd.f32 %v5294_v34, %v4583_v33  ;;  %v3970_v34 = vld [vmem:[%s8909_s5 + $0xa8] sm:$0xff]  ;;  %v3965_v33 = vld [vmem:[%s8909_s5 + $0x80] sm:$0xff] }
 0x2f5   :  { %v1834_v39 = vpop.f32.mrf.mxu1 }
 0x2f6   :  { %v1835_v21 = vadd.f32 %v4580_v28, %v1834_v39  ;;  %v7773_v23 = vmax.f32 %v1511_v45, %v1840_v26  ;;  %v3967_v39 = vld [vmem:[%s8909_s5 + $0x90] sm:$0xff]  ;;  %v1948_v28 = vld [vmem:[%s8909_s5 + $0x40] sm:$0xff]  ;;  %v1947_v26 = vld [vmem:[%s8909_s5 + $0x38] sm:$0xff] }
 0x2f7   :  { %v5297_v31 = vpop.f32.mrf.mxu1  ;;  %v1941_v45 = vld [vmem:[%s8909_s5 + $0x8] sm:$0xff] }
 0x2f8   :  { %v1850_v13 = vadd.f32 %v5297_v31, %v4589_v37  ;;  %v7782_v61 = vmax.f32 %v7723_v7, %v1835_v21  ;;  %v3966_v37 = vld [vmem:[%s8909_s5 + $0x88] sm:$0xff]  ;;  %v1955_v31 = vld [vmem:[%s8909_s5 + $0x78] sm:$0xff]  ;;  %v1940_v21 = vld [vmem:[%s8909_s5] sm:$0xff] }
 0x2f9   :  { %v1844_v42 = vpop.f32.mrf.mxu1 }
 0x2fa   :  { %v7760_v6 = vmax.f32 %v1513_v12, %v1850_v13  ;;  %v1845_v36 = vadd.f32 %v4586_v3, %v1844_v42  ;;  %v7791_v42 = vmax.f32 %v7717_v58, %v1830_v50  ;;  %v7810_v58 = vmax.f32 %v7701_v38, %v1820_v32  ;;  %v1953_v3 = vld [vmem:[%s8909_s5 + $0x68] sm:$0xff]  ;;  %v1950_v12 = vld [vmem:[%s8909_s5 + $0x50] sm:$0xff]  ;;  %v3998_v32 = vld [vmem:[%s8908_s4 + $0x18] sm:$0xff] }
 0x2fb   :  { %v7828_v38 = vmax.f32 %v7685_v57, %v1810_v5  ;;  %v1869_v57 = vld [vmem:[%s8908_s4] sm:$0xff]  ;;  %v1949_v13 = vld [vmem:[%s8909_s5 + $0x48] sm:$0xff] }
 0x2fc   :  { %v7765_v40 = vmax.f32 %v1512_v49, %v1845_v36  ;;  %5299 = vmatpush3.msra.mxu1 %v7760_v6  ;;  %5334 = vmatpush3.msra.mxu0 %v7760_v6  ;;  %v1825_v49 = vadd.f32 %v4574_v48, %v1824_v44  ;;  %v3971_v44 = vld [vmem:[%s8909_s5 + $0xb0] sm:$0xff]  ;;  %v3994_v5 = vld [vmem:[%s8909_s5 + $0x160] sm:$0xff] }
 0x2fd   :  { %5300 = vmatprep.subr.mxu1 %v8948_v54  ;;  %5335 = vmatprep.subr.mxu0 %v8948_v54  ;;  %v1946_v36 = vld [vmem:[%s8909_s5 + $0x30] sm:$0xff] }
 0x2fe   :  { %5301 = vmatpush3.msra.mxu1 %v7765_v40  ;;  %5336 = vmatpush3.msra.mxu0 %v7765_v40  ;;  %v7800_v7 = vmax.f32 %v7709_v27, %v1825_v49  ;;  %v3980_v27 = vld [vmem:[%s8909_s5 + $0xf8] sm:$0xff] }
 0x2ff   :  { %5302 = vmatprep.subr.mxu1 %v8948_v54  ;;  %5337 = vmatprep.subr.mxu0 %v8948_v54 }
 0x300   :  { %5303 = vmatpush3.msra.mxu1 %v7773_v23  ;;  %5338 = vmatpush3.msra.mxu0 %v7773_v23 }
 0x301   :  { %5304 = vmatprep.subr.mxu1 %v8948_v54  ;;  %5339 = vmatprep.subr.mxu0 %v8948_v54 }
 0x302   :  { %5305 = vmatpush3.msra.mxu1 %v7782_v61  ;;  %5340 = vmatpush3.msra.mxu0 %v7782_v61 }
 0x303   :  { %5306 = vmatprep.subr.mxu1 %v8948_v54  ;;  %5341 = vmatprep.subr.mxu0 %v8948_v54 }
 0x304   :  { %5307 = vmatpush3.msra.mxu1 %v7791_v42  ;;  %5342 = vmatpush3.msra.mxu0 %v7791_v42 }
 0x305   :  { %5308 = vmatprep.subr.mxu1 %v8948_v54  ;;  %5343 = vmatprep.subr.mxu0 %v8948_v54 }
 0x306   :  { %5309 = vmatpush3.msra.mxu1 %v7800_v7  ;;  %5344 = vmatpush3.msra.mxu0 %v7800_v7 }
 0x307   :  { %5310 = vmatprep.subr.mxu1 %v8948_v54  ;;  %5345 = vmatprep.subr.mxu0 %v8948_v54 }
 0x308   :  { %5311 = vmatpush3.msra.mxu1 %v7810_v58  ;;  %5346 = vmatpush3.msra.mxu0 %v7810_v58 }
 0x309   :  { %5312 = vmatprep.subr.mxu1 %v8948_v54  ;;  %5347 = vmatprep.subr.mxu0 %v8948_v54 }
 0x30a   :  { %5313 = vmatpush3.msra.mxu1 %v7820_v56  ;;  %5348 = vmatpush3.msra.mxu0 %v7820_v56 }
 0x30b   :  { %5314 = vmatprep.subr.mxu1 %v8948_v54  ;;  %5349 = vmatprep.subr.mxu0 %v8948_v54 }
 0x30c   :  { %5315 = vmatpush3.msra.mxu1 %v7828_v38  ;;  %5350 = vmatpush3.msra.mxu0 %v7828_v38 }
 0x30d   :  { %5316 = vmatprep.subr.mxu1 %v8948_v54  ;;  %5351 = vmatprep.subr.mxu0 %v8948_v54 }
 0x30e   :  { %5317 = vmatpush3.msra.mxu1 %v7835_v41  ;;  %5352 = vmatpush3.msra.mxu0 %v7835_v41 }
 0x30f   :  { %5318 = vmatprep.subr.mxu1 %v8948_v54  ;;  %5353 = vmatprep.subr.mxu0 %v8948_v54 }
 0x310   :  { %5319 = vmatpush3.msra.mxu1 %v7842_v20  ;;  %5354 = vmatpush3.msra.mxu0 %v7842_v20 }
 0x311   :  { %5320 = vmatprep.subr.mxu1 %v8948_v54  ;;  %5355 = vmatprep.subr.mxu0 %v8948_v54 }
 0x312   :  { %5321 = vmatpush3.msra.mxu1 %v7751_v4  ;;  %5356 = vmatpush3.msra.mxu0 %v7751_v4 }
 0x313   :  { %5322 = vmatprep.subr.mxu1 %v8948_v54  ;;  %5357 = vmatprep.subr.mxu0 %v8948_v54 }
 0x314   :  { %5323 = vmatpush3.msra.mxu1 %v7739_v14  ;;  %5358 = vmatpush3.msra.mxu0 %v7739_v14 }
 0x315   :  { %5324 = vmatprep.subr.mxu1 %v8948_v54  ;;  %5359 = vmatprep.subr.mxu0 %v8948_v54 }
 0x316   :  { %5325 = vmatpush3.msra.mxu1 %v7745_v25  ;;  %5360 = vmatpush3.msra.mxu0 %v7745_v25 }
 0x317   :  { %5326 = vmatprep.subr.mxu1 %v8948_v54  ;;  %5361 = vmatprep.subr.mxu0 %v8948_v54 }
 0x318   :  { %5327 = vmatpush3.msra.mxu1 %v8949_v11  ;;  %5362 = vmatpush3.msra.mxu0 %v8949_v11 }
 0x319   :  { %5328 = vmatprep.subr.mxu1 %v8948_v54  ;;  %5363 = vmatprep.subr.mxu0 %v8948_v54 }
 0x31a   :  { %5329 = vmatpush3.msra.mxu1 %v8950_v1  ;;  %5364 = vmatpush3.msra.mxu0 %v8950_v1 }
 0x31b   :  { %5366 = vmatmul.mubr.f32.vlgmr.msra.gmra.mxu0 %v3964_v52  ;;  %5331 = vmatmul.mubr.f32.vlgmr.msra.gmra.mxu1 %v1869_v57  ;;  %v3990_v52 = vld [vmem:[%s8909_s5 + $0x140] sm:$0xff]  ;;  %v3989_v57 = vld [vmem:[%s8909_s5 + $0x138] sm:$0xff] }
 0x31c   :  { %5368 = vmatprep.subr.mxu1 %v8948_v54  ;;  %5403 = vmatprep.subr.mxu0 %v8948_v54 }
 0x31d   :  { %5369 = vmatpush3.msra.mxu1 %v3980_v27  ;;  %5400 = vmatprep.mubr.msk.f32.mxu1 %vm6044_vm0, %v8948_v54  ;;  %v3988_v27 = vld [vmem:[%s8909_s5 + $0x130] sm:$0xff] }
 0x31e   :  { %5370 = vmatprep.subr.mxu1 %v8948_v54  ;;  %5435 = vmatprep.mubr.msk.f32.mxu0 %vm6044_vm0, %v8948_v54 }
 0x31f   :  { %5371 = vmatpush3.msra.mxu1 %v3979_v2  ;;  %5404 = vmatpush3.msra.mxu0 %v1955_v31  ;;  %v3987_v2 = vld [vmem:[%s8909_s5 + $0x128] sm:$0xff]  ;;  %v4001_v31 = vld [vmem:[%s8909_s5 + $0x190] sm:$0xff] }
 0x320   :  { %5372 = vmatprep.subr.mxu1 %v8948_v54  ;;  %5405 = vmatprep.subr.mxu0 %v8948_v54 }
 0x321   :  { %5373 = vmatpush3.msra.mxu1 %v3978_v51  ;;  %5406 = vmatpush3.msra.mxu0 %v1954_v62  ;;  %v3986_v51 = vld [vmem:[%s8909_s5 + $0x120] sm:$0xff]  ;;  %v4000_v62 = vld [vmem:[%s8909_s5 + $0x188] sm:$0xff] }
 0x322   :  { %5374 = vmatprep.subr.mxu1 %v8948_v54  ;;  %5407 = vmatprep.subr.mxu0 %v8948_v54 }
 0x323   :  { %5375 = vmatpush3.msra.mxu1 %v3977_v17  ;;  %5408 = vmatpush3.msra.mxu0 %v1953_v3  ;;  %v3985_v17 = vld [vmem:[%s8909_s5 + $0x118] sm:$0xff]  ;;  %v3999_v3 = vld [vmem:[%s8909_s5 + $0x180] sm:$0xff] }
 0x324   :  { %5376 = vmatprep.subr.mxu1 %v8948_v54  ;;  %5409 = vmatprep.subr.mxu0 %v8948_v54 }
 0x325   :  { %5377 = vmatpush3.msra.mxu1 %v3976_v24  ;;  %5410 = vmatpush3.msra.mxu0 %v1952_v53  ;;  %v3984_v24 = vld [vmem:[%s8909_s5 + $0x110] sm:$0xff]  ;;  %v4031_v53 = vld [vmem:[%s8909_s5 + $0x278] sm:$0xff] }
 0x326   :  { %5378 = vmatprep.subr.mxu1 %v8948_v54  ;;  %5411 = vmatprep.subr.mxu0 %v8948_v54 }
 0x327   :  { %5379 = vmatpush3.msra.mxu1 %v3975_v8  ;;  %5412 = vmatpush3.msra.mxu0 %v1951_v9  ;;  %v4015_v8 = vld [vmem:[%s8908_s4 + $0x20] sm:$0xff] }
 0x328   :  { %5380 = vmatprep.subr.mxu1 %v8948_v54  ;;  %5413 = vmatprep.subr.mxu0 %v8948_v54 }
 0x329   :  { %5381 = vmatpush3.msra.mxu1 %v3974_v19  ;;  %5414 = vmatpush3.msra.mxu0 %v1950_v12  ;;  %v3983_v19 = vld [vmem:[%s8909_s5 + $0x108] sm:$0xff]  ;;  %v4030_v12 = vld [vmem:[%s8909_s5 + $0x270] sm:$0xff] }
 0x32a   :  { %5382 = vmatprep.subr.mxu1 %v8948_v54  ;;  %5415 = vmatprep.subr.mxu0 %v8948_v54 }
 0x32b   :  { %5383 = vmatpush3.msra.mxu1 %v3973_v59  ;;  %5416 = vmatpush3.msra.mxu0 %v1949_v13  ;;  %v3982_v59 = vld [vmem:[%s8909_s5 + $0x100] sm:$0xff] }
 0x32c   :  { %5384 = vmatprep.subr.mxu1 %v8948_v54  ;;  %5417 = vmatprep.subr.mxu0 %v8948_v54 }
 0x32d   :  { %5385 = vmatpush3.msra.mxu1 %v3972_v46  ;;  %5418 = vmatpush3.msra.mxu0 %v1948_v28  ;;  %v4032_v46 = vld [vmem:[%s8908_s4 + $0x28] sm:$0xff] }
 0x32e   :  { %5386 = vmatprep.subr.mxu1 %v8948_v54  ;;  %5419 = vmatprep.subr.mxu0 %v8948_v54  ;;  %v4029_v28 = vld [vmem:[%s8909_s5 + $0x268] sm:$0xff] }
 0x32f   :  { %5387 = vmatpush3.msra.mxu1 %v3971_v44  ;;  %5420 = vmatpush3.msra.mxu0 %v1947_v26  ;;  %v4049_v44 = vld [vmem:[%s8908_s4 + $0x30] sm:$0xff]  ;;  %v4028_v26 = vld [vmem:[%s8909_s5 + $0x260] sm:$0xff] }
 0x330   :  { %5388 = vmatprep.subr.mxu1 %v8948_v54  ;;  %5421 = vmatprep.subr.mxu0 %v8948_v54 }
 0x331   :  { %5389 = vmatpush3.msra.mxu1 %v3970_v34  ;;  %5422 = vmatpush3.msra.mxu0 %v1946_v36  ;;  %v4066_v34 = vld [vmem:[%s8908_s4 + $0x38] sm:$0xff] }
 0x332   :  { %5390 = vmatprep.subr.mxu1 %v8948_v54  ;;  %5423 = vmatprep.subr.mxu0 %v8948_v54  ;;  %v4027_v36 = vld [vmem:[%s8909_s5 + $0x258] sm:$0xff] }
 0x333   :  { %5391 = vmatpush3.msra.mxu1 %v3969_v0  ;;  %5424 = vmatpush3.msra.mxu0 %v1945_v35  ;;  %v4026_v35 = vld [vmem:[%s8909_s5 + $0x250] sm:$0xff] }
 0x334   :  { %5392 = vmatprep.subr.mxu1 %v8948_v54  ;;  %5425 = vmatprep.subr.mxu0 %v8948_v54 }
 0x335   :  { %5393 = vmatpush3.msra.mxu1 %v3968_v22  ;;  %5426 = vmatpush3.msra.mxu0 %v1944_v47  ;;  %v4025_v47 = vld [vmem:[%s8909_s5 + $0x248] sm:$0xff] }
 0x336   :  { %5394 = vmatprep.subr.mxu1 %v8948_v54  ;;  %5427 = vmatprep.subr.mxu0 %v8948_v54 }
 0x337   :  { %5395 = vmatpush3.msra.mxu1 %v3967_v39  ;;  %5428 = vmatpush3.msra.mxu0 %v1943_v15  ;;  %v4024_v15 = vld [vmem:[%s8909_s5 + $0x240] sm:$0xff] }
 0x338   :  { %5396 = vmatprep.subr.mxu1 %v8948_v54  ;;  %5429 = vmatprep.subr.mxu0 %v8948_v54 }
 0x339   :  { %5397 = vmatpush3.msra.mxu1 %v3966_v37  ;;  %5430 = vmatpush3.msra.mxu0 %v1942_v63  ;;  %v4023_v63 = vld [vmem:[%s8909_s5 + $0x238] sm:$0xff] }
 0x33a   :  { %5398 = vmatprep.subr.mxu1 %v8948_v54  ;;  %5431 = vmatprep.subr.mxu0 %v8948_v54 }
 0x33b   :  { %5399 = vmatpush3.msra.mxu1 %v3965_v33  ;;  %5432 = vmatpush3.msra.mxu0 %v1941_v45  ;;  %v4022_v45 = vld [vmem:[%s8909_s5 + $0x230] sm:$0xff] }
 0x33c   :  { %5438 = vmatprep.subr.mxu1 %v8948_v54  ;;  %5433 = vmatprep.subr.mxu0 %v8948_v54 }
 0x33d   :  { %5434 = vmatpush3.msra.mxu0 %v1940_v21  ;;  %v4021_v21 = vld [vmem:[%s8909_s5 + $0x228] sm:$0xff] }
 0x33e   :  { %5473 = vmatprep.subr.mxu0 %v8948_v54 }
 0x3db   :  { %v2024_v48 = vpop.f32.mrf.mxu0  ;;  %v1936_v50 = vpop.f32.mrf.mxu1 }
 0x3dc   :  { %5401 = vmatmul.mubr.f32.vlgmr.msra.gmra.mxu1 %v2024_v48  ;;  %5436 = vmatmul.mubr.f32.vlgmr.msra.gmra.mxu0 %v1936_v50  ;;  %v4020_v48 = vld [vmem:[%s8909_s5 + $0x220] sm:$0xff]  ;;  %v4019_v50 = vld [vmem:[%s8909_s5 + $0x218] sm:$0xff] }
 0x3dd   :  { %5439 = vmatpush3.msra.mxu1 %v7760_v6  ;;  %v5367_v30 = vpop.f32.mrf.mxu0  ;;  %5470 = vmatprep.mubr.msk.f32.mxu1 %vm6044_vm0, %v8948_v54  ;;  %v5332_v49 = vpop.f32.mrf.mxu1 }
 0x3de   :  { %5440 = vmatprep.subr.mxu1 %v8948_v54  ;;  %5505 = vmatprep.mubr.msk.f32.mxu0 %vm6044_vm0, %v8948_v54  ;;  %v4018_v30 = vld [vmem:[%s8909_s5 + $0x210] sm:$0xff]  ;;  %v4017_v49 = vld [vmem:[%s8909_s5 + $0x208] sm:$0xff] }
 0x3df   :  { %5441 = vmatpush3.msra.mxu1 %v7765_v40  ;;  %5474 = vmatpush3.msra.mxu0 %v3997_v10 }
 0x3e0   :  { %5442 = vmatprep.subr.mxu1 %v8948_v54  ;;  %5475 = vmatprep.subr.mxu0 %v8948_v54 }
 0x3e1   :  { %5443 = vmatpush3.msra.mxu1 %v7773_v23  ;;  %5476 = vmatpush3.msra.mxu0 %v3996_v60  ;;  %v4047_v60 = vld [vmem:[%s8909_s5 + $0x2f0] sm:$0xff] }
 0x3e2   :  { %5444 = vmatprep.subr.mxu1 %v8948_v54  ;;  %5477 = vmatprep.subr.mxu0 %v8948_v54 }
 0x3e3   :  { %5445 = vmatpush3.msra.mxu1 %v7782_v61  ;;  %5478 = vmatpush3.msra.mxu0 %v3995_v43 }
 0x3e4   :  { %5446 = vmatprep.subr.mxu1 %v8948_v54  ;;  %5479 = vmatprep.subr.mxu0 %v8948_v54 }
 0x3e5   :  { %5447 = vmatpush3.msra.mxu1 %v7791_v42  ;;  %5480 = vmatpush3.msra.mxu0 %v3994_v5  ;;  %v4046_v5 = vld [vmem:[%s8909_s5 + $0x2e8] sm:$0xff] }
 0x3e6   :  { %5448 = vmatprep.subr.mxu1 %v8948_v54  ;;  %5481 = vmatprep.subr.mxu0 %v8948_v54 }
 0x3e7   :  { %5449 = vmatpush3.msra.mxu1 %v7800_v7  ;;  %5482 = vmatpush3.msra.mxu0 %v3993_v29  ;;  %v4045_v29 = vld [vmem:[%s8909_s5 + $0x2e0] sm:$0xff] }
 0x3e8   :  { %5450 = vmatprep.subr.mxu1 %v8948_v54  ;;  %5483 = vmatprep.subr.mxu0 %v8948_v54 }
 0x3e9   :  { %5451 = vmatpush3.msra.mxu1 %v7810_v58  ;;  %5484 = vmatpush3.msra.mxu0 %v3992_v18  ;;  %v4044_v18 = vld [vmem:[%s8909_s5 + $0x2d8] sm:$0xff] }
 0x3ea   :  { %5452 = vmatprep.subr.mxu1 %v8948_v54  ;;  %5485 = vmatprep.subr.mxu0 %v8948_v54 }
 0x3eb   :  { %5453 = vmatpush3.msra.mxu1 %v7820_v56  ;;  %5486 = vmatpush3.msra.mxu0 %v3991_v55  ;;  %v4043_v55 = vld [vmem:[%s8909_s5 + $0x2d0] sm:$0xff] }
 0x3ec   :  { %5454 = vmatprep.subr.mxu1 %v8948_v54  ;;  %5487 = vmatprep.subr.mxu0 %v8948_v54 }
 0x3ed   :  { %5455 = vmatpush3.msra.mxu1 %v7828_v38  ;;  %5488 = vmatpush3.msra.mxu0 %v3990_v52  ;;  %v4042_v52 = vld [vmem:[%s8909_s5 + $0x2c8] sm:$0xff] }
 0x3ee   :  { %5456 = vmatprep.subr.mxu1 %v8948_v54  ;;  %5489 = vmatprep.subr.mxu0 %v8948_v54 }
 0x3ef   :  { %5457 = vmatpush3.msra.mxu1 %v7835_v41  ;;  %5490 = vmatpush3.msra.mxu0 %v3989_v57  ;;  %v4041_v57 = vld [vmem:[%s8909_s5 + $0x2c0] sm:$0xff] }
 0x3f0   :  { %5458 = vmatprep.subr.mxu1 %v8948_v54  ;;  %5491 = vmatprep.subr.mxu0 %v8948_v54 }
 0x3f1   :  { %5459 = vmatpush3.msra.mxu1 %v7842_v20  ;;  %5492 = vmatpush3.msra.mxu0 %v3988_v27  ;;  %v4040_v27 = vld [vmem:[%s8909_s5 + $0x2b8] sm:$0xff] }
 0x3f2   :  { %5460 = vmatprep.subr.mxu1 %v8948_v54  ;;  %5493 = vmatprep.subr.mxu0 %v8948_v54 }
 0x3f3   :  { %5461 = vmatpush3.msra.mxu1 %v7751_v4  ;;  %5494 = vmatpush3.msra.mxu0 %v3987_v2  ;;  %v4039_v2 = vld [vmem:[%s8909_s5 + $0x2b0] sm:$0xff] }
 0x3f4   :  { %5462 = vmatprep.subr.mxu1 %v8948_v54  ;;  %5495 = vmatprep.subr.mxu0 %v8948_v54 }
 0x3f5   :  { %5463 = vmatpush3.msra.mxu1 %v7739_v14  ;;  %5496 = vmatpush3.msra.mxu0 %v3986_v51  ;;  %v4038_v51 = vld [vmem:[%s8909_s5 + $0x2a8] sm:$0xff] }
 0x3f6   :  { %5464 = vmatprep.subr.mxu1 %v8948_v54  ;;  %5497 = vmatprep.subr.mxu0 %v8948_v54 }
 0x3f7   :  { %5465 = vmatpush3.msra.mxu1 %v7745_v25  ;;  %5498 = vmatpush3.msra.mxu0 %v3985_v17  ;;  %v4037_v17 = vld [vmem:[%s8909_s5 + $0x2a0] sm:$0xff] }
 0x3f8   :  { %5466 = vmatprep.subr.mxu1 %v8948_v54  ;;  %5499 = vmatprep.subr.mxu0 %v8948_v54 }
 0x3f9   :  { %5467 = vmatpush3.msra.mxu1 %v8949_v11  ;;  %5500 = vmatpush3.msra.mxu0 %v3984_v24  ;;  %v4036_v24 = vld [vmem:[%s8909_s5 + $0x298] sm:$0xff] }
 0x3fa   :  { %5468 = vmatprep.subr.mxu1 %v8948_v54  ;;  %5501 = vmatprep.subr.mxu0 %v8948_v54 }
 0x3fb   :  { %5469 = vmatpush3.msra.mxu1 %v8950_v1  ;;  %5502 = vmatpush3.msra.mxu0 %v3983_v19  ;;  %v4034_v19 = vld [vmem:[%s8909_s5 + $0x288] sm:$0xff] }
 0x3fc   :  { %5471 = vmatmul.mubr.f32.vlgmr.msra.gmra.mxu1 %v3981_v16  ;;  %5508 = vmatprep.subr.mxu1 %v8948_v54  ;;  %v4016_v16 = vld [vmem:[%s8909_s5 + $0x200] sm:$0xff] }
 0x3fd   :  { %5509 = vmatpush3.msra.mxu1 %v7760_v6  ;;  %5540 = vmatprep.mubr.msk.f32.mxu1 %vm6044_vm0, %v8948_v54 }
 0x3fe   :  { %5510 = vmatprep.subr.mxu1 %v8948_v54  ;;  %5503 = vmatprep.subr.mxu0 %v8948_v54 }
 0x3ff   :  { %5511 = vmatpush3.msra.mxu1 %v7765_v40  ;;  %5504 = vmatpush3.msra.mxu0 %v3982_v59  ;;  %v4033_v59 = vld [vmem:[%s8909_s5 + $0x280] sm:$0xff] }
 0x400   :  { %5512 = vmatprep.subr.mxu1 %v8948_v54  ;;  %5543 = vmatprep.subr.mxu0 %v8948_v54 }
 0x401   :  { %5513 = vmatpush3.msra.mxu1 %v7773_v23 }
 0x402   :  { %5514 = vmatprep.subr.mxu1 %v8948_v54 }
 0x403   :  { %5515 = vmatpush3.msra.mxu1 %v7782_v61 }
 0x404   :  { %5516 = vmatprep.subr.mxu1 %v8948_v54 }
 0x405   :  { %5517 = vmatpush3.msra.mxu1 %v7791_v42 }
 0x406   :  { %5518 = vmatprep.subr.mxu1 %v8948_v54 }
 0x407   :  { %5519 = vmatpush3.msra.mxu1 %v7800_v7 }
 0x408   :  { %5520 = vmatprep.subr.mxu1 %v8948_v54 }
 0x409   :  { %5521 = vmatpush3.msra.mxu1 %v7810_v58 }
 0x40a   :  { %5522 = vmatprep.subr.mxu1 %v8948_v54 }
 0x40b   :  { %5523 = vmatpush3.msra.mxu1 %v7820_v56 }
 0x40c   :  { %5524 = vmatprep.subr.mxu1 %v8948_v54 }
 0x40d   :  { %5525 = vmatpush3.msra.mxu1 %v7828_v38 }
 0x40e   :  { %5526 = vmatprep.subr.mxu1 %v8948_v54 }
 0x40f   :  { %5527 = vmatpush3.msra.mxu1 %v7835_v41 }
 0x410   :  { %5528 = vmatprep.subr.mxu1 %v8948_v54 }
 0x411   :  { %5529 = vmatpush3.msra.mxu1 %v7842_v20 }
 0x412   :  { %5530 = vmatprep.subr.mxu1 %v8948_v54 }
 0x413   :  { %5531 = vmatpush3.msra.mxu1 %v7751_v4 }
 0x414   :  { %5532 = vmatprep.subr.mxu1 %v8948_v54 }
 0x415   :  { %5533 = vmatpush3.msra.mxu1 %v7739_v14 }
 0x416   :  { %5534 = vmatprep.subr.mxu1 %v8948_v54 }
 0x417   :  { %5535 = vmatpush3.msra.mxu1 %v7745_v25 }
 0x418   :  { %5536 = vmatprep.subr.mxu1 %v8948_v54 }
 0x419   :  { %5537 = vmatpush3.msra.mxu1 %v8949_v11 }
 0x41a   :  { %5538 = vmatprep.subr.mxu1 %v8948_v54 }
 0x41b   :  { %5539 = vmatpush3.msra.mxu1 %v8950_v1 }
 0x41c   :  { %5541 = vmatmul.mubr.f32.vlgmr.msra.gmra.mxu1 %v3998_v32  ;;  %5578 = vmatprep.subr.mxu1 %v8948_v54  ;;  %v4048_v32 = vld [vmem:[%s8909_s5 + $0x2f8] sm:$0xff] }
 0x41d   :  { %5579 = vmatpush3.msra.mxu1 %v7760_v6  ;;  %5610 = vmatprep.mubr.msk.f32.mxu1 %vm6044_vm0, %v8948_v54 }
 0x41e   :  { %5580 = vmatprep.subr.mxu1 %v8948_v54 }
 0x41f   :  { %5581 = vmatpush3.msra.mxu1 %v7765_v40 }
 0x420   :  { %5582 = vmatprep.subr.mxu1 %v8948_v54 }
 0x421   :  { %5583 = vmatpush3.msra.mxu1 %v7773_v23 }
 0x422   :  { %5584 = vmatprep.subr.mxu1 %v8948_v54 }
 0x423   :  { %5585 = vmatpush3.msra.mxu1 %v7782_v61 }
 0x424   :  { %5586 = vmatprep.subr.mxu1 %v8948_v54 }
 0x425   :  { %5587 = vmatpush3.msra.mxu1 %v7791_v42 }
 0x426   :  { %5588 = vmatprep.subr.mxu1 %v8948_v54 }
 0x427   :  { %5589 = vmatpush3.msra.mxu1 %v7800_v7 }
 0x428   :  { %5590 = vmatprep.subr.mxu1 %v8948_v54 }
 0x429   :  { %5591 = vmatpush3.msra.mxu1 %v7810_v58 }
 0x42a   :  { %5592 = vmatprep.subr.mxu1 %v8948_v54 }
 0x42b   :  { %5593 = vmatpush3.msra.mxu1 %v7820_v56 }
 0x42c   :  { %5594 = vmatprep.subr.mxu1 %v8948_v54 }
 0x42d   :  { %5595 = vmatpush3.msra.mxu1 %v7828_v38 }
 0x42e   :  { %5596 = vmatprep.subr.mxu1 %v8948_v54 }
 0x42f   :  { %5597 = vmatpush3.msra.mxu1 %v7835_v41 }
 0x430   :  { %5598 = vmatprep.subr.mxu1 %v8948_v54 }
 0x431   :  { %5599 = vmatpush3.msra.mxu1 %v7842_v20 }
 0x432   :  { %5600 = vmatprep.subr.mxu1 %v8948_v54 }
 0x433   :  { %5601 = vmatpush3.msra.mxu1 %v7751_v4 }
 0x434   :  { %5602 = vmatprep.subr.mxu1 %v8948_v54 }
 0x435   :  { %5603 = vmatpush3.msra.mxu1 %v7739_v14 }
 0x436   :  { %5604 = vmatprep.subr.mxu1 %v8948_v54 }
 0x437   :  { %5605 = vmatpush3.msra.mxu1 %v7745_v25 }
 0x438   :  { %5606 = vmatprep.subr.mxu1 %v8948_v54 }
 0x439   :  { %5607 = vmatpush3.msra.mxu1 %v8949_v11 }
 0x43a   :  { %5608 = vmatprep.subr.mxu1 %v8948_v54 }
 0x43b   :  { %5609 = vmatpush3.msra.mxu1 %v8950_v1 }
 0x43c   :  { %5611 = vmatmul.mubr.f32.vlgmr.msra.gmra.mxu1 %v4015_v8  ;;  %5648 = vmatprep.subr.mxu1 %v8948_v54  ;;  %v4035_v8 = vld [vmem:[%s8909_s5 + $0x290] sm:$0xff] }
 0x43d   :  { %5649 = vmatpush3.msra.mxu1 %v7760_v6  ;;  %5680 = vmatprep.mubr.msk.f32.mxu1 %vm6044_vm0, %v8948_v54 }
 0x43e   :  { %5650 = vmatprep.subr.mxu1 %v8948_v54 }
 0x43f   :  { %5651 = vmatpush3.msra.mxu1 %v7765_v40 }
 0x440   :  { %5652 = vmatprep.subr.mxu1 %v8948_v54 }
 0x441   :  { %5653 = vmatpush3.msra.mxu1 %v7773_v23 }
 0x442   :  { %5654 = vmatprep.subr.mxu1 %v8948_v54 }
 0x443   :  { %5655 = vmatpush3.msra.mxu1 %v7782_v61 }
 0x444   :  { %5656 = vmatprep.subr.mxu1 %v8948_v54 }
 0x445   :  { %5657 = vmatpush3.msra.mxu1 %v7791_v42 }
 0x446   :  { %5658 = vmatprep.subr.mxu1 %v8948_v54 }
 0x447   :  { %5659 = vmatpush3.msra.mxu1 %v7800_v7 }
 0x448   :  { %5660 = vmatprep.subr.mxu1 %v8948_v54 }
 0x449   :  { %5661 = vmatpush3.msra.mxu1 %v7810_v58 }
 0x44a   :  { %5662 = vmatprep.subr.mxu1 %v8948_v54 }
 0x44b   :  { %5663 = vmatpush3.msra.mxu1 %v7820_v56 }
 0x44c   :  { %5664 = vmatprep.subr.mxu1 %v8948_v54 }
 0x44d   :  { %5665 = vmatpush3.msra.mxu1 %v7828_v38 }
 0x44e   :  { %5666 = vmatprep.subr.mxu1 %v8948_v54 }
 0x44f   :  { %5667 = vmatpush3.msra.mxu1 %v7835_v41 }
 0x450   :  { %5668 = vmatprep.subr.mxu1 %v8948_v54 }
 0x451   :  { %5669 = vmatpush3.msra.mxu1 %v7842_v20 }
 0x452   :  { %5670 = vmatprep.subr.mxu1 %v8948_v54 }
 0x453   :  { %5671 = vmatpush3.msra.mxu1 %v7751_v4 }
 0x454   :  { %5672 = vmatprep.subr.mxu1 %v8948_v54 }
 0x455   :  { %5673 = vmatpush3.msra.mxu1 %v7739_v14 }
 0x456   :  { %5674 = vmatprep.subr.mxu1 %v8948_v54 }
 0x457   :  { %5675 = vmatpush3.msra.mxu1 %v7745_v25 }
 0x458   :  { %5676 = vmatprep.subr.mxu1 %v8948_v54 }
 0x459   :  { %5677 = vmatpush3.msra.mxu1 %v8949_v11 }
 0x45a   :  { %5678 = vmatprep.subr.mxu1 %v8948_v54 }
 0x45b   :  { %5679 = vmatpush3.msra.mxu1 %v8950_v1 }
 0x45c   :  { %5681 = vmatmul.mubr.f32.vlgmr.msra.gmra.mxu1 %v4032_v46  ;;  %5718 = vmatprep.subr.mxu1 %v8948_v54  ;;  %v4065_v46 = vld [vmem:[%s8909_s5 + $0x378] sm:$0xff] }
 0x45d   :  { %5719 = vmatpush3.msra.mxu1 %v7760_v6  ;;  %5750 = vmatprep.mubr.msk.f32.mxu1 %vm6044_vm0, %v8948_v54 }
 0x45e   :  { %5720 = vmatprep.subr.mxu1 %v8948_v54 }
 0x45f   :  { %5721 = vmatpush3.msra.mxu1 %v7765_v40 }
 0x460   :  { %5722 = vmatprep.subr.mxu1 %v8948_v54 }
 0x461   :  { %5723 = vmatpush3.msra.mxu1 %v7773_v23 }
 0x462   :  { %5724 = vmatprep.subr.mxu1 %v8948_v54 }
 0x463   :  { %5725 = vmatpush3.msra.mxu1 %v7782_v61 }
 0x464   :  { %5726 = vmatprep.subr.mxu1 %v8948_v54 }
 0x465   :  { %5727 = vmatpush3.msra.mxu1 %v7791_v42 }
 0x466   :  { %5728 = vmatprep.subr.mxu1 %v8948_v54 }
 0x467   :  { %5729 = vmatpush3.msra.mxu1 %v7800_v7 }
 0x468   :  { %5730 = vmatprep.subr.mxu1 %v8948_v54 }
 0x469   :  { %5731 = vmatpush3.msra.mxu1 %v7810_v58 }
 0x46a   :  { %5732 = vmatprep.subr.mxu1 %v8948_v54 }
 0x46b   :  { %5733 = vmatpush3.msra.mxu1 %v7820_v56 }
 0x46c   :  { %5734 = vmatprep.subr.mxu1 %v8948_v54 }
 0x46d   :  { %5735 = vmatpush3.msra.mxu1 %v7828_v38 }
 0x46e   :  { %5736 = vmatprep.subr.mxu1 %v8948_v54 }
 0x46f   :  { %5737 = vmatpush3.msra.mxu1 %v7835_v41 }
 0x470   :  { %5738 = vmatprep.subr.mxu1 %v8948_v54 }
 0x471   :  { %5739 = vmatpush3.msra.mxu1 %v7842_v20 }
 0x472   :  { %5740 = vmatprep.subr.mxu1 %v8948_v54 }
 0x473   :  { %5741 = vmatpush3.msra.mxu1 %v7751_v4 }
 0x474   :  { %5742 = vmatprep.subr.mxu1 %v8948_v54 }
 0x475   :  { %5743 = vmatpush3.msra.mxu1 %v7739_v14 }
 0x476   :  { %5744 = vmatprep.subr.mxu1 %v8948_v54 }
 0x477   :  { %5745 = vmatpush3.msra.mxu1 %v7745_v25 }
 0x478   :  { %5746 = vmatprep.subr.mxu1 %v8948_v54 }
 0x479   :  { %5747 = vmatpush3.msra.mxu1 %v8949_v11 }
 0x47a   :  { %5748 = vmatprep.subr.mxu1 %v8948_v54 }
 0x47b   :  { %5749 = vmatpush3.msra.mxu1 %v8950_v1 }
 0x47c   :  { %5751 = vmatmul.mubr.f32.vlgmr.msra.gmra.mxu1 %v4049_v44  ;;  %5788 = vmatprep.subr.mxu1 %v8948_v54 }
 0x47d   :  { %5789 = vmatpush3.msra.mxu1 %v7760_v6  ;;  %5820 = vmatprep.mubr.msk.f32.mxu1 %vm6044_vm0, %v8948_v54 }
 0x47e   :  { %5790 = vmatprep.subr.mxu1 %v8948_v54 }
 0x47f   :  { %5791 = vmatpush3.msra.mxu1 %v7765_v40 }
 0x480   :  { %5792 = vmatprep.subr.mxu1 %v8948_v54 }
 0x481   :  { %5793 = vmatpush3.msra.mxu1 %v7773_v23 }
 0x482   :  { %5794 = vmatprep.subr.mxu1 %v8948_v54 }
 0x483   :  { %5795 = vmatpush3.msra.mxu1 %v7782_v61 }
 0x484   :  { %5796 = vmatprep.subr.mxu1 %v8948_v54 }
 0x485   :  { %5797 = vmatpush3.msra.mxu1 %v7791_v42 }
 0x486   :  { %5798 = vmatprep.subr.mxu1 %v8948_v54 }
 0x487   :  { %5799 = vmatpush3.msra.mxu1 %v7800_v7 }
 0x488   :  { %5800 = vmatprep.subr.mxu1 %v8948_v54 }
 0x489   :  { %5801 = vmatpush3.msra.mxu1 %v7810_v58 }
 0x48a   :  { %5802 = vmatprep.subr.mxu1 %v8948_v54 }
 0x48b   :  { %5803 = vmatpush3.msra.mxu1 %v7820_v56 }
 0x48c   :  { %5804 = vmatprep.subr.mxu1 %v8948_v54 }
 0x48d   :  { %5805 = vmatpush3.msra.mxu1 %v7828_v38 }
 0x48e   :  { %5806 = vmatprep.subr.mxu1 %v8948_v54 }
 0x48f   :  { %5807 = vmatpush3.msra.mxu1 %v7835_v41 }
 0x490   :  { %5808 = vmatprep.subr.mxu1 %v8948_v54 }
 0x491   :  { %5809 = vmatpush3.msra.mxu1 %v7842_v20 }
 0x492   :  { %5810 = vmatprep.subr.mxu1 %v8948_v54 }
 0x493   :  { %5811 = vmatpush3.msra.mxu1 %v7751_v4 }
 0x494   :  { %5812 = vmatprep.subr.mxu1 %v8948_v54 }
 0x495   :  { %5813 = vmatpush3.msra.mxu1 %v7739_v14 }
 0x496   :  { %5814 = vmatprep.subr.mxu1 %v8948_v54 }
 0x497   :  { %5815 = vmatpush3.msra.mxu1 %v7745_v25 }
 0x498   :  { %5816 = vmatprep.subr.mxu1 %v8948_v54 }
 0x499   :  { %5817 = vmatpush3.msra.mxu1 %v8949_v11 }
 0x49a   :  { %5818 = vmatprep.subr.mxu1 %v8948_v54 }
 0x49b   :  { %5819 = vmatpush3.msra.mxu1 %v8950_v1 }
 0x49c   :  { %5821 = vmatmul.mubr.f32.vlgmr.msra.gmra.mxu1 %v4066_v34  ;;  %5858 = vmatprep.subr.mxu1 %v8948_v54  ;;  %v2111_v0 = vpop.f32.mrf.mxu1  ;;  %v2181_v22 = vpop.f32.mrf.mxu0  ;;  %v4064_v34 = vld [vmem:[%s8909_s5 + $0x370] sm:$0xff] }
 0x49d   :  { %5859 = vmatpush3.msra.mxu1 %v7760_v6  ;;  %v8299_v39 = vadd.f32 %v2181_v22, %v2111_v0  ;;  %5890 = vmatprep.mubr.msk.f32.mxu1 %vm6044_vm0, %v8948_v54  ;;  %v4083_v6 = vld [vmem:[%s8908_s4 + $0x40] sm:$0xff]  ;;  %v4063_v22 = vld [vmem:[%s8909_s5 + $0x368] sm:$0xff] }
 0x49e   :  { %5860 = vmatprep.subr.mxu1 %v8948_v54  ;;  %v5402_v37 = vpop.f32.mrf.mxu1  ;;  %v5437_v33 = vpop.f32.mrf.mxu0 }
 0x49f   :  { %5861 = vmatpush3.msra.mxu1 %v7765_v40  ;;  %v4062_v37 = vld [vmem:[%s8909_s5 + $0x360] sm:$0xff]  ;;  %v4061_v33 = vld [vmem:[%s8909_s5 + $0x358] sm:$0xff] }
 0x4a0   :  { %5862 = vmatprep.subr.mxu1 %v8948_v54 }
 0x4a1   :  { %5863 = vmatpush3.msra.mxu1 %v7773_v23  ;;  %v4012_v23 = vld [vmem:[%s8909_s5 + $0x1e8] sm:$0xff] }
 0x4a2   :  { %5864 = vmatprep.subr.mxu1 %v8948_v54 }
 0x4a3   :  { %5865 = vmatpush3.msra.mxu1 %v7782_v61  ;;  %v4011_v61 = vld [vmem:[%s8909_s5 + $0x1e0] sm:$0xff] }
 0x4a4   :  { %5866 = vmatprep.subr.mxu1 %v8948_v54 }
 0x4a5   :  { %5867 = vmatpush3.msra.mxu1 %v7791_v42  ;;  %v4010_v42 = vld [vmem:[%s8909_s5 + $0x1d8] sm:$0xff] }
 0x4a6   :  { %5868 = vmatprep.subr.mxu1 %v8948_v54 }
 0x4a7   :  { %5869 = vmatpush3.msra.mxu1 %v7800_v7  ;;  %v4009_v7 = vld [vmem:[%s8909_s5 + $0x1d0] sm:$0xff] }
 0x4a8   :  { %5870 = vmatprep.subr.mxu1 %v8948_v54 }
 0x4a9   :  { %5871 = vmatpush3.msra.mxu1 %v7810_v58  ;;  %v4008_v58 = vld [vmem:[%s8909_s5 + $0x1c8] sm:$0xff] }
 0x4aa   :  { %5872 = vmatprep.subr.mxu1 %v8948_v54 }
 0x4ab   :  { %5873 = vmatpush3.msra.mxu1 %v7820_v56  ;;  %v4007_v56 = vld [vmem:[%s8909_s5 + $0x1c0] sm:$0xff] }
 0x4ac   :  { %5874 = vmatprep.subr.mxu1 %v8948_v54 }
 0x4ad   :  { %5875 = vmatpush3.msra.mxu1 %v7828_v38  ;;  %v4006_v38 = vld [vmem:[%s8909_s5 + $0x1b8] sm:$0xff] }
 0x4ae   :  { %5876 = vmatprep.subr.mxu1 %v8948_v54 }
 0x4af   :  { %5877 = vmatpush3.msra.mxu1 %v7835_v41  ;;  %v4005_v41 = vld [vmem:[%s8909_s5 + $0x1b0] sm:$0xff] }
 0x4b0   :  { %5878 = vmatprep.subr.mxu1 %v8948_v54 }
 0x4b1   :  { %5879 = vmatpush3.msra.mxu1 %v7842_v20  ;;  %v4004_v20 = vld [vmem:[%s8909_s5 + $0x1a8] sm:$0xff] }
 0x4b2   :  { %5880 = vmatprep.subr.mxu1 %v8948_v54 }
 0x4b3   :  { %5881 = vmatpush3.msra.mxu1 %v7751_v4 }
 0x4b4   :  { %5882 = vmatprep.subr.mxu1 %v8948_v54 }
 0x4b5   :  { %5883 = vmatpush3.msra.mxu1 %v7739_v14  ;;  %v4014_v14 = vld [vmem:[%s8909_s5 + $0x1f8] sm:$0xff] }
 0x4b6   :  { %5884 = vmatprep.subr.mxu1 %v8948_v54 }
 0x4b7   :  { %5885 = vmatpush3.msra.mxu1 %v7745_v25  ;;  %v4013_v25 = vld [vmem:[%s8909_s5 + $0x1f0] sm:$0xff] }
 0x4b8   :  { %5886 = vmatprep.subr.mxu1 %v8948_v54 }
 0x4b9   :  { %5887 = vmatpush3.msra.mxu1 %v8949_v11  ;;  %v4003_v11 = vld [vmem:[%s8909_s5 + $0x1a0] sm:$0xff] }
 0x4ba   :  { %5888 = vmatprep.subr.mxu1 %v8948_v54 }
 0x4bb   :  { %5889 = vmatpush3.msra.mxu1 %v8950_v1  ;;  %v4002_v1 = vld [vmem:[%s8909_s5 + $0x198] sm:$0xff] }
 0x4bc   :  { %v2253_v4 = vpop.f32.mrf.mxu1  ;;  %5891 = vmatmul.mubr.f32.vlgmr.msra.gmra.mxu1 %v4083_v6  ;;  %5928 = vmatprep.subr.mxu1 %v8948_v54  ;;  %v4060_v6 = vld [vmem:[%s8909_s5 + $0x350] sm:$0xff] }
 0x4bd   :  { %5506 = vmatmul.mubr.f32.vlgmr.msra.gmra.mxu0 %v2253_v4  ;;  %5930 = vmatprep.mubr.msk.f32.mxu1 %vm6044_vm0, %v8948_v54  ;;  %v4058_v4 = vld [vmem:[%s8909_s5 + $0x340] sm:$0xff] }
 0x4be   :  { %5544 = vmatpush3.msra.mxu0 %v4014_v14  ;;  %v5472_v40 = vpop.f32.mrf.mxu1  ;;  %5575 = vmatprep.mubr.msk.f32.mxu0 %vm6044_vm0, %v8948_v54  ;;  %v4059_v14 = vld [vmem:[%s8909_s5 + $0x348] sm:$0xff] }
 0x4bf   :  { %5545 = vmatprep.subr.mxu0 %v8948_v54  ;;  %v4056_v40 = vld [vmem:[%s8909_s5 + $0x330] sm:$0xff] }
 0x4c0   :  { %5546 = vmatpush3.msra.mxu0 %v4013_v25  ;;  %v4057_v25 = vld [vmem:[%s8909_s5 + $0x338] sm:$0xff] }
 0x4c1   :  { %5547 = vmatprep.subr.mxu0 %v8948_v54 }
 0x4c2   :  { %5548 = vmatpush3.msra.mxu0 %v4012_v23  ;;  %v4055_v23 = vld [vmem:[%s8909_s5 + $0x328] sm:$0xff] }
 0x4c3   :  { %5549 = vmatprep.subr.mxu0 %v8948_v54 }
 0x4c4   :  { %5550 = vmatpush3.msra.mxu0 %v4011_v61  ;;  %v4054_v61 = vld [vmem:[%s8909_s5 + $0x320] sm:$0xff] }
 0x4c5   :  { %5551 = vmatprep.subr.mxu0 %v8948_v54 }
 0x4c6   :  { %5552 = vmatpush3.msra.mxu0 %v4010_v42  ;;  %v4053_v42 = vld [vmem:[%s8909_s5 + $0x318] sm:$0xff] }
 0x4c7   :  { %5553 = vmatprep.subr.mxu0 %v8948_v54 }
 0x4c8   :  { %5554 = vmatpush3.msra.mxu0 %v4009_v7  ;;  %v4052_v7 = vld [vmem:[%s8909_s5 + $0x310] sm:$0xff] }
 0x4c9   :  { %5555 = vmatprep.subr.mxu0 %v8948_v54 }
 0x4ca   :  { %5556 = vmatpush3.msra.mxu0 %v4008_v58  ;;  %v4051_v58 = vld [vmem:[%s8909_s5 + $0x308] sm:$0xff] }
 0x4cb   :  { %5557 = vmatprep.subr.mxu0 %v8948_v54 }
 0x4cc   :  { %5558 = vmatpush3.msra.mxu0 %v4007_v56  ;;  %v4050_v56 = vld [vmem:[%s8909_s5 + $0x300] sm:$0xff] }
 0x4cd   :  { %5559 = vmatprep.subr.mxu0 %v8948_v54 }
 0x4ce   :  { %5560 = vmatpush3.msra.mxu0 %v4006_v38  ;;  %v4082_v38 = vld [vmem:[%s8909_s5 + $0x3f8] sm:$0xff] }
 0x4cf   :  { %5561 = vmatprep.subr.mxu0 %v8948_v54 }
 0x4d0   :  { %5562 = vmatpush3.msra.mxu0 %v4005_v41 }
 0x4d1   :  { %5563 = vmatprep.subr.mxu0 %v8948_v54 }
 0x4d2   :  { %5564 = vmatpush3.msra.mxu0 %v4004_v20  ;;  %v4081_v20 = vld [vmem:[%s8909_s5 + $0x3f0] sm:$0xff] }
 0x4d3   :  { %5565 = vmatprep.subr.mxu0 %v8948_v54 }
 0x4d4   :  { %5566 = vmatpush3.msra.mxu0 %v4003_v11 }
 0x4d5   :  { %5567 = vmatprep.subr.mxu0 %v8948_v54 }
 0x4d6   :  { %5568 = vmatpush3.msra.mxu0 %v4002_v1  ;;  %v4080_v1 = vld [vmem:[%s8909_s5 + $0x3e8] sm:$0xff] }
 0x4d7   :  { %5569 = vmatprep.subr.mxu0 %v8948_v54 }
 0x4d8   :  { %5570 = vmatpush3.msra.mxu0 %v4001_v31  ;;  %v4079_v31 = vld [vmem:[%s8909_s5 + $0x3e0] sm:$0xff] }
 0x4d9   :  { %5571 = vmatprep.subr.mxu0 %v8948_v54 }
 0x4da   :  { %5572 = vmatpush3.msra.mxu0 %v4000_v62  ;;  %v4078_v62 = vld [vmem:[%s8909_s5 + $0x3d8] sm:$0xff] }
 0x4db   :  { %5573 = vmatprep.subr.mxu0 %v8948_v54 }
 0x4dc   :  { %v2413_v9 = vpop.f32.mrf.mxu1  ;;  %5574 = vmatpush3.msra.mxu0 %v3999_v3  ;;  %v4077_v3 = vld [vmem:[%s8909_s5 + $0x3d0] sm:$0xff] }
 0x4dd   :  { %5576 = vmatmul.mubr.f32.vlgmr.msra.gmra.mxu0 %v2413_v9  ;;  %5613 = vmatprep.subr.mxu0 %v8948_v54  ;;  %v4075_v9 = vld [vmem:[%s8909_s5 + $0x3c0] sm:$0xff] }
 0x4de   :  { %5614 = vmatpush3.msra.mxu0 %v4031_v53  ;;  %v5542_v13 = vpop.f32.mrf.mxu1  ;;  %5645 = vmatprep.mubr.msk.f32.mxu0 %vm6044_vm0, %v8948_v54  ;;  %v4076_v53 = vld [vmem:[%s8909_s5 + $0x3c8] sm:$0xff] }
 0x4df   :  { %5615 = vmatprep.subr.mxu0 %v8948_v54  ;;  %v4073_v13 = vld [vmem:[%s8909_s5 + $0x3b0] sm:$0xff] }
 0x4e0   :  { %5616 = vmatpush3.msra.mxu0 %v4030_v12  ;;  %v4074_v12 = vld [vmem:[%s8909_s5 + $0x3b8] sm:$0xff] }
 0x4e1   :  { %5617 = vmatprep.subr.mxu0 %v8948_v54 }
 0x4e2   :  { %5618 = vmatpush3.msra.mxu0 %v4029_v28  ;;  %v4072_v28 = vld [vmem:[%s8909_s5 + $0x3a8] sm:$0xff] }
 0x4e3   :  { %5619 = vmatprep.subr.mxu0 %v8948_v54 }
 0x4e4   :  { %5620 = vmatpush3.msra.mxu0 %v4028_v26  ;;  %v4071_v26 = vld [vmem:[%s8909_s5 + $0x3a0] sm:$0xff] }
 0x4e5   :  { %5621 = vmatprep.subr.mxu0 %v8948_v54 }
 0x4e6   :  { %5622 = vmatpush3.msra.mxu0 %v4027_v36  ;;  %v4070_v36 = vld [vmem:[%s8909_s5 + $0x398] sm:$0xff] }
 0x4e7   :  { %5623 = vmatprep.subr.mxu0 %v8948_v54 }
 0x4e8   :  { %5624 = vmatpush3.msra.mxu0 %v4026_v35  ;;  %v4069_v35 = vld [vmem:[%s8909_s5 + $0x390] sm:$0xff] }
 0x4e9   :  { %5625 = vmatprep.subr.mxu0 %v8948_v54 }
 0x4ea   :  { %5626 = vmatpush3.msra.mxu0 %v4025_v47  ;;  %v4068_v47 = vld [vmem:[%s8909_s5 + $0x388] sm:$0xff] }
 0x4eb   :  { %5627 = vmatprep.subr.mxu0 %v8948_v54 }
 0x4ec   :  { %5628 = vmatpush3.msra.mxu0 %v4024_v15  ;;  %v4067_v15 = vld [vmem:[%s8909_s5 + $0x380] sm:$0xff] }
 0x4ed   :  { %5629 = vmatprep.subr.mxu0 %v8948_v54 }
 0x4ee   :  { %5630 = vmatpush3.msra.mxu0 %v4023_v63  ;;  %v4099_v63 = vld [vmem:[%s8909_s5 + $0x478] sm:$0xff] }
 0x4ef   :  { %5631 = vmatprep.subr.mxu0 %v8948_v54 }
 0x4f0   :  { %5632 = vmatpush3.msra.mxu0 %v4022_v45 }
 0x4f1   :  { %5633 = vmatprep.subr.mxu0 %v8948_v54 }
 0x4f2   :  { %5634 = vmatpush3.msra.mxu0 %v4021_v21  ;;  %v4098_v21 = vld [vmem:[%s8909_s5 + $0x470] sm:$0xff] }
 0x4f3   :  { %5635 = vmatprep.subr.mxu0 %v8948_v54 }
 0x4f4   :  { %5636 = vmatpush3.msra.mxu0 %v4020_v48 }
 0x4f5   :  { %5637 = vmatprep.subr.mxu0 %v8948_v54 }
 0x4f6   :  { %5638 = vmatpush3.msra.mxu0 %v4019_v50  ;;  %v4097_v50 = vld [vmem:[%s8909_s5 + $0x468] sm:$0xff] }
 0x4f7   :  { %5639 = vmatprep.subr.mxu0 %v8948_v54 }
 0x4f8   :  { %5640 = vmatpush3.msra.mxu0 %v4018_v30  ;;  %v4096_v30 = vld [vmem:[%s8909_s5 + $0x460] sm:$0xff] }
 0x4f9   :  { %5641 = vmatprep.subr.mxu0 %v8948_v54 }
 0x4fa   :  { %5642 = vmatpush3.msra.mxu0 %v4017_v49  ;;  %v4095_v49 = vld [vmem:[%s8909_s5 + $0x458] sm:$0xff] }
 0x4fb   :  { %5643 = vmatprep.subr.mxu0 %v8948_v54 }
 0x4fc   :  { %v2573_v10 = vpop.f32.mrf.mxu1  ;;  %5644 = vmatpush3.msra.mxu0 %v4016_v16  ;;  %v4094_v16 = vld [vmem:[%s8909_s5 + $0x450] sm:$0xff] }
 0x4fd   :  { %5646 = vmatmul.mubr.f32.vlgmr.msra.gmra.mxu0 %v2573_v10  ;;  %5683 = vmatprep.subr.mxu0 %v8948_v54  ;;  %v4092_v10 = vld [vmem:[%s8909_s5 + $0x440] sm:$0xff] }
 0x4fe   :  { %5684 = vmatpush3.msra.mxu0 %v4048_v32  ;;  %v5612_v43 = vpop.f32.mrf.mxu1  ;;  %5715 = vmatprep.mubr.msk.f32.mxu0 %vm6044_vm0, %v8948_v54  ;;  %v4093_v32 = vld [vmem:[%s8909_s5 + $0x448] sm:$0xff] }
 0x4ff   :  { %5685 = vmatprep.subr.mxu0 %v8948_v54  ;;  %v4090_v43 = vld [vmem:[%s8909_s5 + $0x430] sm:$0xff] }
 0x500   :  { %5686 = vmatpush3.msra.mxu0 %v4047_v60  ;;  %v4091_v60 = vld [vmem:[%s8909_s5 + $0x438] sm:$0xff] }
 0x501   :  { %5687 = vmatprep.subr.mxu0 %v8948_v54 }
 0x502   :  { %5688 = vmatpush3.msra.mxu0 %v4046_v5  ;;  %v4089_v5 = vld [vmem:[%s8909_s5 + $0x428] sm:$0xff] }
 0x503   :  { %5689 = vmatprep.subr.mxu0 %v8948_v54 }
 0x504   :  { %5690 = vmatpush3.msra.mxu0 %v4045_v29  ;;  %v4088_v29 = vld [vmem:[%s8909_s5 + $0x420] sm:$0xff] }
 0x505   :  { %5691 = vmatprep.subr.mxu0 %v8948_v54 }
 0x506   :  { %5692 = vmatpush3.msra.mxu0 %v4044_v18  ;;  %v4087_v18 = vld [vmem:[%s8909_s5 + $0x418] sm:$0xff] }
 0x507   :  { %5693 = vmatprep.subr.mxu0 %v8948_v54 }
 0x508   :  { %5694 = vmatpush3.msra.mxu0 %v4043_v55  ;;  %v4086_v55 = vld [vmem:[%s8909_s5 + $0x410] sm:$0xff] }
 0x509   :  { %5695 = vmatprep.subr.mxu0 %v8948_v54 }
 0x50a   :  { %5696 = vmatpush3.msra.mxu0 %v4042_v52  ;;  %v4085_v52 = vld [vmem:[%s8909_s5 + $0x408] sm:$0xff] }
 0x50b   :  { %5697 = vmatprep.subr.mxu0 %v8948_v54 }
 0x50c   :  { %5698 = vmatpush3.msra.mxu0 %v4041_v57  ;;  %v4084_v57 = vld [vmem:[%s8909_s5 + $0x400] sm:$0xff] }
 0x50d   :  { %5699 = vmatprep.subr.mxu0 %v8948_v54 }
 0x50e   :  { %5700 = vmatpush3.msra.mxu0 %v4040_v27 }
 0x50f   :  { %5701 = vmatprep.subr.mxu0 %v8948_v54 }
 0x510   :  { %5702 = vmatpush3.msra.mxu0 %v4039_v2 }
 0x511   :  { %5703 = vmatprep.subr.mxu0 %v8948_v54 }
 0x512   :  { %5704 = vmatpush3.msra.mxu0 %v4038_v51 }
 0x513   :  { %5705 = vmatprep.subr.mxu0 %v8948_v54 }
 0x514   :  { %5706 = vmatpush3.msra.mxu0 %v4037_v17 }
 0x515   :  { %5707 = vmatprep.subr.mxu0 %v8948_v54 }
 0x516   :  { %5708 = vmatpush3.msra.mxu0 %v4036_v24 }
 0x517   :  { %5709 = vmatprep.subr.mxu0 %v8948_v54 }
 0x518   :  { %5710 = vmatpush3.msra.mxu0 %v4035_v8 }
 0x519   :  { %5711 = vmatprep.subr.mxu0 %v8948_v54 }
 0x51a   :  { %5712 = vmatpush3.msra.mxu0 %v4034_v19 }
 0x51b   :  { %5713 = vmatprep.subr.mxu0 %v8948_v54 }
 0x51c   :  { %v2733_v44 = vpop.f32.mrf.mxu1  ;;  %5714 = vmatpush3.msra.mxu0 %v4033_v59 }
 0x51d   :  { %5716 = vmatmul.mubr.f32.vlgmr.msra.gmra.mxu0 %v2733_v44  ;;  %5753 = vmatprep.subr.mxu0 %v8948_v54 }
 0x51e   :  { %5754 = vmatpush3.msra.mxu0 %v4065_v46  ;;  %v5682_v0 = vpop.f32.mrf.mxu1  ;;  %5785 = vmatprep.mubr.msk.f32.mxu0 %vm6044_vm0, %v8948_v54 }
 0x51f   :  { %5755 = vmatprep.subr.mxu0 %v8948_v54 }
 0x520   :  { %5756 = vmatpush3.msra.mxu0 %v4064_v34 }
 0x521   :  { %5757 = vmatprep.subr.mxu0 %v8948_v54 }
 0x522   :  { %5758 = vmatpush3.msra.mxu0 %v4063_v22 }
 0x523   :  { %5759 = vmatprep.subr.mxu0 %v8948_v54 }
 0x524   :  { %5760 = vmatpush3.msra.mxu0 %v4062_v37 }
 0x525   :  { %5761 = vmatprep.subr.mxu0 %v8948_v54 }
 0x526   :  { %5762 = vmatpush3.msra.mxu0 %v4061_v33 }
 0x527   :  { %5763 = vmatprep.subr.mxu0 %v8948_v54 }
 0x528   :  { %5764 = vmatpush3.msra.mxu0 %v4060_v6 }
 0x529   :  { %5765 = vmatprep.subr.mxu0 %v8948_v54 }
 0x52a   :  { %5766 = vmatpush3.msra.mxu0 %v4059_v14 }
 0x52b   :  { %5767 = vmatprep.subr.mxu0 %v8948_v54 }
 0x52c   :  { %5768 = vmatpush3.msra.mxu0 %v4058_v4 }
 0x52d   :  { %5769 = vmatprep.subr.mxu0 %v8948_v54 }
 0x52e   :  { %5770 = vmatpush3.msra.mxu0 %v4057_v25 }
 0x52f   :  { %5771 = vmatprep.subr.mxu0 %v8948_v54 }
 0x530   :  { %5772 = vmatpush3.msra.mxu0 %v4056_v40 }
 0x531   :  { %5773 = vmatprep.subr.mxu0 %v8948_v54 }
 0x532   :  { %5774 = vmatpush3.msra.mxu0 %v4055_v23  ;;  %v4100_v23 = vld [vmem:[%s8910_s6] ss:$0 sm:$0xff] }
 0x533   :  { %5775 = vmatprep.subr.mxu0 %v8948_v54 }
 0x534   :  { %5776 = vmatpush3.msra.mxu0 %v4054_v61 }
 0x535   :  { %5777 = vmatprep.subr.mxu0 %v8948_v54 }
 0x536   :  { %5778 = vmatpush3.msra.mxu0 %v4053_v42 }
 0x537   :  { %5779 = vmatprep.subr.mxu0 %v8948_v54 }
 0x538   :  { %5780 = vmatpush3.msra.mxu0 %v4052_v7 }
 0x539   :  { %5781 = vmatprep.subr.mxu0 %v8948_v54 }
 0x53a   :  { %5782 = vmatpush3.msra.mxu0 %v4051_v58 }
 0x53b   :  { %5783 = vmatprep.subr.mxu0 %v8948_v54 }
 0x53c   :  { %v2893_v41 = vpop.f32.mrf.mxu1  ;;  %5784 = vmatpush3.msra.mxu0 %v4050_v56  ;;  %v3314_v56 = vld [vmem:[%s8911_s7] sm:$0x3] }
 0x53d   :  { %5786 = vmatmul.mubr.f32.vlgmr.msra.gmra.mxu0 %v2893_v41  ;;  %5823 = vmatprep.subr.mxu0 %v8948_v54  ;;  %v4104_v41 = vld [vmem:[%s8911_s7 + $0x4] sm:$0x3] }
 0x53e   :  { %5824 = vmatpush3.msra.mxu0 %v4082_v38  ;;  %v5752_v11 = vpop.f32.mrf.mxu1  ;;  %5855 = vmatprep.mubr.msk.f32.mxu0 %vm6044_vm0, %v8948_v54  ;;  %v4102_v38 = vld [vmem:[%s8911_s7 + $0x2] sm:$0x3] }
 0x53f   :  { %5825 = vmatprep.subr.mxu0 %v8948_v54  ;;  %v3632_v11 = vld [vmem:[%s8912_s8 + $0x78] sm:$0xff] }
 0x540   :  { %5826 = vmatpush3.msra.mxu0 %v4081_v20  ;;  %v4106_v20 = vld [vmem:[%s8911_s7 + $0x6] sm:$0x3] }
 0x541   :  { %5827 = vmatprep.subr.mxu0 %v8948_v54 }
 0x542   :  { %5828 = vmatpush3.msra.mxu0 %v4080_v1  ;;  %v3631_v1 = vld [vmem:[%s8912_s8 + $0x70] sm:$0xff] }
 0x543   :  { %5829 = vmatprep.subr.mxu0 %v8948_v54 }
 0x544   :  { %5830 = vmatpush3.msra.mxu0 %v4079_v31  ;;  %v3630_v31 = vld [vmem:[%s8912_s8 + $0x68] sm:$0xff] }
 0x545   :  { %5831 = vmatprep.subr.mxu0 %v8948_v54 }
 0x546   :  { %5832 = vmatpush3.msra.mxu0 %v4078_v62  ;;  %v3629_v62 = vld [vmem:[%s8912_s8 + $0x60] sm:$0xff] }
 0x547   :  { %5833 = vmatprep.subr.mxu0 %v8948_v54 }
 0x548   :  { %5834 = vmatpush3.msra.mxu0 %v4077_v3  ;;  %v3628_v3 = vld [vmem:[%s8912_s8 + $0x58] sm:$0xff] }
 0x549   :  { %5835 = vmatprep.subr.mxu0 %v8948_v54 }
 0x54a   :  { %5836 = vmatpush3.msra.mxu0 %v4076_v53  ;;  %v3627_v53 = vld [vmem:[%s8912_s8 + $0x50] sm:$0xff] }
 0x54b   :  { %5837 = vmatprep.subr.mxu0 %v8948_v54 }
 0x54c   :  { %5838 = vmatpush3.msra.mxu0 %v4075_v9  ;;  %v3626_v9 = vld [vmem:[%s8912_s8 + $0x48] sm:$0xff] }
 0x54d   :  { %5839 = vmatprep.subr.mxu0 %v8948_v54 }
 0x54e   :  { %5840 = vmatpush3.msra.mxu0 %v4074_v12  ;;  %v3625_v12 = vld [vmem:[%s8912_s8 + $0x40] sm:$0xff] }
 0x54f   :  { %5841 = vmatprep.subr.mxu0 %v8948_v54 }
 0x550   :  { %5842 = vmatpush3.msra.mxu0 %v4073_v13  ;;  %v3624_v13 = vld [vmem:[%s8912_s8 + $0x38] sm:$0xff] }
 0x551   :  { %5843 = vmatprep.subr.mxu0 %v8948_v54 }
 0x552   :  { %5844 = vmatpush3.msra.mxu0 %v4072_v28  ;;  %v3623_v28 = vld [vmem:[%s8912_s8 + $0x30] sm:$0xff] }
 0x553   :  { %5845 = vmatprep.subr.mxu0 %v8948_v54 }
 0x554   :  { %5846 = vmatpush3.msra.mxu0 %v4071_v26  ;;  %v3622_v26 = vld [vmem:[%s8912_s8 + $0x28] sm:$0xff] }
 0x555   :  { %5847 = vmatprep.subr.mxu0 %v8948_v54 }
 0x556   :  { %5848 = vmatpush3.msra.mxu0 %v4070_v36  ;;  %v3621_v36 = vld [vmem:[%s8912_s8 + $0x20] sm:$0xff] }
 0x557   :  { %5849 = vmatprep.subr.mxu0 %v8948_v54 }
 0x558   :  { %5850 = vmatpush3.msra.mxu0 %v4069_v35  ;;  %v3620_v35 = vld [vmem:[%s8912_s8 + $0x18] sm:$0xff] }
 0x559   :  { %5851 = vmatprep.subr.mxu0 %v8948_v54 }
 0x55a   :  { %5852 = vmatpush3.msra.mxu0 %v4068_v47  ;;  %v3619_v47 = vld [vmem:[%s8912_s8 + $0x10] sm:$0xff] }
 0x55b   :  { %5853 = vmatprep.subr.mxu0 %v8948_v54 }
 0x55c   :  { %v3053_v45 = vpop.f32.mrf.mxu1  ;;  %5854 = vmatpush3.msra.mxu0 %v4067_v15  ;;  %v3618_v15 = vld [vmem:[%s8912_s8 + $0x8] sm:$0xff] }
 0x55d   :  { %5856 = vmatmul.mubr.f32.vlgmr.msra.gmra.mxu0 %v3053_v45  ;;  %5893 = vmatprep.subr.mxu0 %v8948_v54  ;;  %v3726_v45 = vld [vmem:[%s8914_s10 + $0x78] sm:$0xff] }
 0x55e   :  { %5894 = vmatpush3.msra.mxu0 %v4099_v63  ;;  %v5822_v48 = vpop.f32.mrf.mxu1  ;;  %5925 = vmatprep.mubr.msk.f32.mxu0 %vm6044_vm0, %v8948_v54  ;;  %v3617_v63 = vld [vmem:[%s8912_s8] sm:$0xff] }
 0x55f   :  { %5895 = vmatprep.subr.mxu0 %v8948_v54  ;;  %v3724_v48 = vld [vmem:[%s8914_s10 + $0x68] sm:$0xff] }
 0x560   :  { %5896 = vmatpush3.msra.mxu0 %v4098_v21  ;;  %v3725_v21 = vld [vmem:[%s8914_s10 + $0x70] sm:$0xff] }
 0x561   :  { %5897 = vmatprep.subr.mxu0 %v8948_v54 }
 0x562   :  { %5898 = vmatpush3.msra.mxu0 %v4097_v50  ;;  %v3723_v50 = vld [vmem:[%s8914_s10 + $0x60] sm:$0xff] }
 0x563   :  { %5899 = vmatprep.subr.mxu0 %v8948_v54 }
 0x564   :  { %5900 = vmatpush3.msra.mxu0 %v4096_v30  ;;  %v3722_v30 = vld [vmem:[%s8914_s10 + $0x58] sm:$0xff] }
 0x565   :  { %5901 = vmatprep.subr.mxu0 %v8948_v54 }
 0x566   :  { %5902 = vmatpush3.msra.mxu0 %v4095_v49  ;;  %v3721_v49 = vld [vmem:[%s8914_s10 + $0x50] sm:$0xff] }
 0x567   :  { %5903 = vmatprep.subr.mxu0 %v8948_v54 }
 0x568   :  { %5904 = vmatpush3.msra.mxu0 %v4094_v16  ;;  %v3720_v16 = vld [vmem:[%s8914_s10 + $0x48] sm:$0xff] }
 0x569   :  { %5905 = vmatprep.subr.mxu0 %v8948_v54 }
 0x56a   :  { %5906 = vmatpush3.msra.mxu0 %v4093_v32  ;;  %v3719_v32 = vld [vmem:[%s8914_s10 + $0x40] sm:$0xff] }
 0x56b   :  { %5907 = vmatprep.subr.mxu0 %v8948_v54 }
 0x56c   :  { %5908 = vmatpush3.msra.mxu0 %v4092_v10  ;;  %v3718_v10 = vld [vmem:[%s8914_s10 + $0x38] sm:$0xff] }
 0x56d   :  { %5909 = vmatprep.subr.mxu0 %v8948_v54 }
 0x56e   :  { %5910 = vmatpush3.msra.mxu0 %v4091_v60  ;;  %v3717_v60 = vld [vmem:[%s8914_s10 + $0x30] sm:$0xff] }
 0x56f   :  { %5911 = vmatprep.subr.mxu0 %v8948_v54 }
 0x570   :  { %5912 = vmatpush3.msra.mxu0 %v4090_v43  ;;  %v3716_v43 = vld [vmem:[%s8914_s10 + $0x28] sm:$0xff] }
 0x571   :  { %5913 = vmatprep.subr.mxu0 %v8948_v54 }
 0x572   :  { %5914 = vmatpush3.msra.mxu0 %v4089_v5  ;;  %v3715_v5 = vld [vmem:[%s8914_s10 + $0x20] sm:$0xff] }
 0x573   :  { %5915 = vmatprep.subr.mxu0 %v8948_v54 }
 0x574   :  { %5916 = vmatpush3.msra.mxu0 %v4088_v29  ;;  %v3714_v29 = vld [vmem:[%s8914_s10 + $0x18] sm:$0xff] }
 0x575   :  { %5917 = vmatprep.subr.mxu0 %v8948_v54 }
 0x576   :  { %5918 = vmatpush3.msra.mxu0 %v4087_v18 }
 0x577   :  { %5919 = vmatprep.subr.mxu0 %v8948_v54 }
 0x578   :  { %5920 = vmatpush3.msra.mxu0 %v4086_v55 }
 0x579   :  { %5921 = vmatprep.subr.mxu0 %v8948_v54 }
 0x57a   :  { %5922 = vmatpush3.msra.mxu0 %v4085_v52 }
 0x57b   :  { %5923 = vmatprep.subr.mxu0 %v8948_v54 }
 0x57c   :  { %v3213_v27 = vpop.f32.mrf.mxu1  ;;  %5924 = vmatpush3.msra.mxu0 %v4084_v57 }
 0x57d   :  { %v2340_v2 = vpop.f32.mrf.mxu0  ;;  %5926 = vmatmul.mubr.f32.vlgmr.msra.gmra.mxu0 %v3213_v27  ;;  %5983 = vmatprep.subr.mxu0 %v8948_v54 }
 0x57e   :  { %v2344_v51 = vadd.f32 %v2340_v2, %v8299_v39  ;;  %v5892_v17 = vpop.f32.mrf.mxu1  ;;  %6015 = vmatprep.mubr.msk.f32.mxu0 %vm6044_vm0, %v8948_v54  ;;  %5984 = vmatpush3.msra.mxu0 %v3726_v45 }
 0x57f   :  { %v5507_v24 = vpop.f32.mrf.mxu0  ;;  %5985 = vmatprep.subr.mxu0 %v8948_v54 }
 0x580   :  { %5986 = vmatpush3.msra.mxu0 %v3725_v21 }
 0x581   :  { %5987 = vmatprep.subr.mxu0 %v8948_v54 }
 0x582   :  { %5988 = vmatpush3.msra.mxu0 %v3724_v48 }
 0x583   :  { %5989 = vmatprep.subr.mxu0 %v8948_v54 }
 0x584   :  { %5990 = vmatpush3.msra.mxu0 %v3723_v50 }
 0x585   :  { %5991 = vmatprep.subr.mxu0 %v8948_v54 }
 0x586   :  { %5992 = vmatpush3.msra.mxu0 %v3722_v30 }
 0x587   :  { %5993 = vmatprep.subr.mxu0 %v8948_v54 }
 0x588   :  { %5994 = vmatpush3.msra.mxu0 %v3721_v49 }
 0x589   :  { %5995 = vmatprep.subr.mxu0 %v8948_v54 }
 0x58a   :  { %5996 = vmatpush3.msra.mxu0 %v3720_v16 }
 0x58b   :  { %5997 = vmatprep.subr.mxu0 %v8948_v54 }
 0x58c   :  { %5998 = vmatpush3.msra.mxu0 %v3719_v32 }
 0x58d   :  { %5999 = vmatprep.subr.mxu0 %v8948_v54 }
 0x58e   :  { %6000 = vmatpush3.msra.mxu0 %v3718_v10 }
 0x58f   :  { %6001 = vmatprep.subr.mxu0 %v8948_v54 }
 0x590   :  { %6002 = vmatpush3.msra.mxu0 %v3717_v60 }
 0x591   :  { %6003 = vmatprep.subr.mxu0 %v8948_v54 }
 0x592   :  { %6004 = vmatpush3.msra.mxu0 %v3716_v43 }
 0x593   :  { %6005 = vmatprep.subr.mxu0 %v8948_v54 }
 0x594   :  { %6006 = vmatpush3.msra.mxu0 %v3715_v5 }
 0x595   :  { %6007 = vmatprep.subr.mxu0 %v8948_v54 }
 0x596   :  { %6008 = vmatpush3.msra.mxu0 %v3714_v29 }
 0x597   :  { %6009 = vmatprep.subr.mxu0 %v8948_v54 }
 0x59d   :  { %v2500_v8 = vpop.f32.mrf.mxu0 }
 0x59e   :  { %v2504_v19 = vadd.f32 %v2500_v8, %v2344_v51 }
 0x59f   :  { %v5577_v59 = vpop.f32.mrf.mxu0 }
 0x5a0   :  { %v3713_v59 = vld [vmem:[%s8914_s10 + $0x10] sm:$0xff] }
 0x5a1   :  { %6010 = vmatpush3.msra.mxu0 %v3713_v59 }
 0x5a2   :  { %6011 = vmatprep.subr.mxu0 %v8948_v54 }
 0x5bd   :  { %v2660_v46 = vpop.f32.mrf.mxu0 }
 0x5be   :  { %v2664_v44 = vadd.f32 %v2660_v46, %v2504_v19  ;;  %v3712_v46 = vld [vmem:[%s8914_s10 + $0x8] sm:$0xff] }
 0x5bf   :  { %v5647_v34 = vpop.f32.mrf.mxu0  ;;  %6012 = vmatpush3.msra.mxu0 %v3712_v46 }
 0x5c0   :  { %6013 = vmatprep.subr.mxu0 %v8948_v54  ;;  %v4108_v34 = vld [vmem:[%s8913_s9] ss:$0 sm:$0xff] }
 0x5dd   :  { %v2820_v0 = vpop.f32.mrf.mxu0 }
 0x5de   :  { %v2824_v22 = vadd.f32 %v2820_v0, %v2664_v44  ;;  %v3711_v44 = vld [vmem:[%s8914_s10] sm:$0xff]  ;;  %s6021_s10 = scalar_lea.vmem %s3812_s14, 32 }
 0x5df   :  { %v5717_v37 = vpop.f32.mrf.mxu0  ;;  %6014 = vmatpush3.msra.mxu0 %v3711_v44  ;;  %p6022_p0 = scmp.ne.s32.totalorder %s3812_s14, %s6021_s10  ;;  %p6027_p2 = scmp.lt.s32.totalorder %s6021_s10, %s6021_s10 }
 0x5e1   :  { %p6028_p3 = por %p6027_p2, %p6026_p1 }
 0x5e3   :  { %p6029_p4 = pnand %p6028_p3, %p6022_p0 }
 0x5fd   :  { %v2980_v33 = vpop.f32.mrf.mxu0 }
 0x5fe   :  { %v2984_v25 = vadd.f32 %v2980_v33, %v2824_v22 }
 0x5ff   :  { %v5787_v6 = vpop.f32.mrf.mxu0 }
 0x600   :  { %v4109_v6 = vld [vmem:[%s8915_s11] ss:$0 sm:$0xff] }
 0x61d   :  { %v3140_v14 = vpop.f32.mrf.mxu0 }
 0x61e   :  { %v3144_v39 = vadd.f32 %v3140_v14, %v2984_v25 }
 0x61f   :  { %v5857_v4 = vpop.f32.mrf.mxu0 }
 0x63d   :  { %v3300_v40 = vpop.f32.mrf.mxu0 }
 0x63e   :  { %v3304_v61 = vadd.f32 %v3300_v40, %v3144_v39 }
 0x63f   :  { %v5927_v42 = vpop.f32.mrf.mxu0 }
 0x640   :  { %v3312_v7 = vadd.f32 %v4100_v23, %v3304_v61 }
 0x642   :  { %v3313_v58 = vmax.f32 %v3312_v7, 0.0 }
 0x644   :  { %5929 = vmatpush3.msra.mxu1 %v3313_v58 }
 0x645   :  { %5931 = vmatmul.mubr.msk.f32.vlgmr.msra.gmra.mxu1 %vm3315_vm1, %v3314_v56  ;;  %5933 = vmatprep.subr.mxu1 %v8948_v54 }
 0x646   :  { %5934 = vmatpush3.msra.mxu1 %v3313_v58  ;;  %5935 = vmatprep.mubr.msk.f32.mxu1 %vm6044_vm0, %v8948_v54 }
 0x647   :  { %5938 = vmatprep.subr.mxu1 %v8948_v54 }
 0x649   :  { %5936 = vmatmul.mubr.msk.f32.vlgmr.msra.gmra.mxu1 %vm3315_vm1, %v4102_v38 }
 0x64a   :  { %5939 = vmatpush3.msra.mxu1 %v3313_v58  ;;  %5940 = vmatprep.mubr.msk.f32.mxu1 %vm6044_vm0, %v8948_v54 }
 0x64b   :  { %5943 = vmatprep.subr.mxu1 %v8948_v54 }
 0x64d   :  { %5941 = vmatmul.mubr.msk.f32.vlgmr.msra.gmra.mxu1 %vm3315_vm1, %v4104_v41 }
 0x64e   :  { %5944 = vmatpush3.msra.mxu1 %v3313_v58  ;;  %5945 = vmatprep.mubr.msk.f32.mxu1 %vm6044_vm0, %v8948_v54 }
 0x64f   :  { %5948 = vmatprep.subr.mxu1 %v8948_v54 }
 0x651   :  { %5946 = vmatmul.mubr.msk.f32.vlgmr.msra.gmra.mxu1 %vm3315_vm1, %v4106_v20 }
 0x652   :  { %5949 = vmatpush3.msra.mxu1 %v3632_v11  ;;  %5980 = vmatprep.mubr.msk.f32.mxu1 %vm6044_vm0, %v8948_v54 }
 0x653   :  { %5950 = vmatprep.subr.mxu1 %v8948_v54 }
 0x654   :  { %5951 = vmatpush3.msra.mxu1 %v3631_v1 }
 0x655   :  { %5952 = vmatprep.subr.mxu1 %v8948_v54 }
 0x656   :  { %5953 = vmatpush3.msra.mxu1 %v3630_v31 }
 0x657   :  { %5954 = vmatprep.subr.mxu1 %v8948_v54 }
 0x658   :  { %5955 = vmatpush3.msra.mxu1 %v3629_v62 }
 0x659   :  { %5956 = vmatprep.subr.mxu1 %v8948_v54 }
 0x65a   :  { %5957 = vmatpush3.msra.mxu1 %v3628_v3 }
 0x65b   :  { %5958 = vmatprep.subr.mxu1 %v8948_v54 }
 0x65c   :  { %5959 = vmatpush3.msra.mxu1 %v3627_v53 }
 0x65d   :  { %5960 = vmatprep.subr.mxu1 %v8948_v54 }
 0x65e   :  { %5961 = vmatpush3.msra.mxu1 %v3626_v9 }
 0x65f   :  { %5962 = vmatprep.subr.mxu1 %v8948_v54 }
 0x660   :  { %5963 = vmatpush3.msra.mxu1 %v3625_v12 }
 0x661   :  { %5964 = vmatprep.subr.mxu1 %v8948_v54 }
 0x662   :  { %5965 = vmatpush3.msra.mxu1 %v3624_v13 }
 0x663   :  { %5966 = vmatprep.subr.mxu1 %v8948_v54 }
 0x664   :  { %5967 = vmatpush3.msra.mxu1 %v3623_v28 }
 0x665   :  { %5968 = vmatprep.subr.mxu1 %v8948_v54 }
 0x666   :  { %5969 = vmatpush3.msra.mxu1 %v3622_v26 }
 0x667   :  { %5970 = vmatprep.subr.mxu1 %v8948_v54 }
 0x668   :  { %5971 = vmatpush3.msra.mxu1 %v3621_v36 }
 0x669   :  { %5972 = vmatprep.subr.mxu1 %v8948_v54 }
 0x66a   :  { %5973 = vmatpush3.msra.mxu1 %v3620_v35 }
 0x66b   :  { %5974 = vmatprep.subr.mxu1 %v8948_v54 }
 0x66c   :  { %5975 = vmatpush3.msra.mxu1 %v3619_v47 }
 0x66d   :  { %5976 = vmatprep.subr.mxu1 %v8948_v54 }
 0x66e   :  { %5977 = vmatpush3.msra.mxu1 %v3618_v15 }
 0x66f   :  { %5978 = vmatprep.subr.mxu1 %v8948_v54 }
 0x670   :  { %5979 = vmatpush3.msra.mxu1 %v3617_v63 }
 0x705   :  { %v3385_v18 = vpop.f32.mrf.mxu1 }
 0x707   :  { %v5932_v55 = vpop.f32.mrf.mxu1 }
 0x709   :  { %v3460_v52 = vpop.f32.mrf.mxu1 }
 0x70a   :  { %v3464_v2 = vmax.f32 %v3385_v18, %v3460_v52 }
 0x70b   :  { %v5937_v57 = vpop.f32.mrf.mxu1 }
 0x70d   :  { %v3536_v27 = vpop.f32.mrf.mxu1 }
 0x70e   :  { %v3540_v17 = vmax.f32 %v3464_v2, %v3536_v27 }
 0x70f   :  { %v5942_v51 = vpop.f32.mrf.mxu1 }
 0x711   :  { %v3612_v24 = vpop.f32.mrf.mxu1 }
 0x712   :  { %v3616_v8 = vmax.f32 %v3540_v17, %v3612_v24 }
 0x713   :  { %v5947_v19 = vpop.f32.mrf.mxu1 }
 0x714   :  { %5981 = vmatmul.mubr.f32.vlgmr.msra.gmra.mxu1 %v3616_v8 }
 0x7d4   :  { %v3706_v0 = vpop.f32.mrf.mxu1 }
 0x7d5   :  { %v3707_v22 = vadd.f32 %v4108_v34, %v3706_v0 }
 0x7d6   :  { %v5982_v37 = vpop.f32.mrf.mxu1 }
 0x7d7   :  { %v3710_v33 = vmax.f32 %v3707_v22, 0.0 }
 0x7d9   :  { %6016 = vmatmul.mubr.f32.vlgmr.msra.gmra.mxu0 %v3710_v33 }
 0x899   :  { %v3800_v14 = vpop.f32.mrf.mxu0 }
 0x89a   :  { %v3801_v4 = vadd.f32 %v4109_v6, %v3800_v14 }
 0x89b   :  { %v6017_v54 = vpop.f32.mrf.mxu0 }
 0x89c   :  { %3804 = vst [vmem:[#allocation2] sm:$0x3] %v3801_v4 }
 0x89d   :  { %6032 = shalt.err (!%p6029_p4)
}
 0x89e   :  { %3814 = dma.vmem_to_hbm [thread:$0]  %s3812_s14, 32, %s8916_s12, [#allocation3]  }
 0x89f   :  { %6041 = dma.done.wait [#allocation3], 32  }
 0x8a0   :  { %6042 = vsyncadd [#allocation3], 4294967264 }
 0x8a1   :  { %3818 = vsyncpa [#allocation3], 1 }

</bundles_post_ra>
